<compile_context>
chip_gen: v7x
topology: tpu7x:2x2x1
jax: 0.10.0
libtpu: 0.0.40
codegen_flags: <defaults>
</compile_context>

<pallas_src>
import functools
import jax
import jax.numpy as jnp
from jax import lax
from jax.experimental import pallas as pl
from jax.experimental.pallas import tpu as pltpu

SUBLANE = 8    # f32 sublane tile
LANE = 128     # lane tile


# ------------------------- fused forward kernel --------------------------
def _make_fused_kernel(T, BP, H, num_layers, ck_pad):
    """conv folded into layer-0 projection -> wavefront LSTM -> linear."""
    H4 = 4 * H

    def kernel(patches_ref, wslab_ref, out_ref, gin0_scr):
        # ---- hoisted, loop-invariant weight views (8-row aligned, 128-lane) --
        off = ck_pad
        whh = [wslab_ref[off:off + H, :]]           # layer-0 recurrent weights
        wih = [None]
        bias = [None]
        off += H
        for l in range(1, num_layers):
            wih.append(wslab_ref[off:off + H, :]); off += H
            whh.append(wslab_ref[off:off + H, :]); off += H
            bias.append(wslab_ref[off:off + 1, :]); off += SUBLANE
        fc_off = off

        # ---- conv + layer-0 input projection + both biases: ONE matmul ------
        # patches_aug carries a ones column, W_eff_aug carries b_eff in the
        # matching row, so no separate bias add is needed.
        gin0_scr[...] = jnp.dot(patches_ref[...], wslab_ref[0:ck_pad, :],
                                preferred_element_type=jnp.float32)

        # ---- wavefront-unrolled recurrence -----------------------------------
        zeros = jnp.zeros((BP, H), jnp.float32)
        h = [zeros] * num_layers
        c = [zeros] * num_layers

        def lstm_step(gates, c_prev):
            # Full-vreg EUP pushes; gate extraction afterwards (4 static
            # H-lane slices of a full (8,128) vreg).
            a_sig = jax.nn.sigmoid(gates)           # (BP, 4H)
            a_tanh = jnp.tanh(gates)                # (BP, 4H)
            i_g = a_sig[:, 0 * H:1 * H]
            f_g = a_sig[:, 1 * H:2 * H]
            o_g = a_sig[:, 2 * H:3 * H]
            g_g = a_tanh[:, 3 * H:4 * H]
            c_new = f_g * c_prev + i_g * g_g
            h_new = o_g * jnp.tanh(c_new)
            return h_new, c_new

        # tick s: layer l processes timestep t = s - l (if valid).  All
        # reads use the previous tick's snapshot, so per-tick layer chains
        # are independent and interleave freely in the unrolled trace.
        for s in range(T + num_layers - 1):
            hprev = list(h)                          # snapshot of last tick
            for l in range(num_layers):
                t = s - l
                if 0 <= t < T:
                    if l == 0:
                        gates = (gin0_scr[t * BP:(t + 1) * BP, :]
                                 + jnp.dot(hprev[0], whh[0],
                                           preferred_element_type=jnp.float32))
                    else:
                        gates = (jnp.dot(hprev[l - 1], wih[l],
                                         preferred_element_type=jnp.float32)
                                 + jnp.dot(hprev[l], whh[l],
                                           preferred_element_type=jnp.float32)
                                 + bias[l])
                    h[l], c[l] = lstm_step(gates, c[l])

        # ---- final Linear epilogue on the last hidden state ------------------
        wfc = wslab_ref[fc_off:fc_off + H, :]        # (H, 4H), cols >= O are 0
        bfc = wslab_ref[fc_off + H:fc_off + H + 1, :]
        out_ref[...] = (jnp.dot(h[num_layers - 1], wfc,
                                preferred_element_type=jnp.float32) + bfc)

    return kernel


def _reorder_gates(a, H):
    # PyTorch gate blocks [i, f, g, o] -> [i, f, o, g] (sigmoid gates first).
    return jnp.concatenate(
        [a[0 * H:1 * H], a[1 * H:2 * H], a[3 * H:4 * H], a[2 * H:3 * H]], axis=0)


@functools.partial(jax.jit, static_argnames=("stride", "padding", "num_layers"))
def cnn_lstm_forward(x, params, *, stride, padding, num_layers):
    B, C_in, L = x.shape
    w_conv, b_conv = params["conv_w"], params["conv_b"]
    C_out, _, K = w_conv.shape
    T = (L + 2 * padding - K) // stride + 1
    H = params["w_hh_0"].shape[1]
    H4 = 4 * H
    O = params["fc_w"].shape[0]
    BP = max(SUBLANE, ((B + SUBLANE - 1) // SUBLANE) * SUBLANE)   # padded batch
    ck = C_in * K
    ck_pad = ((ck + 1 + LANE - 1) // LANE) * LANE                 # +1 ones col
    assert O <= H4 and H % SUBLANE == 0 and H4 % LANE == 0

    # --- im2col with batch padded to a full sublane tile (time-major rows) ---
    # patches[t*BP + b, ci*K + k] = x_pad[b, ci, t*stride + k]
    x_pad = jnp.pad(x, ((0, BP - B), (0, 0), (padding, padding)))
    cols = jnp.stack([x_pad[:, :, k:k + stride * T:stride] for k in range(K)],
                     axis=-1)                                   # (BP, C_in, T, K)
    patches = jnp.transpose(cols, (2, 0, 1, 3)).reshape(T * BP, ck)
    patches_aug = (jnp.zeros((T * BP, ck_pad), jnp.float32)
                   .at[:, :ck].set(patches)
                   .at[:, ck].set(1.0))                         # ones col -> bias

    # --- fold conv + layer-0 input projection + biases into W_eff_aug --------
    wconv2d = jnp.transpose(w_conv, (1, 2, 0)).reshape(ck, C_out)
    wih0 = _reorder_gates(params["w_ih_0"], H).T                # (C_out, 4H)
    bias0 = _reorder_gates(params["b_ih_0"] + params["b_hh_0"], H)
    w_eff = wconv2d @ wih0                                      # (ck, 4H)
    b_eff = b_conv @ wih0 + bias0                               # (4H,)
    w_eff_aug = (jnp.zeros((ck_pad, H4), jnp.float32)
                 .at[:ck, :].set(w_eff)
                 .at[ck, :].set(b_eff))

    # --- single lane-dense weight slab (one wide DMA instead of many narrow) -
    blocks = [w_eff_aug,
              _reorder_gates(params["w_hh_0"], H).T]            # (H, 4H)
    for l in range(1, num_layers):
        blocks.append(_reorder_gates(params[f"w_ih_{l}"], H).T)
        blocks.append(_reorder_gates(params[f"w_hh_{l}"], H).T)
        bl = _reorder_gates(params[f"b_ih_{l}"] + params[f"b_hh_{l}"], H)
        blocks.append(jnp.zeros((SUBLANE, H4), jnp.float32).at[0, :].set(bl))
    blocks.append(jnp.zeros((H, H4), jnp.float32).at[:, :O].set(params["fc_w"].T))
    blocks.append(jnp.zeros((SUBLANE, H4), jnp.float32).at[0, :O].set(params["fc_b"]))
    wslab = jnp.concatenate(blocks, axis=0)                     # (rows, 4H)

    kern = _make_fused_kernel(T, BP, H, num_layers, ck_pad)
    out_pad = pl.pallas_call(
        kern,
        out_shape=jax.ShapeDtypeStruct((BP, H4), jnp.float32),  # lane-dense out
        grid=(1,),
        in_specs=[pl.BlockSpec((T * BP, ck_pad), lambda i: (0, 0)),
                  pl.BlockSpec(wslab.shape, lambda i: (0, 0))],
        out_specs=pl.BlockSpec((BP, H4), lambda i: (0, 0)),
        scratch_shapes=[pltpu.VMEM((T * BP, H4), jnp.float32)],  # gin0
        compiler_params=pltpu.CompilerParams(
            dimension_semantics=("arbitrary",)),
    )(patches_aug, wslab)
    return out_pad[:B, :O]


# ------------------------- Pure-JAX reference ----------------------------
def reference_forward(x, params, *, stride, padding, num_layers, hidden_dim):
    B, C_in, L = x.shape
    C_out, _, K = params["conv_w"].shape
    L_out = (L + 2 * padding - K) // stride + 1
    xp = jnp.pad(x, ((0, 0), (0, 0), (padding, padding)))
    y = jnp.zeros((B, C_out, L_out), jnp.float32)
    for k in range(K):
        xs = xp[:, :, k:k + stride * L_out:stride]
        y = y + jnp.einsum("oi,bil->bol", params["conv_w"][:, :, k], xs)
    y = y + params["conv_b"][None, :, None]

    seq = jnp.transpose(y, (0, 2, 1))                   # (B, T, C)
    for l in range(num_layers):
        w_ih, w_hh = params[f"w_ih_{l}"], params[f"w_hh_{l}"]
        b = params[f"b_ih_{l}"] + params[f"b_hh_{l}"]
        H = hidden_dim

        def step(carry, x_t):
            h, c = carry
            g = x_t @ w_ih.T + h @ w_hh.T + b
            i = jax.nn.sigmoid(g[:, 0 * H:1 * H])
            f = jax.nn.sigmoid(g[:, 1 * H:2 * H])
            gg = jnp.tanh(g[:, 2 * H:3 * H])
            o = jax.nn.sigmoid(g[:, 3 * H:4 * H])
            c = f * c + i * gg
            h = o * jnp.tanh(c)
            return (h, c), h

        h0 = jnp.zeros((B, H), jnp.float32)
        (_, _), hs = lax.scan(step, (h0, h0), jnp.transpose(seq, (1, 0, 2)))
        seq = jnp.transpose(hs, (1, 0, 2))
    h_last = seq[:, -1, :]
    return h_last @ params["fc_w"].T + params["fc_b"]


# ------------------------------ Param init -------------------------------
def init_params(key, input_dim, output_dim, hidden_dim, out_channels,
                num_layers, kernel_size):
    def uniform(k, shape, fan):
        bound = 1.0 / jnp.sqrt(fan)
        return jax.random.uniform(k, shape, jnp.float32, -bound, bound)

    keys = jax.random.split(key, 4 + 4 * num_layers)
    p = {}
    fan_conv = input_dim * kernel_size
    p["conv_w"] = uniform(keys[0], (out_channels, input_dim, kernel_size), fan_conv)
    p["conv_b"] = uniform(keys[1], (out_channels,), fan_conv)
    idx = 2
    for l in range(num_layers):
        in_sz = out_channels if l == 0 else hidden_dim
        p[f"w_ih_{l}"] = uniform(keys[idx + 0], (4 * hidden_dim, in_sz), hidden_dim)
        p[f"w_hh_{l}"] = uniform(keys[idx + 1], (4 * hidden_dim, hidden_dim), hidden_dim)
        p[f"b_ih_{l}"] = uniform(keys[idx + 2], (4 * hidden_dim,), hidden_dim)
        p[f"b_hh_{l}"] = uniform(keys[idx + 3], (4 * hidden_dim,), hidden_dim)
        idx += 4
    p["fc_w"] = uniform(keys[idx + 0], (output_dim, hidden_dim), hidden_dim)
    p["fc_b"] = uniform(keys[idx + 1], (output_dim,), hidden_dim)
    return p


if __name__ == "__main__":
    # Module hyper-parameters (small, consistent with the forward pass).
    input_dim, output_dim, hidden_dim = 4, 4, 32
    out_channels, num_layers = 8, 2
    kernel_size, padding, stride = 3, 1, 1
    B, L = 2, 16

    key = jax.random.PRNGKey(0)
    kx, kp = jax.random.split(key)
    x = jax.random.normal(kx, (B, input_dim, L), jnp.float32)   # NCL input
    params = init_params(kp, input_dim, output_dim, hidden_dim,
                         out_channels, num_layers, kernel_size)

    out = cnn_lstm_forward(x, params, stride=stride, padding=padding,
                           num_layers=num_layers)
    out = jax.block_until_ready(out)

    ref = reference_forward(x, params, stride=stride, padding=padding,
                            num_layers=num_layers, hidden_dim=hidden_dim)
    assert out.shape == (B, output_dim)
    assert jnp.allclose(out, ref, atol=1e-4, rtol=1e-4), "mismatch vs reference"
    print("KERNEL_OK")
</pallas_src>

<mosaic_0001>
module attributes {stable_mosaic.version = 11 : i64} {
  func.func @kernel(%arg0: i32, %arg1: memref<128x128xf32, #tpu.memory_space<vmem>>, %arg2: memref<272x128xf32, #tpu.memory_space<vmem>>, %arg3: memref<8x128xf32, #tpu.memory_space<vmem>>, %arg4: memref<128x128xf32, #tpu.memory_space<vmem>>) attributes {dimension_semantics = [#tpu.dimension_semantics<arbitrary>], iteration_bounds = array<i64: 1>, scalar_prefetch = 0 : i64, scratch_operands = 1 : i64, tpu.core_type = #tpu.core_type<tc>, window_params = [{pipeline_mode = #tpu.pipeline_mode<synchronous>, transform_indices = @transform_0, window_bounds = array<i64: 128, 128>}, {pipeline_mode = #tpu.pipeline_mode<synchronous>, transform_indices = @transform_1, window_bounds = array<i64: 272, 128>}, {pipeline_mode = #tpu.pipeline_mode<synchronous>, transform_indices = @transform_2, window_bounds = array<i64: 8, 128>}]} {
    %c128 = arith.constant 128 : index
    %c0 = arith.constant 0 : index
    %0 = vector.load %arg2[%c128, %c0] : memref<272x128xf32, #tpu.memory_space<vmem>>, vector<32x128xf32>
    %c160 = arith.constant 160 : index
    %c0_0 = arith.constant 0 : index
    %1 = vector.load %arg2[%c160, %c0_0] : memref<272x128xf32, #tpu.memory_space<vmem>>, vector<32x128xf32>
    %c192 = arith.constant 192 : index
    %c0_1 = arith.constant 0 : index
    %2 = vector.load %arg2[%c192, %c0_1] : memref<272x128xf32, #tpu.memory_space<vmem>>, vector<32x128xf32>
    %c224 = arith.constant 224 : index
    %c0_2 = arith.constant 0 : index
    %3 = vector.load %arg2[%c224, %c0_2] : memref<272x128xf32, #tpu.memory_space<vmem>>, vector<1x128xf32>
    %c0_3 = arith.constant 0 : index
    %c0_4 = arith.constant 0 : index
    %4 = vector.load %arg1[%c0_3, %c0_4] : memref<128x128xf32, #tpu.memory_space<vmem>>, vector<128x128xf32>
    %c0_5 = arith.constant 0 : index
    %c0_6 = arith.constant 0 : index
    %5 = vector.load %arg2[%c0_5, %c0_6] : memref<272x128xf32, #tpu.memory_space<vmem>>, vector<128x128xf32>
    %cst = arith.constant dense<0.000000e+00> : vector<128x128xf32>
    %6 = tpu.matmul %4, %5, %cst {dimension_numbers = #tpu.dot_dimension_numbers<[1], [0], [0], [1], [0, 0, 1, 1], [], []>} : vector<128x128xf32>, vector<128x128xf32>, vector<128x128xf32> -> vector<128x128xf32>
    %c0_7 = arith.constant 0 : index
    %c0_8 = arith.constant 0 : index
    %7 = vector.load %arg4[%c0_7, %c0_8] : memref<128x128xf32, #tpu.memory_space<vmem>>, vector<128x128xf32>
    tpu.vector_store %arg4[%c0_7, %c0_8], %6 {strides = array<i32>} : memref<128x128xf32, #tpu.memory_space<vmem>>, vector<128x128xf32>,
    %cst_9 = arith.constant 0.000000e+00 : f32
    %8 = vector.broadcast %cst_9 : f32 to vector<8x32xf32>
    %c0_10 = arith.constant 0 : index
    %c0_11 = arith.constant 0 : index
    %9 = vector.load %arg4[%c0_10, %c0_11] : memref<128x128xf32, #tpu.memory_space<vmem>>, vector<8x128xf32>
    %cst_12 = arith.constant dense<0.000000e+00> : vector<8x128xf32>
    %10 = tpu.matmul %8, %0, %cst_12 {dimension_numbers = #tpu.dot_dimension_numbers<[1], [0], [0], [1], [0, 0, 1, 1], [], []>} : vector<8x32xf32>, vector<32x128xf32>, vector<8x128xf32> -> vector<8x128xf32>
    %11 = arith.addf %9, %10 : vector<8x128xf32>
    %12 = arith.negf %11 : vector<8x128xf32>
    %13 = math.exp %12 : vector<8x128xf32>
    %cst_13 = arith.constant 1.000000e+00 : f32
    %14 = vector.broadcast %cst_13 : f32 to vector<8x128xf32>
    %15 = arith.addf %14, %13 : vector<8x128xf32>
    %16 = arith.divf %14, %15 : vector<8x128xf32>
    %17 = math.tanh %11 : vector<8x128xf32>
    %18 = vector.extract_strided_slice %16 {offsets = [0, 0], sizes = [8, 32], strides = [1, 1]} : vector<8x128xf32> to vector<8x32xf32>
    %19 = vector.extract_strided_slice %16 {offsets = [0, 32], sizes = [8, 32], strides = [1, 1]} : vector<8x128xf32> to vector<8x32xf32>
    %20 = vector.extract_strided_slice %16 {offsets = [0, 64], sizes = [8, 32], strides = [1, 1]} : vector<8x128xf32> to vector<8x32xf32>
    %21 = vector.extract_strided_slice %17 {offsets = [0, 96], sizes = [8, 32], strides = [1, 1]} : vector<8x128xf32> to vector<8x32xf32>
    %22 = arith.mulf %19, %8 : vector<8x32xf32>
    %23 = arith.mulf %18, %21 : vector<8x32xf32>
    %24 = arith.addf %22, %23 : vector<8x32xf32>
    %25 = math.tanh %24 : vector<8x32xf32>
    %26 = arith.mulf %20, %25 : vector<8x32xf32>
    %c8 = arith.constant 8 : index
    %c0_14 = arith.constant 0 : index
    %27 = vector.load %arg4[%c8, %c0_14] : memref<128x128xf32, #tpu.memory_space<vmem>>, vector<8x128xf32>
    %cst_15 = arith.constant dense<0.000000e+00> : vector<8x128xf32>
    %28 = tpu.matmul %26, %0, %cst_15 {dimension_numbers = #tpu.dot_dimension_numbers<[1], [0], [0], [1], [0, 0, 1, 1], [], []>} : vector<8x32xf32>, vector<32x128xf32>, vector<8x128xf32> -> vector<8x128xf32>
    %29 = arith.addf %27, %28 : vector<8x128xf32>
    %30 = arith.negf %29 : vector<8x128xf32>
    %31 = math.exp %30 : vector<8x128xf32>
    %cst_16 = arith.constant 1.000000e+00 : f32
    %32 = vector.broadcast %cst_16 : f32 to vector<8x128xf32>
    %33 = arith.addf %32, %31 : vector<8x128xf32>
    %34 = arith.divf %32, %33 : vector<8x128xf32>
    %35 = math.tanh %29 : vector<8x128xf32>
    %36 = vector.extract_strided_slice %34 {offsets = [0, 0], sizes = [8, 32], strides = [1, 1]} : vector<8x128xf32> to vector<8x32xf32>
    %37 = vector.extract_strided_slice %34 {offsets = [0, 32], sizes = [8, 32], strides = [1, 1]} : vector<8x128xf32> to vector<8x32xf32>
    %38 = vector.extract_strided_slice %34 {offsets = [0, 64], sizes = [8, 32], strides = [1, 1]} : vector<8x128xf32> to vector<8x32xf32>
    %39 = vector.extract_strided_slice %35 {offsets = [0, 96], sizes = [8, 32], strides = [1, 1]} : vector<8x128xf32> to vector<8x32xf32>
    %40 = arith.mulf %37, %24 : vector<8x32xf32>
    %41 = arith.mulf %36, %39 : vector<8x32xf32>
    %42 = arith.addf %40, %41 : vector<8x32xf32>
    %43 = math.tanh %42 : vector<8x32xf32>
    %44 = arith.mulf %38, %43 : vector<8x32xf32>
    %cst_17 = arith.constant dense<0.000000e+00> : vector<8x128xf32>
    %45 = tpu.matmul %26, %1, %cst_17 {dimension_numbers = #tpu.dot_dimension_numbers<[1], [0], [0], [1], [0, 0, 1, 1], [], []>} : vector<8x32xf32>, vector<32x128xf32>, vector<8x128xf32> -> vector<8x128xf32>
    %cst_18 = arith.constant dense<0.000000e+00> : vector<8x128xf32>
    %46 = tpu.matmul %8, %2, %cst_18 {dimension_numbers = #tpu.dot_dimension_numbers<[1], [0], [0], [1], [0, 0, 1, 1], [], []>} : vector<8x32xf32>, vector<32x128xf32>, vector<8x128xf32> -> vector<8x128xf32>
    %47 = arith.addf %45, %46 : vector<8x128xf32>
    %48 = vector.broadcast %3 : vector<1x128xf32> to vector<8x128xf32>
    %49 = arith.addf %47, %48 : vector<8x128xf32>
    %50 = arith.negf %49 : vector<8x128xf32>
    %51 = math.exp %50 : vector<8x128xf32>
    %cst_19 = arith.constant 1.000000e+00 : f32
    %52 = vector.broadcast %cst_19 : f32 to vector<8x128xf32>
    %53 = arith.addf %52, %51 : vector<8x128xf32>
    %54 = arith.divf %52, %53 : vector<8x128xf32>
    %55 = math.tanh %49 : vector<8x128xf32>
    %56 = vector.extract_strided_slice %54 {offsets = [0, 0], sizes = [8, 32], strides = [1, 1]} : vector<8x128xf32> to vector<8x32xf32>
    %57 = vector.extract_strided_slice %54 {offsets = [0, 32], sizes = [8, 32], strides = [1, 1]} : vector<8x128xf32> to vector<8x32xf32>
    %58 = vector.extract_strided_slice %54 {offsets = [0, 64], sizes = [8, 32], strides = [1, 1]} : vector<8x128xf32> to vector<8x32xf32>
    %59 = vector.extract_strided_slice %55 {offsets = [0, 96], sizes = [8, 32], strides = [1, 1]} : vector<8x128xf32> to vector<8x32xf32>
    %60 = arith.mulf %57, %8 : vector<8x32xf32>
    %61 = arith.mulf %56, %59 : vector<8x32xf32>
    %62 = arith.addf %60, %61 : vector<8x32xf32>
    %63 = math.tanh %62 : vector<8x32xf32>
    %64 = arith.mulf %58, %63 : vector<8x32xf32>
    %c16 = arith.constant 16 : index
    %c0_20 = arith.constant 0 : index
    %65 = vector.load %arg4[%c16, %c0_20] : memref<128x128xf32, #tpu.memory_space<vmem>>, vector<8x128xf32>
    %cst_21 = arith.constant dense<0.000000e+00> : vector<8x128xf32>
    %66 = tpu.matmul %44, %0, %cst_21 {dimension_numbers = #tpu.dot_dimension_numbers<[1], [0], [0], [1], [0, 0, 1, 1], [], []>} : vector<8x32xf32>, vector<32x128xf32>, vector<8x128xf32> -> vector<8x128xf32>
    %67 = arith.addf %65, %66 : vector<8x128xf32>
    %68 = arith.negf %67 : vector<8x128xf32>
    %69 = math.exp %68 : vector<8x128xf32>
    %cst_22 = arith.constant 1.000000e+00 : f32
    %70 = vector.broadcast %cst_22 : f32 to vector<8x128xf32>
    %71 = arith.addf %70, %69 : vector<8x128xf32>
    %72 = arith.divf %70, %71 : vector<8x128xf32>
    %73 = math.tanh %67 : vector<8x128xf32>
    %74 = vector.extract_strided_slice %72 {offsets = [0, 0], sizes = [8, 32], strides = [1, 1]} : vector<8x128xf32> to vector<8x32xf32>
    %75 = vector.extract_strided_slice %72 {offsets = [0, 32], sizes = [8, 32], strides = [1, 1]} : vector<8x128xf32> to vector<8x32xf32>
    %76 = vector.extract_strided_slice %72 {offsets = [0, 64], sizes = [8, 32], strides = [1, 1]} : vector<8x128xf32> to vector<8x32xf32>
    %77 = vector.extract_strided_slice %73 {offsets = [0, 96], sizes = [8, 32], strides = [1, 1]} : vector<8x128xf32> to vector<8x32xf32>
    %78 = arith.mulf %75, %42 : vector<8x32xf32>
    %79 = arith.mulf %74, %77 : vector<8x32xf32>
    %80 = arith.addf %78, %79 : vector<8x32xf32>
    %81 = math.tanh %80 : vector<8x32xf32>
    %82 = arith.mulf %76, %81 : vector<8x32xf32>
    %cst_23 = arith.constant dense<0.000000e+00> : vector<8x128xf32>
    %83 = tpu.matmul %44, %1, %cst_23 {dimension_numbers = #tpu.dot_dimension_numbers<[1], [0], [0], [1], [0, 0, 1, 1], [], []>} : vector<8x32xf32>, vector<32x128xf32>, vector<8x128xf32> -> vector<8x128xf32>
    %cst_24 = arith.constant dense<0.000000e+00> : vector<8x128xf32>
    %84 = tpu.matmul %64, %2, %cst_24 {dimension_numbers = #tpu.dot_dimension_numbers<[1], [0], [0], [1], [0, 0, 1, 1], [], []>} : vector<8x32xf32>, vector<32x128xf32>, vector<8x128xf32> -> vector<8x128xf32>
    %85 = arith.addf %83, %84 : vector<8x128xf32>
    %86 = vector.broadcast %3 : vector<1x128xf32> to vector<8x128xf32>
    %87 = arith.addf %85, %86 : vector<8x128xf32>
    %88 = arith.negf %87 : vector<8x128xf32>
    %89 = math.exp %88 : vector<8x128xf32>
    %cst_25 = arith.constant 1.000000e+00 : f32
    %90 = vector.broadcast %cst_25 : f32 to vector<8x128xf32>
    %91 = arith.addf %90, %89 : vector<8x128xf32>
    %92 = arith.divf %90, %91 : vector<8x128xf32>
    %93 = math.tanh %87 : vector<8x128xf32>
    %94 = vector.extract_strided_slice %92 {offsets = [0, 0], sizes = [8, 32], strides = [1, 1]} : vector<8x128xf32> to vector<8x32xf32>
    %95 = vector.extract_strided_slice %92 {offsets = [0, 32], sizes = [8, 32], strides = [1, 1]} : vector<8x128xf32> to vector<8x32xf32>
    %96 = vector.extract_strided_slice %92 {offsets = [0, 64], sizes = [8, 32], strides = [1, 1]} : vector<8x128xf32> to vector<8x32xf32>
    %97 = vector.extract_strided_slice %93 {offsets = [0, 96], sizes = [8, 32], strides = [1, 1]} : vector<8x128xf32> to vector<8x32xf32>
    %98 = arith.mulf %95, %62 : vector<8x32xf32>
    %99 = arith.mulf %94, %97 : vector<8x32xf32>
    %100 = arith.addf %98, %99 : vector<8x32xf32>
    %101 = math.tanh %100 : vector<8x32xf32>
    %102 = arith.mulf %96, %101 : vector<8x32xf32>
    %c24 = arith.constant 24 : index
    %c0_26 = arith.constant 0 : index
    %103 = vector.load %arg4[%c24, %c0_26] : memref<128x128xf32, #tpu.memory_space<vmem>>, vector<8x128xf32>
    %cst_27 = arith.constant dense<0.000000e+00> : vector<8x128xf32>
    %104 = tpu.matmul %82, %0, %cst_27 {dimension_numbers = #tpu.dot_dimension_numbers<[1], [0], [0], [1], [0, 0, 1, 1], [], []>} : vector<8x32xf32>, vector<32x128xf32>, vector<8x128xf32> -> vector<8x128xf32>
    %105 = arith.addf %103, %104 : vector<8x128xf32>
    %106 = arith.negf %105 : vector<8x128xf32>
    %107 = math.exp %106 : vector<8x128xf32>
    %cst_28 = arith.constant 1.000000e+00 : f32
    %108 = vector.broadcast %cst_28 : f32 to vector<8x128xf32>
    %109 = arith.addf %108, %107 : vector<8x128xf32>
    %110 = arith.divf %108, %109 : vector<8x128xf32>
    %111 = math.tanh %105 : vector<8x128xf32>
    %112 = vector.extract_strided_slice %110 {offsets = [0, 0], sizes = [8, 32], strides = [1, 1]} : vector<8x128xf32> to vector<8x32xf32>
    %113 = vector.extract_strided_slice %110 {offsets = [0, 32], sizes = [8, 32], strides = [1, 1]} : vector<8x128xf32> to vector<8x32xf32>
    %114 = vector.extract_strided_slice %110 {offsets = [0, 64], sizes = [8, 32], strides = [1, 1]} : vector<8x128xf32> to vector<8x32xf32>
    %115 = vector.extract_strided_slice %111 {offsets = [0, 96], sizes = [8, 32], strides = [1, 1]} : vector<8x128xf32> to vector<8x32xf32>
    %116 = arith.mulf %113, %80 : vector<8x32xf32>
    %117 = arith.mulf %112, %115 : vector<8x32xf32>
    %118 = arith.addf %116, %117 : vector<8x32xf32>
    %119 = math.tanh %118 : vector<8x32xf32>
    %120 = arith.mulf %114, %119 : vector<8x32xf32>
    %cst_29 = arith.constant dense<0.000000e+00> : vector<8x128xf32>
    %121 = tpu.matmul %82, %1, %cst_29 {dimension_numbers = #tpu.dot_dimension_numbers<[1], [0], [0], [1], [0, 0, 1, 1], [], []>} : vector<8x32xf32>, vector<32x128xf32>, vector<8x128xf32> -> vector<8x128xf32>
    %cst_30 = arith.constant dense<0.000000e+00> : vector<8x128xf32>
    %122 = tpu.matmul %102, %2, %cst_30 {dimension_numbers = #tpu.dot_dimension_numbers<[1], [0], [0], [1], [0, 0, 1, 1], [], []>} : vector<8x32xf32>, vector<32x128xf32>, vector<8x128xf32> -> vector<8x128xf32>
    %123 = arith.addf %121, %122 : vector<8x128xf32>
    %124 = vector.broadcast %3 : vector<1x128xf32> to vector<8x128xf32>
    %125 = arith.addf %123, %124 : vector<8x128xf32>
    %126 = arith.negf %125 : vector<8x128xf32>
    %127 = math.exp %126 : vector<8x128xf32>
    %cst_31 = arith.constant 1.000000e+00 : f32
    %128 = vector.broadcast %cst_31 : f32 to vector<8x128xf32>
    %129 = arith.addf %128, %127 : vector<8x128xf32>
    %130 = arith.divf %128, %129 : vector<8x128xf32>
    %131 = math.tanh %125 : vector<8x128xf32>
    %132 = vector.extract_strided_slice %130 {offsets = [0, 0], sizes = [8, 32], strides = [1, 1]} : vector<8x128xf32> to vector<8x32xf32>
    %133 = vector.extract_strided_slice %130 {offsets = [0, 32], sizes = [8, 32], strides = [1, 1]} : vector<8x128xf32> to vector<8x32xf32>
    %134 = vector.extract_strided_slice %130 {offsets = [0, 64], sizes = [8, 32], strides = [1, 1]} : vector<8x128xf32> to vector<8x32xf32>
    %135 = vector.extract_strided_slice %131 {offsets = [0, 96], sizes = [8, 32], strides = [1, 1]} : vector<8x128xf32> to vector<8x32xf32>
    %136 = arith.mulf %133, %100 : vector<8x32xf32>
    %137 = arith.mulf %132, %135 : vector<8x32xf32>
    %138 = arith.addf %136, %137 : vector<8x32xf32>
    %139 = math.tanh %138 : vector<8x32xf32>
    %140 = arith.mulf %134, %139 : vector<8x32xf32>
    %c32 = arith.constant 32 : index
    %c0_32 = arith.constant 0 : index
    %141 = vector.load %arg4[%c32, %c0_32] : memref<128x128xf32, #tpu.memory_space<vmem>>, vector<8x128xf32>
    %cst_33 = arith.constant dense<0.000000e+00> : vector<8x128xf32>
    %142 = tpu.matmul %120, %0, %cst_33 {dimension_numbers = #tpu.dot_dimension_numbers<[1], [0], [0], [1], [0, 0, 1, 1], [], []>} : vector<8x32xf32>, vector<32x128xf32>, vector<8x128xf32> -> vector<8x128xf32>
    %143 = arith.addf %141, %142 : vector<8x128xf32>
    %144 = arith.negf %143 : vector<8x128xf32>
    %145 = math.exp %144 : vector<8x128xf32>
    %cst_34 = arith.constant 1.000000e+00 : f32
    %146 = vector.broadcast %cst_34 : f32 to vector<8x128xf32>
    %147 = arith.addf %146, %145 : vector<8x128xf32>
    %148 = arith.divf %146, %147 : vector<8x128xf32>
    %149 = math.tanh %143 : vector<8x128xf32>
    %150 = vector.extract_strided_slice %148 {offsets = [0, 0], sizes = [8, 32], strides = [1, 1]} : vector<8x128xf32> to vector<8x32xf32>
    %151 = vector.extract_strided_slice %148 {offsets = [0, 32], sizes = [8, 32], strides = [1, 1]} : vector<8x128xf32> to vector<8x32xf32>
    %152 = vector.extract_strided_slice %148 {offsets = [0, 64], sizes = [8, 32], strides = [1, 1]} : vector<8x128xf32> to vector<8x32xf32>
    %153 = vector.extract_strided_slice %149 {offsets = [0, 96], sizes = [8, 32], strides = [1, 1]} : vector<8x128xf32> to vector<8x32xf32>
    %154 = arith.mulf %151, %118 : vector<8x32xf32>
    %155 = arith.mulf %150, %153 : vector<8x32xf32>
    %156 = arith.addf %154, %155 : vector<8x32xf32>
    %157 = math.tanh %156 : vector<8x32xf32>
    %158 = arith.mulf %152, %157 : vector<8x32xf32>
    %cst_35 = arith.constant dense<0.000000e+00> : vector<8x128xf32>
    %159 = tpu.matmul %120, %1, %cst_35 {dimension_numbers = #tpu.dot_dimension_numbers<[1], [0], [0], [1], [0, 0, 1, 1], [], []>} : vector<8x32xf32>, vector<32x128xf32>, vector<8x128xf32> -> vector<8x128xf32>
    %cst_36 = arith.constant dense<0.000000e+00> : vector<8x128xf32>
    %160 = tpu.matmul %140, %2, %cst_36 {dimension_numbers = #tpu.dot_dimension_numbers<[1], [0], [0], [1], [0, 0, 1, 1], [], []>} : vector<8x32xf32>, vector<32x128xf32>, vector<8x128xf32> -> vector<8x128xf32>
    %161 = arith.addf %159, %160 : vector<8x128xf32>
    %162 = vector.broadcast %3 : vector<1x128xf32> to vector<8x128xf32>
    %163 = arith.addf %161, %162 : vector<8x128xf32>
    %164 = arith.negf %163 : vector<8x128xf32>
    %165 = math.exp %164 : vector<8x128xf32>
    %cst_37 = arith.constant 1.000000e+00 : f32
    %166 = vector.broadcast %cst_37 : f32 to vector<8x128xf32>
    %167 = arith.addf %166, %165 : vector<8x128xf32>
    %168 = arith.divf %166, %167 : vector<8x128xf32>
    %169 = math.tanh %163 : vector<8x128xf32>
    %170 = vector.extract_strided_slice %168 {offsets = [0, 0], sizes = [8, 32], strides = [1, 1]} : vector<8x128xf32> to vector<8x32xf32>
    %171 = vector.extract_strided_slice %168 {offsets = [0, 32], sizes = [8, 32], strides = [1, 1]} : vector<8x128xf32> to vector<8x32xf32>
    %172 = vector.extract_strided_slice %168 {offsets = [0, 64], sizes = [8, 32], strides = [1, 1]} : vector<8x128xf32> to vector<8x32xf32>
    %173 = vector.extract_strided_slice %169 {offsets = [0, 96], sizes = [8, 32], strides = [1, 1]} : vector<8x128xf32> to vector<8x32xf32>
    %174 = arith.mulf %171, %138 : vector<8x32xf32>
    %175 = arith.mulf %170, %173 : vector<8x32xf32>
    %176 = arith.addf %174, %175 : vector<8x32xf32>
    %177 = math.tanh %176 : vector<8x32xf32>
    %178 = arith.mulf %172, %177 : vector<8x32xf32>
    %c40 = arith.constant 40 : index
    %c0_38 = arith.constant 0 : index
    %179 = vector.load %arg4[%c40, %c0_38] : memref<128x128xf32, #tpu.memory_space<vmem>>, vector<8x128xf32>
    %cst_39 = arith.constant dense<0.000000e+00> : vector<8x128xf32>
    %180 = tpu.matmul %158, %0, %cst_39 {dimension_numbers = #tpu.dot_dimension_numbers<[1], [0], [0], [1], [0, 0, 1, 1], [], []>} : vector<8x32xf32>, vector<32x128xf32>, vector<8x128xf32> -> vector<8x128xf32>
    %181 = arith.addf %179, %180 : vector<8x128xf32>
    %182 = arith.negf %181 : vector<8x128xf32>
    %183 = math.exp %182 : vector<8x128xf32>
    %cst_40 = arith.constant 1.000000e+00 : f32
    %184 = vector.broadcast %cst_40 : f32 to vector<8x128xf32>
    %185 = arith.addf %184, %183 : vector<8x128xf32>
    %186 = arith.divf %184, %185 : vector<8x128xf32>
    %187 = math.tanh %181 : vector<8x128xf32>
    %188 = vector.extract_strided_slice %186 {offsets = [0, 0], sizes = [8, 32], strides = [1, 1]} : vector<8x128xf32> to vector<8x32xf32>
    %189 = vector.extract_strided_slice %186 {offsets = [0, 32], sizes = [8, 32], strides = [1, 1]} : vector<8x128xf32> to vector<8x32xf32>
    %190 = vector.extract_strided_slice %186 {offsets = [0, 64], sizes = [8, 32], strides = [1, 1]} : vector<8x128xf32> to vector<8x32xf32>
    %191 = vector.extract_strided_slice %187 {offsets = [0, 96], sizes = [8, 32], strides = [1, 1]} : vector<8x128xf32> to vector<8x32xf32>
    %192 = arith.mulf %189, %156 : vector<8x32xf32>
    %193 = arith.mulf %188, %191 : vector<8x32xf32>
    %194 = arith.addf %192, %193 : vector<8x32xf32>
    %195 = math.tanh %194 : vector<8x32xf32>
    %196 = arith.mulf %190, %195 : vector<8x32xf32>
    %cst_41 = arith.constant dense<0.000000e+00> : vector<8x128xf32>
    %197 = tpu.matmul %158, %1, %cst_41 {dimension_numbers = #tpu.dot_dimension_numbers<[1], [0], [0], [1], [0, 0, 1, 1], [], []>} : vector<8x32xf32>, vector<32x128xf32>, vector<8x128xf32> -> vector<8x128xf32>
    %cst_42 = arith.constant dense<0.000000e+00> : vector<8x128xf32>
    %198 = tpu.matmul %178, %2, %cst_42 {dimension_numbers = #tpu.dot_dimension_numbers<[1], [0], [0], [1], [0, 0, 1, 1], [], []>} : vector<8x32xf32>, vector<32x128xf32>, vector<8x128xf32> -> vector<8x128xf32>
    %199 = arith.addf %197, %198 : vector<8x128xf32>
    %200 = vector.broadcast %3 : vector<1x128xf32> to vector<8x128xf32>
    %201 = arith.addf %199, %200 : vector<8x128xf32>
    %202 = arith.negf %201 : vector<8x128xf32>
    %203 = math.exp %202 : vector<8x128xf32>
    %cst_43 = arith.constant 1.000000e+00 : f32
    %204 = vector.broadcast %cst_43 : f32 to vector<8x128xf32>
    %205 = arith.addf %204, %203 : vector<8x128xf32>
    %206 = arith.divf %204, %205 : vector<8x128xf32>
    %207 = math.tanh %201 : vector<8x128xf32>
    %208 = vector.extract_strided_slice %206 {offsets = [0, 0], sizes = [8, 32], strides = [1, 1]} : vector<8x128xf32> to vector<8x32xf32>
    %209 = vector.extract_strided_slice %206 {offsets = [0, 32], sizes = [8, 32], strides = [1, 1]} : vector<8x128xf32> to vector<8x32xf32>
    %210 = vector.extract_strided_slice %206 {offsets = [0, 64], sizes = [8, 32], strides = [1, 1]} : vector<8x128xf32> to vector<8x32xf32>
    %211 = vector.extract_strided_slice %207 {offsets = [0, 96], sizes = [8, 32], strides = [1, 1]} : vector<8x128xf32> to vector<8x32xf32>
    %212 = arith.mulf %209, %176 : vector<8x32xf32>
    %213 = arith.mulf %208, %211 : vector<8x32xf32>
    %214 = arith.addf %212, %213 : vector<8x32xf32>
    %215 = math.tanh %214 : vector<8x32xf32>
    %216 = arith.mulf %210, %215 : vector<8x32xf32>
    %c48 = arith.constant 48 : index
    %c0_44 = arith.constant 0 : index
    %217 = vector.load %arg4[%c48, %c0_44] : memref<128x128xf32, #tpu.memory_space<vmem>>, vector<8x128xf32>
    %cst_45 = arith.constant dense<0.000000e+00> : vector<8x128xf32>
    %218 = tpu.matmul %196, %0, %cst_45 {dimension_numbers = #tpu.dot_dimension_numbers<[1], [0], [0], [1], [0, 0, 1, 1], [], []>} : vector<8x32xf32>, vector<32x128xf32>, vector<8x128xf32> -> vector<8x128xf32>
    %219 = arith.addf %217, %218 : vector<8x128xf32>
    %220 = arith.negf %219 : vector<8x128xf32>
    %221 = math.exp %220 : vector<8x128xf32>
    %cst_46 = arith.constant 1.000000e+00 : f32
    %222 = vector.broadcast %cst_46 : f32 to vector<8x128xf32>
    %223 = arith.addf %222, %221 : vector<8x128xf32>
    %224 = arith.divf %222, %223 : vector<8x128xf32>
    %225 = math.tanh %219 : vector<8x128xf32>
    %226 = vector.extract_strided_slice %224 {offsets = [0, 0], sizes = [8, 32], strides = [1, 1]} : vector<8x128xf32> to vector<8x32xf32>
    %227 = vector.extract_strided_slice %224 {offsets = [0, 32], sizes = [8, 32], strides = [1, 1]} : vector<8x128xf32> to vector<8x32xf32>
    %228 = vector.extract_strided_slice %224 {offsets = [0, 64], sizes = [8, 32], strides = [1, 1]} : vector<8x128xf32> to vector<8x32xf32>
    %229 = vector.extract_strided_slice %225 {offsets = [0, 96], sizes = [8, 32], strides = [1, 1]} : vector<8x128xf32> to vector<8x32xf32>
    %230 = arith.mulf %227, %194 : vector<8x32xf32>
    %231 = arith.mulf %226, %229 : vector<8x32xf32>
    %232 = arith.addf %230, %231 : vector<8x32xf32>
    %233 = math.tanh %232 : vector<8x32xf32>
    %234 = arith.mulf %228, %233 : vector<8x32xf32>
    %cst_47 = arith.constant dense<0.000000e+00> : vector<8x128xf32>
    %235 = tpu.matmul %196, %1, %cst_47 {dimension_numbers = #tpu.dot_dimension_numbers<[1], [0], [0], [1], [0, 0, 1, 1], [], []>} : vector<8x32xf32>, vector<32x128xf32>, vector<8x128xf32> -> vector<8x128xf32>
    %cst_48 = arith.constant dense<0.000000e+00> : vector<8x128xf32>
    %236 = tpu.matmul %216, %2, %cst_48 {dimension_numbers = #tpu.dot_dimension_numbers<[1], [0], [0], [1], [0, 0, 1, 1], [], []>} : vector<8x32xf32>, vector<32x128xf32>, vector<8x128xf32> -> vector<8x128xf32>
    %237 = arith.addf %235, %236 : vector<8x128xf32>
    %238 = vector.broadcast %3 : vector<1x128xf32> to vector<8x128xf32>
    %239 = arith.addf %237, %238 : vector<8x128xf32>
    %240 = arith.negf %239 : vector<8x128xf32>
    %241 = math.exp %240 : vector<8x128xf32>
    %cst_49 = arith.constant 1.000000e+00 : f32
    %242 = vector.broadcast %cst_49 : f32 to vector<8x128xf32>
    %243 = arith.addf %242, %241 : vector<8x128xf32>
    %244 = arith.divf %242, %243 : vector<8x128xf32>
    %245 = math.tanh %239 : vector<8x128xf32>
    %246 = vector.extract_strided_slice %244 {offsets = [0, 0], sizes = [8, 32], strides = [1, 1]} : vector<8x128xf32> to vector<8x32xf32>
    %247 = vector.extract_strided_slice %244 {offsets = [0, 32], sizes = [8, 32], strides = [1, 1]} : vector<8x128xf32> to vector<8x32xf32>
    %248 = vector.extract_strided_slice %244 {offsets = [0, 64], sizes = [8, 32], strides = [1, 1]} : vector<8x128xf32> to vector<8x32xf32>
    %249 = vector.extract_strided_slice %245 {offsets = [0, 96], sizes = [8, 32], strides = [1, 1]} : vector<8x128xf32> to vector<8x32xf32>
    %250 = arith.mulf %247, %214 : vector<8x32xf32>
    %251 = arith.mulf %246, %249 : vector<8x32xf32>
    %252 = arith.addf %250, %251 : vector<8x32xf32>
    %253 = math.tanh %252 : vector<8x32xf32>
    %254 = arith.mulf %248, %253 : vector<8x32xf32>
    %c56 = arith.constant 56 : index
    %c0_50 = arith.constant 0 : index
    %255 = vector.load %arg4[%c56, %c0_50] : memref<128x128xf32, #tpu.memory_space<vmem>>, vector<8x128xf32>
    %cst_51 = arith.constant dense<0.000000e+00> : vector<8x128xf32>
    %256 = tpu.matmul %234, %0, %cst_51 {dimension_numbers = #tpu.dot_dimension_numbers<[1], [0], [0], [1], [0, 0, 1, 1], [], []>} : vector<8x32xf32>, vector<32x128xf32>, vector<8x128xf32> -> vector<8x128xf32>
    %257 = arith.addf %255, %256 : vector<8x128xf32>
    %258 = arith.negf %257 : vector<8x128xf32>
    %259 = math.exp %258 : vector<8x128xf32>
    %cst_52 = arith.constant 1.000000e+00 : f32
    %260 = vector.broadcast %cst_52 : f32 to vector<8x128xf32>
    %261 = arith.addf %260, %259 : vector<8x128xf32>
    %262 = arith.divf %260, %261 : vector<8x128xf32>
    %263 = math.tanh %257 : vector<8x128xf32>
    %264 = vector.extract_strided_slice %262 {offsets = [0, 0], sizes = [8, 32], strides = [1, 1]} : vector<8x128xf32> to vector<8x32xf32>
    %265 = vector.extract_strided_slice %262 {offsets = [0, 32], sizes = [8, 32], strides = [1, 1]} : vector<8x128xf32> to vector<8x32xf32>
    %266 = vector.extract_strided_slice %262 {offsets = [0, 64], sizes = [8, 32], strides = [1, 1]} : vector<8x128xf32> to vector<8x32xf32>
    %267 = vector.extract_strided_slice %263 {offsets = [0, 96], sizes = [8, 32], strides = [1, 1]} : vector<8x128xf32> to vector<8x32xf32>
    %268 = arith.mulf %265, %232 : vector<8x32xf32>
    %269 = arith.mulf %264, %267 : vector<8x32xf32>
    %270 = arith.addf %268, %269 : vector<8x32xf32>
    %271 = math.tanh %270 : vector<8x32xf32>
    %272 = arith.mulf %266, %271 : vector<8x32xf32>
    %cst_53 = arith.constant dense<0.000000e+00> : vector<8x128xf32>
    %273 = tpu.matmul %234, %1, %cst_53 {dimension_numbers = #tpu.dot_dimension_numbers<[1], [0], [0], [1], [0, 0, 1, 1], [], []>} : vector<8x32xf32>, vector<32x128xf32>, vector<8x128xf32> -> vector<8x128xf32>
    %cst_54 = arith.constant dense<0.000000e+00> : vector<8x128xf32>
    %274 = tpu.matmul %254, %2, %cst_54 {dimension_numbers = #tpu.dot_dimension_numbers<[1], [0], [0], [1], [0, 0, 1, 1], [], []>} : vector<8x32xf32>, vector<32x128xf32>, vector<8x128xf32> -> vector<8x128xf32>
    %275 = arith.addf %273, %274 : vector<8x128xf32>
    %276 = vector.broadcast %3 : vector<1x128xf32> to vector<8x128xf32>
    %277 = arith.addf %275, %276 : vector<8x128xf32>
    %278 = arith.negf %277 : vector<8x128xf32>
    %279 = math.exp %278 : vector<8x128xf32>
    %cst_55 = arith.constant 1.000000e+00 : f32
    %280 = vector.broadcast %cst_55 : f32 to vector<8x128xf32>
    %281 = arith.addf %280, %279 : vector<8x128xf32>
    %282 = arith.divf %280, %281 : vector<8x128xf32>
    %283 = math.tanh %277 : vector<8x128xf32>
    %284 = vector.extract_strided_slice %282 {offsets = [0, 0], sizes = [8, 32], strides = [1, 1]} : vector<8x128xf32> to vector<8x32xf32>
    %285 = vector.extract_strided_slice %282 {offsets = [0, 32], sizes = [8, 32], strides = [1, 1]} : vector<8x128xf32> to vector<8x32xf32>
    %286 = vector.extract_strided_slice %282 {offsets = [0, 64], sizes = [8, 32], strides = [1, 1]} : vector<8x128xf32> to vector<8x32xf32>
    %287 = vector.extract_strided_slice %283 {offsets = [0, 96], sizes = [8, 32], strides = [1, 1]} : vector<8x128xf32> to vector<8x32xf32>
    %288 = arith.mulf %285, %252 : vector<8x32xf32>
    %289 = arith.mulf %284, %287 : vector<8x32xf32>
    %290 = arith.addf %288, %289 : vector<8x32xf32>
    %291 = math.tanh %290 : vector<8x32xf32>
    %292 = arith.mulf %286, %291 : vector<8x32xf32>
    %c64 = arith.constant 64 : index
    %c0_56 = arith.constant 0 : index
    %293 = vector.load %arg4[%c64, %c0_56] : memref<128x128xf32, #tpu.memory_space<vmem>>, vector<8x128xf32>
    %cst_57 = arith.constant dense<0.000000e+00> : vector<8x128xf32>
    %294 = tpu.matmul %272, %0, %cst_57 {dimension_numbers = #tpu.dot_dimension_numbers<[1], [0], [0], [1], [0, 0, 1, 1], [], []>} : vector<8x32xf32>, vector<32x128xf32>, vector<8x128xf32> -> vector<8x128xf32>
    %295 = arith.addf %293, %294 : vector<8x128xf32>
    %296 = arith.negf %295 : vector<8x128xf32>
    %297 = math.exp %296 : vector<8x128xf32>
    %cst_58 = arith.constant 1.000000e+00 : f32
    %298 = vector.broadcast %cst_58 : f32 to vector<8x128xf32>
    %299 = arith.addf %298, %297 : vector<8x128xf32>
    %300 = arith.divf %298, %299 : vector<8x128xf32>
    %301 = math.tanh %295 : vector<8x128xf32>
    %302 = vector.extract_strided_slice %300 {offsets = [0, 0], sizes = [8, 32], strides = [1, 1]} : vector<8x128xf32> to vector<8x32xf32>
    %303 = vector.extract_strided_slice %300 {offsets = [0, 32], sizes = [8, 32], strides = [1, 1]} : vector<8x128xf32> to vector<8x32xf32>
    %304 = vector.extract_strided_slice %300 {offsets = [0, 64], sizes = [8, 32], strides = [1, 1]} : vector<8x128xf32> to vector<8x32xf32>
    %305 = vector.extract_strided_slice %301 {offsets = [0, 96], sizes = [8, 32], strides = [1, 1]} : vector<8x128xf32> to vector<8x32xf32>
    %306 = arith.mulf %303, %270 : vector<8x32xf32>
    %307 = arith.mulf %302, %305 : vector<8x32xf32>
    %308 = arith.addf %306, %307 : vector<8x32xf32>
    %309 = math.tanh %308 : vector<8x32xf32>
    %310 = arith.mulf %304, %309 : vector<8x32xf32>
    %cst_59 = arith.constant dense<0.000000e+00> : vector<8x128xf32>
    %311 = tpu.matmul %272, %1, %cst_59 {dimension_numbers = #tpu.dot_dimension_numbers<[1], [0], [0], [1], [0, 0, 1, 1], [], []>} : vector<8x32xf32>, vector<32x128xf32>, vector<8x128xf32> -> vector<8x128xf32>
    %cst_60 = arith.constant dense<0.000000e+00> : vector<8x128xf32>
    %312 = tpu.matmul %292, %2, %cst_60 {dimension_numbers = #tpu.dot_dimension_numbers<[1], [0], [0], [1], [0, 0, 1, 1], [], []>} : vector<8x32xf32>, vector<32x128xf32>, vector<8x128xf32> -> vector<8x128xf32>
    %313 = arith.addf %311, %312 : vector<8x128xf32>
    %314 = vector.broadcast %3 : vector<1x128xf32> to vector<8x128xf32>
    %315 = arith.addf %313, %314 : vector<8x128xf32>
    %316 = arith.negf %315 : vector<8x128xf32>
    %317 = math.exp %316 : vector<8x128xf32>
    %cst_61 = arith.constant 1.000000e+00 : f32
    %318 = vector.broadcast %cst_61 : f32 to vector<8x128xf32>
    %319 = arith.addf %318, %317 : vector<8x128xf32>
    %320 = arith.divf %318, %319 : vector<8x128xf32>
    %321 = math.tanh %315 : vector<8x128xf32>
    %322 = vector.extract_strided_slice %320 {offsets = [0, 0], sizes = [8, 32], strides = [1, 1]} : vector<8x128xf32> to vector<8x32xf32>
    %323 = vector.extract_strided_slice %320 {offsets = [0, 32], sizes = [8, 32], strides = [1, 1]} : vector<8x128xf32> to vector<8x32xf32>
    %324 = vector.extract_strided_slice %320 {offsets = [0, 64], sizes = [8, 32], strides = [1, 1]} : vector<8x128xf32> to vector<8x32xf32>
    %325 = vector.extract_strided_slice %321 {offsets = [0, 96], sizes = [8, 32], strides = [1, 1]} : vector<8x128xf32> to vector<8x32xf32>
    %326 = arith.mulf %323, %290 : vector<8x32xf32>
    %327 = arith.mulf %322, %325 : vector<8x32xf32>
    %328 = arith.addf %326, %327 : vector<8x32xf32>
    %329 = math.tanh %328 : vector<8x32xf32>
    %330 = arith.mulf %324, %329 : vector<8x32xf32>
    %c72 = arith.constant 72 : index
    %c0_62 = arith.constant 0 : index
    %331 = vector.load %arg4[%c72, %c0_62] : memref<128x128xf32, #tpu.memory_space<vmem>>, vector<8x128xf32>
    %cst_63 = arith.constant dense<0.000000e+00> : vector<8x128xf32>
    %332 = tpu.matmul %310, %0, %cst_63 {dimension_numbers = #tpu.dot_dimension_numbers<[1], [0], [0], [1], [0, 0, 1, 1], [], []>} : vector<8x32xf32>, vector<32x128xf32>, vector<8x128xf32> -> vector<8x128xf32>
    %333 = arith.addf %331, %332 : vector<8x128xf32>
    %334 = arith.negf %333 : vector<8x128xf32>
    %335 = math.exp %334 : vector<8x128xf32>
    %cst_64 = arith.constant 1.000000e+00 : f32
    %336 = vector.broadcast %cst_64 : f32 to vector<8x128xf32>
    %337 = arith.addf %336, %335 : vector<8x128xf32>
    %338 = arith.divf %336, %337 : vector<8x128xf32>
    %339 = math.tanh %333 : vector<8x128xf32>
    %340 = vector.extract_strided_slice %338 {offsets = [0, 0], sizes = [8, 32], strides = [1, 1]} : vector<8x128xf32> to vector<8x32xf32>
    %341 = vector.extract_strided_slice %338 {offsets = [0, 32], sizes = [8, 32], strides = [1, 1]} : vector<8x128xf32> to vector<8x32xf32>
    %342 = vector.extract_strided_slice %338 {offsets = [0, 64], sizes = [8, 32], strides = [1, 1]} : vector<8x128xf32> to vector<8x32xf32>
    %343 = vector.extract_strided_slice %339 {offsets = [0, 96], sizes = [8, 32], strides = [1, 1]} : vector<8x128xf32> to vector<8x32xf32>
    %344 = arith.mulf %341, %308 : vector<8x32xf32>
    %345 = arith.mulf %340, %343 : vector<8x32xf32>
    %346 = arith.addf %344, %345 : vector<8x32xf32>
    %347 = math.tanh %346 : vector<8x32xf32>
    %348 = arith.mulf %342, %347 : vector<8x32xf32>
    %cst_65 = arith.constant dense<0.000000e+00> : vector<8x128xf32>
    %349 = tpu.matmul %310, %1, %cst_65 {dimension_numbers = #tpu.dot_dimension_numbers<[1], [0], [0], [1], [0, 0, 1, 1], [], []>} : vector<8x32xf32>, vector<32x128xf32>, vector<8x128xf32> -> vector<8x128xf32>
    %cst_66 = arith.constant dense<0.000000e+00> : vector<8x128xf32>
    %350 = tpu.matmul %330, %2, %cst_66 {dimension_numbers = #tpu.dot_dimension_numbers<[1], [0], [0], [1], [0, 0, 1, 1], [], []>} : vector<8x32xf32>, vector<32x128xf32>, vector<8x128xf32> -> vector<8x128xf32>
    %351 = arith.addf %349, %350 : vector<8x128xf32>
    %352 = vector.broadcast %3 : vector<1x128xf32> to vector<8x128xf32>
    %353 = arith.addf %351, %352 : vector<8x128xf32>
    %354 = arith.negf %353 : vector<8x128xf32>
    %355 = math.exp %354 : vector<8x128xf32>
    %cst_67 = arith.constant 1.000000e+00 : f32
    %356 = vector.broadcast %cst_67 : f32 to vector<8x128xf32>
    %357 = arith.addf %356, %355 : vector<8x128xf32>
    %358 = arith.divf %356, %357 : vector<8x128xf32>
    %359 = math.tanh %353 : vector<8x128xf32>
    %360 = vector.extract_strided_slice %358 {offsets = [0, 0], sizes = [8, 32], strides = [1, 1]} : vector<8x128xf32> to vector<8x32xf32>
    %361 = vector.extract_strided_slice %358 {offsets = [0, 32], sizes = [8, 32], strides = [1, 1]} : vector<8x128xf32> to vector<8x32xf32>
    %362 = vector.extract_strided_slice %358 {offsets = [0, 64], sizes = [8, 32], strides = [1, 1]} : vector<8x128xf32> to vector<8x32xf32>
    %363 = vector.extract_strided_slice %359 {offsets = [0, 96], sizes = [8, 32], strides = [1, 1]} : vector<8x128xf32> to vector<8x32xf32>
    %364 = arith.mulf %361, %328 : vector<8x32xf32>
    %365 = arith.mulf %360, %363 : vector<8x32xf32>
    %366 = arith.addf %364, %365 : vector<8x32xf32>
    %367 = math.tanh %366 : vector<8x32xf32>
    %368 = arith.mulf %362, %367 : vector<8x32xf32>
    %c80 = arith.constant 80 : index
    %c0_68 = arith.constant 0 : index
    %369 = vector.load %arg4[%c80, %c0_68] : memref<128x128xf32, #tpu.memory_space<vmem>>, vector<8x128xf32>
    %cst_69 = arith.constant dense<0.000000e+00> : vector<8x128xf32>
    %370 = tpu.matmul %348, %0, %cst_69 {dimension_numbers = #tpu.dot_dimension_numbers<[1], [0], [0], [1], [0, 0, 1, 1], [], []>} : vector<8x32xf32>, vector<32x128xf32>, vector<8x128xf32> -> vector<8x128xf32>
    %371 = arith.addf %369, %370 : vector<8x128xf32>
    %372 = arith.negf %371 : vector<8x128xf32>
    %373 = math.exp %372 : vector<8x128xf32>
    %cst_70 = arith.constant 1.000000e+00 : f32
    %374 = vector.broadcast %cst_70 : f32 to vector<8x128xf32>
    %375 = arith.addf %374, %373 : vector<8x128xf32>
    %376 = arith.divf %374, %375 : vector<8x128xf32>
    %377 = math.tanh %371 : vector<8x128xf32>
    %378 = vector.extract_strided_slice %376 {offsets = [0, 0], sizes = [8, 32], strides = [1, 1]} : vector<8x128xf32> to vector<8x32xf32>
    %379 = vector.extract_strided_slice %376 {offsets = [0, 32], sizes = [8, 32], strides = [1, 1]} : vector<8x128xf32> to vector<8x32xf32>
    %380 = vector.extract_strided_slice %376 {offsets = [0, 64], sizes = [8, 32], strides = [1, 1]} : vector<8x128xf32> to vector<8x32xf32>
    %381 = vector.extract_strided_slice %377 {offsets = [0, 96], sizes = [8, 32], strides = [1, 1]} : vector<8x128xf32> to vector<8x32xf32>
    %382 = arith.mulf %379, %346 : vector<8x32xf32>
    %383 = arith.mulf %378, %381 : vector<8x32xf32>
    %384 = arith.addf %382, %383 : vector<8x32xf32>
    %385 = math.tanh %384 : vector<8x32xf32>
    %386 = arith.mulf %380, %385 : vector<8x32xf32>
    %cst_71 = arith.constant dense<0.000000e+00> : vector<8x128xf32>
    %387 = tpu.matmul %348, %1, %cst_71 {dimension_numbers = #tpu.dot_dimension_numbers<[1], [0], [0], [1], [0, 0, 1, 1], [], []>} : vector<8x32xf32>, vector<32x128xf32>, vector<8x128xf32> -> vector<8x128xf32>
    %cst_72 = arith.constant dense<0.000000e+00> : vector<8x128xf32>
    %388 = tpu.matmul %368, %2, %cst_72 {dimension_numbers = #tpu.dot_dimension_numbers<[1], [0], [0], [1], [0, 0, 1, 1], [], []>} : vector<8x32xf32>, vector<32x128xf32>, vector<8x128xf32> -> vector<8x128xf32>
    %389 = arith.addf %387, %388 : vector<8x128xf32>
    %390 = vector.broadcast %3 : vector<1x128xf32> to vector<8x128xf32>
    %391 = arith.addf %389, %390 : vector<8x128xf32>
    %392 = arith.negf %391 : vector<8x128xf32>
    %393 = math.exp %392 : vector<8x128xf32>
    %cst_73 = arith.constant 1.000000e+00 : f32
    %394 = vector.broadcast %cst_73 : f32 to vector<8x128xf32>
    %395 = arith.addf %394, %393 : vector<8x128xf32>
    %396 = arith.divf %394, %395 : vector<8x128xf32>
    %397 = math.tanh %391 : vector<8x128xf32>
    %398 = vector.extract_strided_slice %396 {offsets = [0, 0], sizes = [8, 32], strides = [1, 1]} : vector<8x128xf32> to vector<8x32xf32>
    %399 = vector.extract_strided_slice %396 {offsets = [0, 32], sizes = [8, 32], strides = [1, 1]} : vector<8x128xf32> to vector<8x32xf32>
    %400 = vector.extract_strided_slice %396 {offsets = [0, 64], sizes = [8, 32], strides = [1, 1]} : vector<8x128xf32> to vector<8x32xf32>
    %401 = vector.extract_strided_slice %397 {offsets = [0, 96], sizes = [8, 32], strides = [1, 1]} : vector<8x128xf32> to vector<8x32xf32>
    %402 = arith.mulf %399, %366 : vector<8x32xf32>
    %403 = arith.mulf %398, %401 : vector<8x32xf32>
    %404 = arith.addf %402, %403 : vector<8x32xf32>
    %405 = math.tanh %404 : vector<8x32xf32>
    %406 = arith.mulf %400, %405 : vector<8x32xf32>
    %c88 = arith.constant 88 : index
    %c0_74 = arith.constant 0 : index
    %407 = vector.load %arg4[%c88, %c0_74] : memref<128x128xf32, #tpu.memory_space<vmem>>, vector<8x128xf32>
    %cst_75 = arith.constant dense<0.000000e+00> : vector<8x128xf32>
    %408 = tpu.matmul %386, %0, %cst_75 {dimension_numbers = #tpu.dot_dimension_numbers<[1], [0], [0], [1], [0, 0, 1, 1], [], []>} : vector<8x32xf32>, vector<32x128xf32>, vector<8x128xf32> -> vector<8x128xf32>
    %409 = arith.addf %407, %408 : vector<8x128xf32>
    %410 = arith.negf %409 : vector<8x128xf32>
    %411 = math.exp %410 : vector<8x128xf32>
    %cst_76 = arith.constant 1.000000e+00 : f32
    %412 = vector.broadcast %cst_76 : f32 to vector<8x128xf32>
    %413 = arith.addf %412, %411 : vector<8x128xf32>
    %414 = arith.divf %412, %413 : vector<8x128xf32>
    %415 = math.tanh %409 : vector<8x128xf32>
    %416 = vector.extract_strided_slice %414 {offsets = [0, 0], sizes = [8, 32], strides = [1, 1]} : vector<8x128xf32> to vector<8x32xf32>
    %417 = vector.extract_strided_slice %414 {offsets = [0, 32], sizes = [8, 32], strides = [1, 1]} : vector<8x128xf32> to vector<8x32xf32>
    %418 = vector.extract_strided_slice %414 {offsets = [0, 64], sizes = [8, 32], strides = [1, 1]} : vector<8x128xf32> to vector<8x32xf32>
    %419 = vector.extract_strided_slice %415 {offsets = [0, 96], sizes = [8, 32], strides = [1, 1]} : vector<8x128xf32> to vector<8x32xf32>
    %420 = arith.mulf %417, %384 : vector<8x32xf32>
    %421 = arith.mulf %416, %419 : vector<8x32xf32>
    %422 = arith.addf %420, %421 : vector<8x32xf32>
    %423 = math.tanh %422 : vector<8x32xf32>
    %424 = arith.mulf %418, %423 : vector<8x32xf32>
    %cst_77 = arith.constant dense<0.000000e+00> : vector<8x128xf32>
    %425 = tpu.matmul %386, %1, %cst_77 {dimension_numbers = #tpu.dot_dimension_numbers<[1], [0], [0], [1], [0, 0, 1, 1], [], []>} : vector<8x32xf32>, vector<32x128xf32>, vector<8x128xf32> -> vector<8x128xf32>
    %cst_78 = arith.constant dense<0.000000e+00> : vector<8x128xf32>
    %426 = tpu.matmul %406, %2, %cst_78 {dimension_numbers = #tpu.dot_dimension_numbers<[1], [0], [0], [1], [0, 0, 1, 1], [], []>} : vector<8x32xf32>, vector<32x128xf32>, vector<8x128xf32> -> vector<8x128xf32>
    %427 = arith.addf %425, %426 : vector<8x128xf32>
    %428 = vector.broadcast %3 : vector<1x128xf32> to vector<8x128xf32>
    %429 = arith.addf %427, %428 : vector<8x128xf32>
    %430 = arith.negf %429 : vector<8x128xf32>
    %431 = math.exp %430 : vector<8x128xf32>
    %cst_79 = arith.constant 1.000000e+00 : f32
    %432 = vector.broadcast %cst_79 : f32 to vector<8x128xf32>
    %433 = arith.addf %432, %431 : vector<8x128xf32>
    %434 = arith.divf %432, %433 : vector<8x128xf32>
    %435 = math.tanh %429 : vector<8x128xf32>
    %436 = vector.extract_strided_slice %434 {offsets = [0, 0], sizes = [8, 32], strides = [1, 1]} : vector<8x128xf32> to vector<8x32xf32>
    %437 = vector.extract_strided_slice %434 {offsets = [0, 32], sizes = [8, 32], strides = [1, 1]} : vector<8x128xf32> to vector<8x32xf32>
    %438 = vector.extract_strided_slice %434 {offsets = [0, 64], sizes = [8, 32], strides = [1, 1]} : vector<8x128xf32> to vector<8x32xf32>
    %439 = vector.extract_strided_slice %435 {offsets = [0, 96], sizes = [8, 32], strides = [1, 1]} : vector<8x128xf32> to vector<8x32xf32>
    %440 = arith.mulf %437, %404 : vector<8x32xf32>
    %441 = arith.mulf %436, %439 : vector<8x32xf32>
    %442 = arith.addf %440, %441 : vector<8x32xf32>
    %443 = math.tanh %442 : vector<8x32xf32>
    %444 = arith.mulf %438, %443 : vector<8x32xf32>
    %c96 = arith.constant 96 : index
    %c0_80 = arith.constant 0 : index
    %445 = vector.load %arg4[%c96, %c0_80] : memref<128x128xf32, #tpu.memory_space<vmem>>, vector<8x128xf32>
    %cst_81 = arith.constant dense<0.000000e+00> : vector<8x128xf32>
    %446 = tpu.matmul %424, %0, %cst_81 {dimension_numbers = #tpu.dot_dimension_numbers<[1], [0], [0], [1], [0, 0, 1, 1], [], []>} : vector<8x32xf32>, vector<32x128xf32>, vector<8x128xf32> -> vector<8x128xf32>
    %447 = arith.addf %445, %446 : vector<8x128xf32>
    %448 = arith.negf %447 : vector<8x128xf32>
    %449 = math.exp %448 : vector<8x128xf32>
    %cst_82 = arith.constant 1.000000e+00 : f32
    %450 = vector.broadcast %cst_82 : f32 to vector<8x128xf32>
    %451 = arith.addf %450, %449 : vector<8x128xf32>
    %452 = arith.divf %450, %451 : vector<8x128xf32>
    %453 = math.tanh %447 : vector<8x128xf32>
    %454 = vector.extract_strided_slice %452 {offsets = [0, 0], sizes = [8, 32], strides = [1, 1]} : vector<8x128xf32> to vector<8x32xf32>
    %455 = vector.extract_strided_slice %452 {offsets = [0, 32], sizes = [8, 32], strides = [1, 1]} : vector<8x128xf32> to vector<8x32xf32>
    %456 = vector.extract_strided_slice %452 {offsets = [0, 64], sizes = [8, 32], strides = [1, 1]} : vector<8x128xf32> to vector<8x32xf32>
    %457 = vector.extract_strided_slice %453 {offsets = [0, 96], sizes = [8, 32], strides = [1, 1]} : vector<8x128xf32> to vector<8x32xf32>
    %458 = arith.mulf %455, %422 : vector<8x32xf32>
    %459 = arith.mulf %454, %457 : vector<8x32xf32>
    %460 = arith.addf %458, %459 : vector<8x32xf32>
    %461 = math.tanh %460 : vector<8x32xf32>
    %462 = arith.mulf %456, %461 : vector<8x32xf32>
    %cst_83 = arith.constant dense<0.000000e+00> : vector<8x128xf32>
    %463 = tpu.matmul %424, %1, %cst_83 {dimension_numbers = #tpu.dot_dimension_numbers<[1], [0], [0], [1], [0, 0, 1, 1], [], []>} : vector<8x32xf32>, vector<32x128xf32>, vector<8x128xf32> -> vector<8x128xf32>
    %cst_84 = arith.constant dense<0.000000e+00> : vector<8x128xf32>
    %464 = tpu.matmul %444, %2, %cst_84 {dimension_numbers = #tpu.dot_dimension_numbers<[1], [0], [0], [1], [0, 0, 1, 1], [], []>} : vector<8x32xf32>, vector<32x128xf32>, vector<8x128xf32> -> vector<8x128xf32>
    %465 = arith.addf %463, %464 : vector<8x128xf32>
    %466 = vector.broadcast %3 : vector<1x128xf32> to vector<8x128xf32>
    %467 = arith.addf %465, %466 : vector<8x128xf32>
    %468 = arith.negf %467 : vector<8x128xf32>
    %469 = math.exp %468 : vector<8x128xf32>
    %cst_85 = arith.constant 1.000000e+00 : f32
    %470 = vector.broadcast %cst_85 : f32 to vector<8x128xf32>
    %471 = arith.addf %470, %469 : vector<8x128xf32>
    %472 = arith.divf %470, %471 : vector<8x128xf32>
    %473 = math.tanh %467 : vector<8x128xf32>
    %474 = vector.extract_strided_slice %472 {offsets = [0, 0], sizes = [8, 32], strides = [1, 1]} : vector<8x128xf32> to vector<8x32xf32>
    %475 = vector.extract_strided_slice %472 {offsets = [0, 32], sizes = [8, 32], strides = [1, 1]} : vector<8x128xf32> to vector<8x32xf32>
    %476 = vector.extract_strided_slice %472 {offsets = [0, 64], sizes = [8, 32], strides = [1, 1]} : vector<8x128xf32> to vector<8x32xf32>
    %477 = vector.extract_strided_slice %473 {offsets = [0, 96], sizes = [8, 32], strides = [1, 1]} : vector<8x128xf32> to vector<8x32xf32>
    %478 = arith.mulf %475, %442 : vector<8x32xf32>
    %479 = arith.mulf %474, %477 : vector<8x32xf32>
    %480 = arith.addf %478, %479 : vector<8x32xf32>
    %481 = math.tanh %480 : vector<8x32xf32>
    %482 = arith.mulf %476, %481 : vector<8x32xf32>
    %c104 = arith.constant 104 : index
    %c0_86 = arith.constant 0 : index
    %483 = vector.load %arg4[%c104, %c0_86] : memref<128x128xf32, #tpu.memory_space<vmem>>, vector<8x128xf32>
    %cst_87 = arith.constant dense<0.000000e+00> : vector<8x128xf32>
    %484 = tpu.matmul %462, %0, %cst_87 {dimension_numbers = #tpu.dot_dimension_numbers<[1], [0], [0], [1], [0, 0, 1, 1], [], []>} : vector<8x32xf32>, vector<32x128xf32>, vector<8x128xf32> -> vector<8x128xf32>
    %485 = arith.addf %483, %484 : vector<8x128xf32>
    %486 = arith.negf %485 : vector<8x128xf32>
    %487 = math.exp %486 : vector<8x128xf32>
    %cst_88 = arith.constant 1.000000e+00 : f32
    %488 = vector.broadcast %cst_88 : f32 to vector<8x128xf32>
    %489 = arith.addf %488, %487 : vector<8x128xf32>
    %490 = arith.divf %488, %489 : vector<8x128xf32>
    %491 = math.tanh %485 : vector<8x128xf32>
    %492 = vector.extract_strided_slice %490 {offsets = [0, 0], sizes = [8, 32], strides = [1, 1]} : vector<8x128xf32> to vector<8x32xf32>
    %493 = vector.extract_strided_slice %490 {offsets = [0, 32], sizes = [8, 32], strides = [1, 1]} : vector<8x128xf32> to vector<8x32xf32>
    %494 = vector.extract_strided_slice %490 {offsets = [0, 64], sizes = [8, 32], strides = [1, 1]} : vector<8x128xf32> to vector<8x32xf32>
    %495 = vector.extract_strided_slice %491 {offsets = [0, 96], sizes = [8, 32], strides = [1, 1]} : vector<8x128xf32> to vector<8x32xf32>
    %496 = arith.mulf %493, %460 : vector<8x32xf32>
    %497 = arith.mulf %492, %495 : vector<8x32xf32>
    %498 = arith.addf %496, %497 : vector<8x32xf32>
    %499 = math.tanh %498 : vector<8x32xf32>
    %500 = arith.mulf %494, %499 : vector<8x32xf32>
    %cst_89 = arith.constant dense<0.000000e+00> : vector<8x128xf32>
    %501 = tpu.matmul %462, %1, %cst_89 {dimension_numbers = #tpu.dot_dimension_numbers<[1], [0], [0], [1], [0, 0, 1, 1], [], []>} : vector<8x32xf32>, vector<32x128xf32>, vector<8x128xf32> -> vector<8x128xf32>
    %cst_90 = arith.constant dense<0.000000e+00> : vector<8x128xf32>
    %502 = tpu.matmul %482, %2, %cst_90 {dimension_numbers = #tpu.dot_dimension_numbers<[1], [0], [0], [1], [0, 0, 1, 1], [], []>} : vector<8x32xf32>, vector<32x128xf32>, vector<8x128xf32> -> vector<8x128xf32>
    %503 = arith.addf %501, %502 : vector<8x128xf32>
    %504 = vector.broadcast %3 : vector<1x128xf32> to vector<8x128xf32>
    %505 = arith.addf %503, %504 : vector<8x128xf32>
    %506 = arith.negf %505 : vector<8x128xf32>
    %507 = math.exp %506 : vector<8x128xf32>
    %cst_91 = arith.constant 1.000000e+00 : f32
    %508 = vector.broadcast %cst_91 : f32 to vector<8x128xf32>
    %509 = arith.addf %508, %507 : vector<8x128xf32>
    %510 = arith.divf %508, %509 : vector<8x128xf32>
    %511 = math.tanh %505 : vector<8x128xf32>
    %512 = vector.extract_strided_slice %510 {offsets = [0, 0], sizes = [8, 32], strides = [1, 1]} : vector<8x128xf32> to vector<8x32xf32>
    %513 = vector.extract_strided_slice %510 {offsets = [0, 32], sizes = [8, 32], strides = [1, 1]} : vector<8x128xf32> to vector<8x32xf32>
    %514 = vector.extract_strided_slice %510 {offsets = [0, 64], sizes = [8, 32], strides = [1, 1]} : vector<8x128xf32> to vector<8x32xf32>
    %515 = vector.extract_strided_slice %511 {offsets = [0, 96], sizes = [8, 32], strides = [1, 1]} : vector<8x128xf32> to vector<8x32xf32>
    %516 = arith.mulf %513, %480 : vector<8x32xf32>
    %517 = arith.mulf %512, %515 : vector<8x32xf32>
    %518 = arith.addf %516, %517 : vector<8x32xf32>
    %519 = math.tanh %518 : vector<8x32xf32>
    %520 = arith.mulf %514, %519 : vector<8x32xf32>
    %c112 = arith.constant 112 : index
    %c0_92 = arith.constant 0 : index
    %521 = vector.load %arg4[%c112, %c0_92] : memref<128x128xf32, #tpu.memory_space<vmem>>, vector<8x128xf32>
    %cst_93 = arith.constant dense<0.000000e+00> : vector<8x128xf32>
    %522 = tpu.matmul %500, %0, %cst_93 {dimension_numbers = #tpu.dot_dimension_numbers<[1], [0], [0], [1], [0, 0, 1, 1], [], []>} : vector<8x32xf32>, vector<32x128xf32>, vector<8x128xf32> -> vector<8x128xf32>
    %523 = arith.addf %521, %522 : vector<8x128xf32>
    %524 = arith.negf %523 : vector<8x128xf32>
    %525 = math.exp %524 : vector<8x128xf32>
    %cst_94 = arith.constant 1.000000e+00 : f32
    %526 = vector.broadcast %cst_94 : f32 to vector<8x128xf32>
    %527 = arith.addf %526, %525 : vector<8x128xf32>
    %528 = arith.divf %526, %527 : vector<8x128xf32>
    %529 = math.tanh %523 : vector<8x128xf32>
    %530 = vector.extract_strided_slice %528 {offsets = [0, 0], sizes = [8, 32], strides = [1, 1]} : vector<8x128xf32> to vector<8x32xf32>
    %531 = vector.extract_strided_slice %528 {offsets = [0, 32], sizes = [8, 32], strides = [1, 1]} : vector<8x128xf32> to vector<8x32xf32>
    %532 = vector.extract_strided_slice %528 {offsets = [0, 64], sizes = [8, 32], strides = [1, 1]} : vector<8x128xf32> to vector<8x32xf32>
    %533 = vector.extract_strided_slice %529 {offsets = [0, 96], sizes = [8, 32], strides = [1, 1]} : vector<8x128xf32> to vector<8x32xf32>
    %534 = arith.mulf %531, %498 : vector<8x32xf32>
    %535 = arith.mulf %530, %533 : vector<8x32xf32>
    %536 = arith.addf %534, %535 : vector<8x32xf32>
    %537 = math.tanh %536 : vector<8x32xf32>
    %538 = arith.mulf %532, %537 : vector<8x32xf32>
    %cst_95 = arith.constant dense<0.000000e+00> : vector<8x128xf32>
    %539 = tpu.matmul %500, %1, %cst_95 {dimension_numbers = #tpu.dot_dimension_numbers<[1], [0], [0], [1], [0, 0, 1, 1], [], []>} : vector<8x32xf32>, vector<32x128xf32>, vector<8x128xf32> -> vector<8x128xf32>
    %cst_96 = arith.constant dense<0.000000e+00> : vector<8x128xf32>
    %540 = tpu.matmul %520, %2, %cst_96 {dimension_numbers = #tpu.dot_dimension_numbers<[1], [0], [0], [1], [0, 0, 1, 1], [], []>} : vector<8x32xf32>, vector<32x128xf32>, vector<8x128xf32> -> vector<8x128xf32>
    %541 = arith.addf %539, %540 : vector<8x128xf32>
    %542 = vector.broadcast %3 : vector<1x128xf32> to vector<8x128xf32>
    %543 = arith.addf %541, %542 : vector<8x128xf32>
    %544 = arith.negf %543 : vector<8x128xf32>
    %545 = math.exp %544 : vector<8x128xf32>
    %cst_97 = arith.constant 1.000000e+00 : f32
    %546 = vector.broadcast %cst_97 : f32 to vector<8x128xf32>
    %547 = arith.addf %546, %545 : vector<8x128xf32>
    %548 = arith.divf %546, %547 : vector<8x128xf32>
    %549 = math.tanh %543 : vector<8x128xf32>
    %550 = vector.extract_strided_slice %548 {offsets = [0, 0], sizes = [8, 32], strides = [1, 1]} : vector<8x128xf32> to vector<8x32xf32>
    %551 = vector.extract_strided_slice %548 {offsets = [0, 32], sizes = [8, 32], strides = [1, 1]} : vector<8x128xf32> to vector<8x32xf32>
    %552 = vector.extract_strided_slice %548 {offsets = [0, 64], sizes = [8, 32], strides = [1, 1]} : vector<8x128xf32> to vector<8x32xf32>
    %553 = vector.extract_strided_slice %549 {offsets = [0, 96], sizes = [8, 32], strides = [1, 1]} : vector<8x128xf32> to vector<8x32xf32>
    %554 = arith.mulf %551, %518 : vector<8x32xf32>
    %555 = arith.mulf %550, %553 : vector<8x32xf32>
    %556 = arith.addf %554, %555 : vector<8x32xf32>
    %557 = math.tanh %556 : vector<8x32xf32>
    %558 = arith.mulf %552, %557 : vector<8x32xf32>
    %c120 = arith.constant 120 : index
    %c0_98 = arith.constant 0 : index
    %559 = vector.load %arg4[%c120, %c0_98] : memref<128x128xf32, #tpu.memory_space<vmem>>, vector<8x128xf32>
    %cst_99 = arith.constant dense<0.000000e+00> : vector<8x128xf32>
    %560 = tpu.matmul %538, %0, %cst_99 {dimension_numbers = #tpu.dot_dimension_numbers<[1], [0], [0], [1], [0, 0, 1, 1], [], []>} : vector<8x32xf32>, vector<32x128xf32>, vector<8x128xf32> -> vector<8x128xf32>
    %561 = arith.addf %559, %560 : vector<8x128xf32>
    %562 = arith.negf %561 : vector<8x128xf32>
    %563 = math.exp %562 : vector<8x128xf32>
    %cst_100 = arith.constant 1.000000e+00 : f32
    %564 = vector.broadcast %cst_100 : f32 to vector<8x128xf32>
    %565 = arith.addf %564, %563 : vector<8x128xf32>
    %566 = arith.divf %564, %565 : vector<8x128xf32>
    %567 = math.tanh %561 : vector<8x128xf32>
    %568 = vector.extract_strided_slice %566 {offsets = [0, 0], sizes = [8, 32], strides = [1, 1]} : vector<8x128xf32> to vector<8x32xf32>
    %569 = vector.extract_strided_slice %566 {offsets = [0, 32], sizes = [8, 32], strides = [1, 1]} : vector<8x128xf32> to vector<8x32xf32>
    %570 = vector.extract_strided_slice %566 {offsets = [0, 64], sizes = [8, 32], strides = [1, 1]} : vector<8x128xf32> to vector<8x32xf32>
    %571 = vector.extract_strided_slice %567 {offsets = [0, 96], sizes = [8, 32], strides = [1, 1]} : vector<8x128xf32> to vector<8x32xf32>
    %572 = arith.mulf %569, %536 : vector<8x32xf32>
    %573 = arith.mulf %568, %571 : vector<8x32xf32>
    %574 = arith.addf %572, %573 : vector<8x32xf32>
    %575 = math.tanh %574 : vector<8x32xf32>
    %576 = arith.mulf %570, %575 : vector<8x32xf32>
    %cst_101 = arith.constant dense<0.000000e+00> : vector<8x128xf32>
    %577 = tpu.matmul %538, %1, %cst_101 {dimension_numbers = #tpu.dot_dimension_numbers<[1], [0], [0], [1], [0, 0, 1, 1], [], []>} : vector<8x32xf32>, vector<32x128xf32>, vector<8x128xf32> -> vector<8x128xf32>
    %cst_102 = arith.constant dense<0.000000e+00> : vector<8x128xf32>
    %578 = tpu.matmul %558, %2, %cst_102 {dimension_numbers = #tpu.dot_dimension_numbers<[1], [0], [0], [1], [0, 0, 1, 1], [], []>} : vector<8x32xf32>, vector<32x128xf32>, vector<8x128xf32> -> vector<8x128xf32>
    %579 = arith.addf %577, %578 : vector<8x128xf32>
    %580 = vector.broadcast %3 : vector<1x128xf32> to vector<8x128xf32>
    %581 = arith.addf %579, %580 : vector<8x128xf32>
    %582 = arith.negf %581 : vector<8x128xf32>
    %583 = math.exp %582 : vector<8x128xf32>
    %cst_103 = arith.constant 1.000000e+00 : f32
    %584 = vector.broadcast %cst_103 : f32 to vector<8x128xf32>
    %585 = arith.addf %584, %583 : vector<8x128xf32>
    %586 = arith.divf %584, %585 : vector<8x128xf32>
    %587 = math.tanh %581 : vector<8x128xf32>
    %588 = vector.extract_strided_slice %586 {offsets = [0, 0], sizes = [8, 32], strides = [1, 1]} : vector<8x128xf32> to vector<8x32xf32>
    %589 = vector.extract_strided_slice %586 {offsets = [0, 32], sizes = [8, 32], strides = [1, 1]} : vector<8x128xf32> to vector<8x32xf32>
    %590 = vector.extract_strided_slice %586 {offsets = [0, 64], sizes = [8, 32], strides = [1, 1]} : vector<8x128xf32> to vector<8x32xf32>
    %591 = vector.extract_strided_slice %587 {offsets = [0, 96], sizes = [8, 32], strides = [1, 1]} : vector<8x128xf32> to vector<8x32xf32>
    %592 = arith.mulf %589, %556 : vector<8x32xf32>
    %593 = arith.mulf %588, %591 : vector<8x32xf32>
    %594 = arith.addf %592, %593 : vector<8x32xf32>
    %595 = math.tanh %594 : vector<8x32xf32>
    %596 = arith.mulf %590, %595 : vector<8x32xf32>
    %cst_104 = arith.constant dense<0.000000e+00> : vector<8x128xf32>
    %597 = tpu.matmul %576, %1, %cst_104 {dimension_numbers = #tpu.dot_dimension_numbers<[1], [0], [0], [1], [0, 0, 1, 1], [], []>} : vector<8x32xf32>, vector<32x128xf32>, vector<8x128xf32> -> vector<8x128xf32>
    %cst_105 = arith.constant dense<0.000000e+00> : vector<8x128xf32>
    %598 = tpu.matmul %596, %2, %cst_105 {dimension_numbers = #tpu.dot_dimension_numbers<[1], [0], [0], [1], [0, 0, 1, 1], [], []>} : vector<8x32xf32>, vector<32x128xf32>, vector<8x128xf32> -> vector<8x128xf32>
    %599 = arith.addf %597, %598 : vector<8x128xf32>
    %600 = vector.broadcast %3 : vector<1x128xf32> to vector<8x128xf32>
    %601 = arith.addf %599, %600 : vector<8x128xf32>
    %602 = arith.negf %601 : vector<8x128xf32>
    %603 = math.exp %602 : vector<8x128xf32>
    %cst_106 = arith.constant 1.000000e+00 : f32
    %604 = vector.broadcast %cst_106 : f32 to vector<8x128xf32>
    %605 = arith.addf %604, %603 : vector<8x128xf32>
    %606 = arith.divf %604, %605 : vector<8x128xf32>
    %607 = math.tanh %601 : vector<8x128xf32>
    %608 = vector.extract_strided_slice %606 {offsets = [0, 0], sizes = [8, 32], strides = [1, 1]} : vector<8x128xf32> to vector<8x32xf32>
    %609 = vector.extract_strided_slice %606 {offsets = [0, 32], sizes = [8, 32], strides = [1, 1]} : vector<8x128xf32> to vector<8x32xf32>
    %610 = vector.extract_strided_slice %606 {offsets = [0, 64], sizes = [8, 32], strides = [1, 1]} : vector<8x128xf32> to vector<8x32xf32>
    %611 = vector.extract_strided_slice %607 {offsets = [0, 96], sizes = [8, 32], strides = [1, 1]} : vector<8x128xf32> to vector<8x32xf32>
    %612 = arith.mulf %609, %594 : vector<8x32xf32>
    %613 = arith.mulf %608, %611 : vector<8x32xf32>
    %614 = arith.addf %612, %613 : vector<8x32xf32>
    %615 = math.tanh %614 : vector<8x32xf32>
    %616 = arith.mulf %610, %615 : vector<8x32xf32>
    %c232 = arith.constant 232 : index
    %c0_107 = arith.constant 0 : index
    %617 = vector.load %arg2[%c232, %c0_107] : memref<272x128xf32, #tpu.memory_space<vmem>>, vector<32x128xf32>
    %c264 = arith.constant 264 : index
    %c0_108 = arith.constant 0 : index
    %618 = vector.load %arg2[%c264, %c0_108] : memref<272x128xf32, #tpu.memory_space<vmem>>, vector<1x128xf32>
    %cst_109 = arith.constant dense<0.000000e+00> : vector<8x128xf32>
    %619 = tpu.matmul %616, %617, %cst_109 {dimension_numbers = #tpu.dot_dimension_numbers<[1], [0], [0], [1], [0, 0, 1, 1], [], []>} : vector<8x32xf32>, vector<32x128xf32>, vector<8x128xf32> -> vector<8x128xf32>
    %620 = vector.broadcast %618 : vector<1x128xf32> to vector<8x128xf32>
    %621 = arith.addf %619, %620 : vector<8x128xf32>
    %c0_110 = arith.constant 0 : index
    %c0_111 = arith.constant 0 : index
    %622 = vector.load %arg3[%c0_110, %c0_111] : memref<8x128xf32, #tpu.memory_space<vmem>>, vector<8x128xf32>
    tpu.vector_store %arg3[%c0_110, %c0_111], %621 {strides = array<i32>} : memref<8x128xf32, #tpu.memory_space<vmem>>, vector<8x128xf32>,
    return
  }
  func.func @transform_0(%arg0: i32) -> (i32, i32) {
    %c0_i32 = arith.constant 0 : i32
    %c0_i32_0 = arith.constant 0 : i32
    %c0_i32_1 = arith.constant 0 : i32
    return %c0_i32, %c0_i32_0 : i32, i32
  }
  func.func @transform_1(%arg0: i32) -> (i32, i32) {
    %c0_i32 = arith.constant 0 : i32
    %c0_i32_0 = arith.constant 0 : i32
    %c0_i32_1 = arith.constant 0 : i32
    return %c0_i32, %c0_i32_0 : i32, i32
  }
  func.func @transform_2(%arg0: i32) -> (i32, i32) {
    %c0_i32 = arith.constant 0 : i32
    %c0_i32_0 = arith.constant 0 : i32
    %c0_i32_1 = arith.constant 0 : i32
    return %c0_i32, %c0_i32_0 : i32, i32
  }
}

</mosaic_0001>

<bundles_post_ra>
// kernel: cnn_lstm_forward.1
= control target key start
LH: loop header
LB: loop body
LE: loop exit
PB: predicated region body
PF: predicated region fallthrough
CT: control target
= control target key end

     0   :  { %v6187_v3 = vmov 0.0|0.0   ;;  %vm6188_vm0 = vmmov 0   ;;  %v6189_v4 = vmov 0.0   ;;  %s6190_s25 = smov 32   ;;  %s6191_s26 = smov 64   ;;  %vm218_vm1 = vcmask 261120   ;;  %s7021_s1 = inlined_call_operand.vmem [shape: f32[272,128], index: 1, kind: input, shape index: {}]   ;;  %s7022_s0 = inlined_call_operand.vmem [shape: f32[128,128], index: 0, kind: input, shape index: {}]   ;;  %s7023_s2 = inlined_call_operand.vmem [shape: f32[8,128], index: 2, kind: output, shape index: {}]  }
   0x1   :  { %v40_v0 = vld [vmem:[%s7021_s1] sm:$0xff]  ;;  %v41_v1 = vld [vmem:[%s7021_s1 + $0x8] sm:$0xff]  ;;  %v42_v2 = vld [vmem:[%s7021_s1 + $0x10] sm:$0xff]  ;;  %5630 = vmatprep.subr.bf16.mxu1 %v6187_v3  ;;  %5067 = vmatprep.mubr.msk.f32.mxu1 %vm6188_vm0, %v6189_v4 }
   0x2   :  { %v5598_v5 = vpack.c.bf16 %v41_v1, %v40_v0  ;;  %v43_v6 = vld [vmem:[%s7021_s1 + $0x18] sm:$0xff]  ;;  %v44_v8 = vld [vmem:[%s7021_s1 + $0x20] sm:$0xff]  ;;  %v45_v9 = vld [vmem:[%s7021_s1 + $0x28] sm:$0xff] }
   0x3   :  { %v5602_v7 = vpack.c.bf16 %v43_v6, %v42_v2  ;;  %v11_v10 = vld [vmem:[%s7021_s1 + $0x80] sm:$0xff]  ;;  %v5606_v11 = vpack.c.bf16 %v45_v9, %v44_v8  ;;  %v46_v12 = vld [vmem:[%s7021_s1 + $0x30] sm:$0xff]  ;;  %v47_v13 = vld [vmem:[%s7021_s1 + $0x38] sm:$0xff] }
   0x4   :  { %5599 = vmatprep.subr.bf16.mxu0 %v5598_v5  ;;  %v12_v14 = vld [vmem:[%s7021_s1 + $0x88] sm:$0xff]  ;;  %v13_v16 = vld [vmem:[%s7021_s1 + $0x90] sm:$0xff]  ;;  %v14_v17 = vld [vmem:[%s7021_s1 + $0x98] sm:$0xff]  ;;  %v5610_v20 = vpack.c.bf16 %v47_v13, %v46_v12 }
   0x5   :  { %5601 = vmatpush3.bf16.msra.mxu0 %v5598_v5  ;;  %v6240_v15 = vpack.c.bf16 %v12_v14, %v11_v10  ;;  %v24_v18 = vld [vmem:[%s7022_s0] sm:$0xff]  ;;  %v6252_v19 = vpack.c.bf16 %v14_v17, %v13_v16  ;;  %v49_v22 = vld [vmem:[%s7021_s1 + $0x48] sm:$0xff]  ;;  %v50_v24 = vld [vmem:[%s7021_s1 + $0x50] sm:$0xff] }
   0x6   :  { %5603 = vmatprep.subr.bf16.mxu0 %v5602_v7  ;;  %5035 = vmatprep.mubr.f32.mxu0 %v24_v18  ;;  %v48_v21 = vld [vmem:[%s7021_s1 + $0x40] sm:$0xff]  ;;  %v51_v25 = vld [vmem:[%s7021_s1 + $0x58] sm:$0xff]  ;;  %v53_v28 = vld [vmem:[%s7021_s1 + $0x68] sm:$0xff] }
   0x7   :  { %5632 = vmatpush3.bf16.msra.mxu1 %v6240_v15  ;;  %v5614_v23 = vpack.c.bf16 %v49_v22, %v48_v21  ;;  %v5618_v26 = vpack.c.bf16 %v51_v25, %v50_v24  ;;  %v52_v27 = vld [vmem:[%s7021_s1 + $0x60] sm:$0xff]  ;;  %v54_v30 = vld [vmem:[%s7021_s1 + $0x70] sm:$0xff]  ;;  %v55_v31 = vld [vmem:[%s7021_s1 + $0x78] sm:$0xff] }
   0x8   :  { %5633 = vmatprep.subr.bf16.mxu1 %v6187_v3  ;;  %v5622_v29 = vpack.c.bf16 %v53_v28, %v52_v27  ;;  %v5626_v32 = vpack.c.bf16 %v55_v31, %v54_v30  ;;  %v25_v33 = vld [vmem:[%s7022_s0 + $0x8] sm:$0xff]  ;;  %v19_v52 = vld [vmem:[%s7021_s1 + $0xc0] sm:$0xff]  ;;  %v21_v55 = vld [vmem:[%s7021_s1 + $0xd0] sm:$0xff] }
   0x9   :  { %5605 = vmatpush3.bf16.msra.mxu0 %v5602_v7  ;;  %v20_v53 = vld [vmem:[%s7021_s1 + $0xc8] sm:$0xff]  ;;  %v22_v56 = vld [vmem:[%s7021_s1 + $0xd8] sm:$0xff]  ;;  %v15_v59 = vld [vmem:[%s7021_s1 + $0xa0] sm:$0xff] }
   0xa   :  { %5607 = vmatprep.subr.bf16.mxu0 %v5606_v11  ;;  %v6309_v54 = vpack.c.bf16 %v20_v53, %v19_v52  ;;  %v6319_v58 = vpack.c.bf16 %v22_v56, %v21_v55  ;;  %v16_v60 = vld [vmem:[%s7021_s1 + $0xa8] sm:$0xff]  ;;  %v17_v62 = vld [vmem:[%s7021_s1 + $0xb0] sm:$0xff]  ;;  %v18_v63 = vld [vmem:[%s7021_s1 + $0xb8] sm:$0xff] }
   0xb   :  { %5635 = vmatpush3.bf16.msra.mxu1 %v6252_v19  ;;  %v6331_v61 = vpack.c.bf16 %v16_v60, %v15_v59  ;;  %v6342_v0 = vpack.c.bf16 %v18_v63, %v17_v62  ;;  %v6360_v9 = vld [vmem:[%s7021_s1 + $0xe0] ss:$0 sm:$0xff] }
   0xc   :  { %5636 = vmatprep.subr.bf16.mxu1 %v6187_v3 }
   0xd   :  { %5609 = vmatpush3.bf16.msra.mxu0 %v5606_v11 }
   0xe   :  { %5611 = vmatprep.subr.bf16.mxu0 %v5610_v20  ;;  %5068 = vmatmul.mubr.f32.vlgmr.msra.gmra.mrb[0].mxu1 %v6189_v4 }
   0xf   :  { %5638 = vmatpush3.bf16.msra.mxu1 %v6240_v15  ;;  %5078 = vmatprep.mubr.msk.f32.mxu1 %vm6188_vm0, %v6189_v4 }
  0x10   :  { %5639 = vmatprep.subr.bf16.mxu1 %v6187_v3 }
  0x11   :  { %5613 = vmatpush3.bf16.msra.mxu0 %v5610_v20 }
  0x12   :  { %5615 = vmatprep.subr.bf16.mxu0 %v5614_v23 }
  0x13   :  { %5641 = vmatpush3.bf16.msra.mxu1 %v6252_v19 }
  0x14   :  { %5642 = vmatprep.subr.bf16.mxu1 %v6187_v3 }
  0x15   :  { %5617 = vmatpush3.bf16.msra.mxu0 %v5614_v23 }
  0x16   :  { %5619 = vmatprep.subr.bf16.mxu0 %v5618_v26 }
  0x19   :  { %5621 = vmatpush3.bf16.msra.mxu0 %v5618_v26 }
  0x1a   :  { %5623 = vmatprep.subr.bf16.mxu0 %v5622_v29 }
  0x1d   :  { %5625 = vmatpush3.bf16.msra.mxu0 %v5622_v29 }
  0x1e   :  { %5627 = vmatprep.subr.bf16.mxu0 %v5626_v32 }
  0x21   :  { %5629 = vmatpush3.bf16.msra.mxu0 %v5626_v32 }
  0x22   :  { %5672 = vmatprep.subr.bf16.mxu0 %v6187_v3 }
  0x24   :  { %5036 = vmatmul.mubr.f32.vlgmr.msra.gmra.mrb[0].mxu0 %v25_v33 }
  0x25   :  { %5674 = vmatpush3.bf16.msra.mxu0 %v6240_v15 }
  0x26   :  { %5675 = vmatprep.subr.bf16.mxu0 %v6187_v3 }
  0x29   :  { %5677 = vmatpush3.bf16.msra.mxu0 %v6252_v19 }
  0x2a   :  { %5684 = vmatprep.subr.bf16.mxu0 %v6187_v3 }
  0xe1   :  { %v288_v34 = vpop.f32.mrb[0].mxu1 }
  0xe2   :  { %v5069_v35 = vpop.f32.mrb[1].mxu1 }
  0xf7   :  { %v5037_v36 = vpop.f32.mrb[0].mxu0 }
  0xf8   :  { %v122_v37 = vpop.f32.mrb[1].mxu0 }
  0xf9   :  { %v292_v38 = vadd.f32 %v288_v34, %v122_v37  ;;  %v27_v37 = vld [vmem:[%s7022_s0 + $0x18] sm:$0xff] }
  0xfb   :  { %5929 = vtanh.f32 %v292_v38  ;;  %v4645_v40 = vmul.f32 -1.442695, %v292_v38 }
  0xfd   :  { %5931 = vpow2.f32 %v4645_v40 }
 0x105   :  { %v5930_v39 = vpop.eup %5929 }
 0x106   :  { %302 = vrot.lane.b32.xlu0 %v5930_v39, %s6190_s25 }
 0x107   :  { %v5932_v41 = vpop.eup %5931 }
 0x108   :  { %v296_v42 = vadd.f32 1.0, %v5932_v41 }
 0x10a   :  { %5933 = vrcp.f32 %v296_v42 }
 0x114   :  { %v5934_v43 = vpop.eup %5933 }
 0x115   :  { %v300_v46 = vmul.f32 0.0, %v5934_v43 }
 0x178   :  { %v303_v44 = vpop.permute.xlu0 %302 }
 0x179   :  { %v305_v45 = vmul.f32 %v5934_v43, %v303_v44 }
 0x17b   :  { %307 = vrot.lane.b32.xlu0 %v305_v45, %s6190_s25 }
 0x1ed   :  { %v308_v47 = vpop.permute.xlu0 %307 }
 0x1ee   :  { %v6298_v48 = vadd.f32 %v308_v47, %v300_v46 }
 0x1f0   :  { %5935 = vtanh.f32 %v6298_v48 }
 0x1fa   :  { %v5936_v49 = vpop.eup %5935 }
 0x1fb   :  { %313 = vrot.lane.b32.xlu1 %v5936_v49, %s6190_s25 }
 0x26d   :  { %v314_v50 = vpop.permute.xlu1 %313 }
 0x26e   :  { %v316_v51 = vmul.f32 %v5934_v43, %v314_v50 }
 0x270   :  { %319 = vrot.lane.b32.xlu1 %v316_v51, %s6191_s26 }
 0x2e2   :  { %v320_v57 = vpop.permute.xlu1 %319 }
 0x2e3   :  { %5079 = vmatmul.mubr.msk.f32.vlgmr.msra.gmra.mrb[2].mxu1 %vm218_vm1, %v320_v57 }
 0x2e4   :  { %5644 = vmatpush3.bf16.msra.mxu1 %v6309_v54  ;;  %5089 = vmatprep.mubr.msk.f32.mxu1 %vm6188_vm0, %v6189_v4 }
 0x2e5   :  { %5645 = vmatprep.subr.bf16.mxu1 %v6187_v3 }
 0x2e8   :  { %5647 = vmatpush3.bf16.msra.mxu1 %v6319_v58 }
 0x2e9   :  { %5648 = vmatprep.subr.bf16.mxu1 %v6187_v3 }
 0x2eb   :  { %5090 = vmatmul.mubr.f32.vlgmr.msra.gmra.mrb[4].mxu1 %v6189_v4 }
 0x2ec   :  { %5650 = vmatpush3.bf16.msra.mxu1 %v6331_v61  ;;  %5100 = vmatprep.mubr.msk.f32.mxu1 %vm6188_vm0, %v6189_v4 }
 0x2ed   :  { %5651 = vmatprep.subr.bf16.mxu1 %v6187_v3 }
 0x2f0   :  { %5653 = vmatpush3.bf16.msra.mxu1 %v6342_v0 }
 0x2f1   :  { %5654 = vmatprep.subr.bf16.mxu1 %v6187_v3 }
 0x2f3   :  { %5101 = vmatmul.mubr.msk.f32.vlgmr.msra.gmra.mrb[6].mxu1 %vm218_vm1, %v320_v57 }
 0x2f4   :  { %5656 = vmatpush3.bf16.msra.mxu1 %v6240_v15  ;;  %5111 = vmatprep.mubr.msk.f32.mxu1 %vm6188_vm0, %v6189_v4 }
 0x2f5   :  { %5657 = vmatprep.subr.bf16.mxu1 %v6187_v3 }
 0x2f8   :  { %5659 = vmatpush3.bf16.msra.mxu1 %v6252_v19 }
 0x2f9   :  { %5660 = vmatprep.subr.bf16.mxu1 %v6187_v3 }
 0x3b6   :  { %v389_v1 = vpop.f32.mrb[2].mxu1 }
 0x3b7   :  { %v393_v2 = vadd.f32 %v5037_v36, %v389_v1  ;;  %v5080_v5 = vpop.f32.mrb[3].mxu1  ;;  %v26_v36 = vld [vmem:[%s7022_s0 + $0x10] sm:$0xff] }
 0x3b8   :  { %5038 = vmatprep.mubr.f32.mxu0 %v26_v36 }
 0x3b9   :  { %5937 = vtanh.f32 %v393_v2  ;;  %v4647_v16 = vmul.f32 -1.442695, %v393_v2  ;;  %5039 = vmatmul.mubr.f32.gmra.mrb[2].mxu0 %v27_v37 }
 0x3be   :  { %v484_v6 = vpop.f32.mrb[4].mxu1 }
 0x3bf   :  { %v5091_v7 = vpop.f32.mrb[5].mxu1 }
 0x3c3   :  { %v5938_v8 = vpop.eup %5937 }
 0x3c4   :  { %403 = vrot.lane.b32.xlu0 %v5938_v8, %s6190_s25 }
 0x3c6   :  { %v554_v10 = vpop.f32.mrb[6].mxu1 }
 0x3c7   :  { %v555_v11 = vadd.f32 %v554_v10, %v484_v6  ;;  %v5102_v12 = vpop.f32.mrb[7].mxu1 }
 0x3c9   :  { %v562_v13 = vadd.f32 %v6360_v9, %v555_v11 }
 0x3cb   :  { %5939 = vtanh.f32 %v562_v13  ;;  %v4650_v20 = vmul.f32 -1.442695, %v562_v13 }
 0x3cc   :  { %5941 = vpow2.f32 %v4647_v16 }
 0x3d5   :  { %v5940_v14 = vpop.eup %5939 }
 0x3d6   :  { %572 = vrot.lane.b32.xlu1 %v5940_v14, %s6190_s25  ;;  %v5942_v17 = vpop.eup %5941 }
 0x3d7   :  { %v397_v18 = vadd.f32 1.0, %v5942_v17 }
 0x3d9   :  { %5943 = vrcp.f32 %v397_v18 }
 0x3da   :  { %5945 = vpow2.f32 %v4650_v20 }
 0x3e3   :  { %v5944_v21 = vpop.eup %5943 }
 0x3e4   :  { %v5946_v23 = vpop.eup %5945  ;;  %v401_v29 = vmul.f32 %v5944_v21, %v6298_v48 }
 0x3e5   :  { %v566_v25 = vadd.f32 1.0, %v5946_v23  ;;  %v29_v23 = vld [vmem:[%s7022_s0 + $0x28] sm:$0xff] }
 0x3e7   :  { %5947 = vrcp.f32 %v566_v25  ;;  %v31_v25 = vld [vmem:[%s7022_s0 + $0x38] sm:$0xff] }
 0x3f1   :  { %v5948_v26 = vpop.eup %5947 }
 0x3f2   :  { %v570_v33 = vmul.f32 0.0, %v5948_v26 }
 0x436   :  { %v404_v22 = vpop.permute.xlu0 %403 }
 0x437   :  { %v406_v24 = vmul.f32 %v5944_v21, %v404_v22  ;;  %v28_v22 = vld [vmem:[%s7022_s0 + $0x20] sm:$0xff] }
 0x438   :  { %5041 = vmatprep.mubr.f32.mxu0 %v28_v22 }
 0x439   :  { %408 = vrot.lane.b32.xlu0 %v406_v24, %s6190_s25  ;;  %v30_v24 = vld [vmem:[%s7022_s0 + $0x30] sm:$0xff]  ;;  %5042 = vmatmul.mubr.f32.gmra.mrb[4].mxu0 %v29_v23 }
 0x43a   :  { %5044 = vmatprep.mubr.f32.mxu0 %v30_v24 }
 0x43d   :  { %5045 = vmatmul.mubr.f32.gmra.mrb[6].mxu0 %v31_v25 }
 0x448   :  { %v573_v27 = vpop.permute.xlu1 %572 }
 0x449   :  { %v575_v28 = vmul.f32 %v5948_v26, %v573_v27  ;;  %v33_v27 = vld [vmem:[%s7022_s0 + $0x48] sm:$0xff] }
 0x44b   :  { %577 = vrot.lane.b32.xlu1 %v575_v28, %s6190_s25  ;;  %v34_v28 = vld [vmem:[%s7022_s0 + $0x50] sm:$0xff] }
 0x48c   :  { %v6383_v43 = vpop.f32.mrb[2].mxu0 }
 0x48d   :  { %v132_v44 = vpop.f32.mrb[3].mxu0 }
 0x4ab   :  { %v409_v30 = vpop.permute.xlu0 %408 }
 0x4ac   :  { %v6367_v31 = vadd.f32 %v409_v30, %v401_v29  ;;  %v35_v30 = vld [vmem:[%s7022_s0 + $0x58] sm:$0xff] }
 0x4ae   :  { %5949 = vtanh.f32 %v6367_v31 }
 0x4b8   :  { %v5950_v32 = vpop.eup %5949 }
 0x4b9   :  { %414 = vrot.lane.b32.xlu0 %v5950_v32, %s6190_s25  ;;  %v37_v32 = vld [vmem:[%s7022_s0 + $0x68] sm:$0xff] }
 0x4bd   :  { %v578_v34 = vpop.permute.xlu1 %577 }
 0x4be   :  { %v6371_v35 = vadd.f32 %v578_v34, %v570_v33  ;;  %v38_v33 = vld [vmem:[%s7022_s0 + $0x70] sm:$0xff]  ;;  %v39_v34 = vld [vmem:[%s7022_s0 + $0x78] sm:$0xff] }
 0x4c0   :  { %5951 = vtanh.f32 %v6371_v35 }
 0x4ca   :  { %v5952_v38 = vpop.eup %5951 }
 0x4cb   :  { %583 = vrot.lane.b32.xlu1 %v5952_v38, %s6190_s25 }
 0x52b   :  { %v415_v39 = vpop.permute.xlu0 %414 }
 0x52c   :  { %v417_v40 = vmul.f32 %v5944_v21, %v415_v39  ;;  %v6461_v39 = vpop.f32.mrb[4].mxu0 }
 0x52e   :  { %589 = vrot.lane.b32.xlu0 %v417_v40, %s6191_s26 }
 0x53d   :  { %v584_v41 = vpop.permute.xlu1 %583 }
 0x53e   :  { %v586_v42 = vmul.f32 %v5948_v26, %v584_v41  ;;  %v32_v26 = vld [vmem:[%s7022_s0 + $0x40] sm:$0xff]  ;;  %v6463_v41 = vpop.f32.mrb[5].mxu0 }
 0x53f   :  { %5047 = vmatprep.mubr.f32.mxu0 %v32_v26 }
 0x540   :  { %689 = vrot.lane.b32.xlu1 %v586_v42, %s6191_s26  ;;  %5048 = vmatmul.mubr.f32.gmra.mrb[8].mxu0 %v33_v27  ;;  %v6470_v42 = vpop.f32.mrb[6].mxu0 }
 0x541   :  { %5050 = vmatprep.mubr.f32.mxu0 %v34_v28 }
 0x544   :  { %5051 = vmatmul.mubr.f32.gmra.mrb[10].mxu0 %v35_v30 }
 0x5a0   :  { %v590_v45 = vpop.permute.xlu0 %589 }
 0x5a1   :  { %5112 = vmatmul.mubr.msk.f32.vlgmr.msra.gmra.mrb[8].mxu1 %vm218_vm1, %v590_v45 }
 0x5a2   :  { %5662 = vmatpush3.bf16.msra.mxu1 %v6309_v54  ;;  %5122 = vmatprep.mubr.msk.f32.mxu1 %vm6188_vm0, %v6189_v4 }
 0x5a3   :  { %5663 = vmatprep.subr.bf16.mxu1 %v6187_v3 }
 0x5a6   :  { %5665 = vmatpush3.bf16.msra.mxu1 %v6319_v58 }
 0x5a7   :  { %5666 = vmatprep.subr.bf16.mxu1 %v6187_v3 }
 0x5b2   :  { %v690_v46 = vpop.permute.xlu1 %689 }
 0x5b3   :  { %5123 = vmatmul.mubr.msk.f32.vlgmr.msra.gmra.mrb[10].mxu1 %vm218_vm1, %v690_v46 }
 0x5b4   :  { %5668 = vmatpush3.bf16.msra.mxu1 %v6331_v61  ;;  %5133 = vmatprep.mubr.msk.f32.mxu1 %vm6188_vm0, %v6189_v4 }
 0x5b5   :  { %5669 = vmatprep.subr.bf16.mxu1 %v6187_v3 }
 0x5b8   :  { %5671 = vmatpush3.bf16.msra.mxu1 %v6342_v0 }
 0x5b9   :  { %5678 = vmatprep.subr.bf16.mxu1 %v6187_v3 }
 0x5bb   :  { %5134 = vmatmul.mubr.msk.f32.vlgmr.msra.gmra.mrb[12].mxu1 %vm218_vm1, %v590_v45 }
 0x5bc   :  { %5680 = vmatpush3.bf16.msra.mxu1 %v6309_v54  ;;  %5155 = vmatprep.mubr.msk.f32.mxu1 %vm6188_vm0, %v6189_v4 }
 0x5bd   :  { %5681 = vmatprep.subr.bf16.mxu1 %v6187_v3 }
 0x5c0   :  { %5683 = vmatpush3.bf16.msra.mxu1 %v6319_v58 }
 0x5c1   :  { %5690 = vmatprep.subr.bf16.mxu1 %v6187_v3 }
 0x674   :  { %v659_v47 = vpop.f32.mrb[8].mxu1 }
 0x675   :  { %v663_v48 = vadd.f32 %v659_v47, %v132_v44  ;;  %v5113_v49 = vpop.f32.mrb[9].mxu1  ;;  %v6472_v44 = vpop.f32.mrb[7].mxu0 }
 0x676   :  { %v6475_v45 = vpop.f32.mrb[8].mxu0 }
 0x677   :  { %5953 = vtanh.f32 %v663_v48  ;;  %v4652_v60 = vmul.f32 -1.442695, %v663_v48  ;;  %v6478_v46 = vpop.f32.mrb[9].mxu0 }
 0x678   :  { %v6484_v47 = vpop.f32.mrb[10].mxu0 }
 0x679   :  { %v6487_v48 = vpop.f32.mrb[11].mxu0 }
 0x681   :  { %v5954_v50 = vpop.eup %5953 }
 0x682   :  { %673 = vrot.lane.b32.xlu0 %v5954_v50, %s6190_s25 }
 0x686   :  { %v759_v51 = vpop.f32.mrb[10].mxu1 }
 0x687   :  { %v5124_v52 = vpop.f32.mrb[11].mxu1 }
 0x68e   :  { %v829_v53 = vpop.f32.mrb[12].mxu1 }
 0x68f   :  { %v830_v55 = vadd.f32 %v829_v53, %v759_v51  ;;  %v5135_v56 = vpop.f32.mrb[13].mxu1 }
 0x691   :  { %v833_v57 = vadd.f32 %v6360_v9, %v830_v55 }
 0x693   :  { %5955 = vtanh.f32 %v833_v57  ;;  %v4655_v1 = vmul.f32 -1.442695, %v833_v57 }
 0x694   :  { %5957 = vpow2.f32 %v4652_v60 }
 0x69d   :  { %v5956_v59 = vpop.eup %5955 }
 0x69e   :  { %843 = vrot.lane.b32.xlu1 %v5956_v59, %s6190_s25  ;;  %v5958_v62 = vpop.eup %5957 }
 0x69f   :  { %v667_v63 = vadd.f32 1.0, %v5958_v62 }
 0x6a1   :  { %5959 = vrcp.f32 %v667_v63 }
 0x6a2   :  { %5961 = vpow2.f32 %v4655_v1 }
 0x6ab   :  { %v5960_v2 = vpop.eup %5959 }
 0x6ac   :  { %v5962_v7 = vpop.eup %5961  ;;  %v671_v13 = vmul.f32 %v5960_v2, %v6367_v31  ;;  %v36_v31 = vld [vmem:[%s7022_s0 + $0x60] sm:$0xff] }
 0x6ad   :  { %v837_v8 = vadd.f32 1.0, %v5962_v7  ;;  %5053 = vmatprep.mubr.f32.mxu0 %v36_v31 }
 0x6ae   :  { %5054 = vmatmul.mubr.f32.gmra.mrb[12].mxu0 %v37_v32 }
 0x6af   :  { %5963 = vrcp.f32 %v837_v8  ;;  %5056 = vmatprep.mubr.f32.mxu0 %v38_v33 }
 0x6b2   :  { %5057 = vmatmul.mubr.f32.gmra.mrb[14].mxu0 %v39_v34 }
 0x6b3   :  { %5144 = vmatprep.mubr.msk.f32.mxu0 %vm6188_vm0, %v6189_v4 }
 0x6b9   :  { %v5964_v10 = vpop.eup %5963 }
 0x6ba   :  { %v841_v18 = vmul.f32 %v5964_v10, %v6371_v35 }
 0x6f4   :  { %v674_v5 = vpop.permute.xlu0 %673 }
 0x6f5   :  { %v676_v6 = vmul.f32 %v5960_v2, %v674_v5 }
 0x6f7   :  { %678 = vrot.lane.b32.xlu0 %v676_v6, %s6190_s25 }
 0x710   :  { %v844_v11 = vpop.permute.xlu1 %843 }
 0x711   :  { %v846_v12 = vmul.f32 %v5964_v10, %v844_v11 }
 0x713   :  { %848 = vrot.lane.b32.xlu1 %v846_v12, %s6190_s25 }
 0x769   :  { %v679_v14 = vpop.permute.xlu0 %678 }
 0x76a   :  { %v6412_v16 = vadd.f32 %v679_v14, %v671_v13 }
 0x76c   :  { %5965 = vtanh.f32 %v6412_v16 }
 0x776   :  { %v5966_v17 = vpop.eup %5965 }
 0x777   :  { %684 = vrot.lane.b32.xlu0 %v5966_v17, %s6190_s25 }
 0x781   :  { %v6490_v49 = vpop.f32.mrb[12].mxu0 }
 0x782   :  { %v6493_v50 = vpop.f32.mrb[13].mxu0 }
 0x785   :  { %v849_v20 = vpop.permute.xlu1 %848  ;;  %v6495_v51 = vpop.f32.mrb[14].mxu0 }
 0x786   :  { %v6417_v21 = vadd.f32 %v849_v20, %v841_v18  ;;  %v6497_v52 = vpop.f32.mrb[15].mxu0 }
 0x788   :  { %5967 = vtanh.f32 %v6417_v21 }
 0x792   :  { %v5968_v29 = vpop.eup %5967 }
 0x793   :  { %854 = vrot.lane.b32.xlu1 %v5968_v29, %s6190_s25 }
 0x7e9   :  { %v685_v35 = vpop.permute.xlu0 %684 }
 0x7ea   :  { %v687_v36 = vmul.f32 %v5960_v2, %v685_v35 }
 0x7ec   :  { %860 = vrot.lane.b32.xlu0 %v687_v36, %s6191_s26 }
 0x805   :  { %v855_v37 = vpop.permute.xlu1 %854 }
 0x806   :  { %v857_v38 = vmul.f32 %v5964_v10, %v855_v37 }
 0x808   :  { %960 = vrot.lane.b32.xlu1 %v857_v38, %s6191_s26 }
 0x85e   :  { %v861_v40 = vpop.permute.xlu0 %860 }
 0x85f   :  { %5145 = vmatmul.mubr.msk.f32.vlgmr.msra.gmra.mrb[16].mxu0 %vm218_vm1, %v861_v40 }
 0x860   :  { %5686 = vmatpush3.bf16.msra.mxu0 %v6331_v61  ;;  %5166 = vmatprep.mubr.msk.f32.mxu0 %vm6188_vm0, %v6189_v4 }
 0x861   :  { %5687 = vmatprep.subr.bf16.mxu0 %v6187_v3 }
 0x864   :  { %5689 = vmatpush3.bf16.msra.mxu0 %v6342_v0 }
 0x865   :  { %5696 = vmatprep.subr.bf16.mxu0 %v6187_v3 }
 0x867   :  { %5167 = vmatmul.mubr.msk.f32.vlgmr.msra.gmra.mrb[18].mxu0 %vm218_vm1, %v861_v40 }
 0x868   :  { %5698 = vmatpush3.bf16.msra.mxu0 %v6309_v54  ;;  %5188 = vmatprep.mubr.msk.f32.mxu0 %vm6188_vm0, %v6189_v4 }
 0x869   :  { %5699 = vmatprep.subr.bf16.mxu0 %v6187_v3 }
 0x86c   :  { %5701 = vmatpush3.bf16.msra.mxu0 %v6319_v58 }
 0x86d   :  { %5708 = vmatprep.subr.bf16.mxu0 %v6187_v3 }
 0x87a   :  { %v961_v53 = vpop.permute.xlu1 %960 }
 0x87b   :  { %5156 = vmatmul.mubr.msk.f32.vlgmr.msra.gmra.mrb[14].mxu1 %vm218_vm1, %v961_v53 }
 0x87c   :  { %5692 = vmatpush3.bf16.msra.mxu1 %v6240_v15  ;;  %5177 = vmatprep.mubr.msk.f32.mxu1 %vm6188_vm0, %v6189_v4 }
 0x87d   :  { %5693 = vmatprep.subr.bf16.mxu1 %v6187_v3 }
 0x880   :  { %5695 = vmatpush3.bf16.msra.mxu1 %v6252_v19 }
 0x881   :  { %5702 = vmatprep.subr.bf16.mxu1 %v6187_v3 }
 0x932   :  { %v930_v55 = vpop.f32.mrb[16].mxu0 }
 0x933   :  { %v934_v56 = vadd.f32 %v6383_v43, %v930_v55  ;;  %v5146_v57 = vpop.f32.mrb[17].mxu0 }
 0x935   :  { %5969 = vtanh.f32 %v934_v56  ;;  %v4657_v7 = vmul.f32 -1.442695, %v934_v56 }
 0x93a   :  { %v1100_v59 = vpop.f32.mrb[18].mxu0 }
 0x93b   :  { %v5168_v60 = vpop.f32.mrb[19].mxu0 }
 0x93f   :  { %v5970_v62 = vpop.eup %5969 }
 0x940   :  { %944 = vrot.lane.b32.xlu0 %v5970_v62, %s6190_s25 }
 0x94e   :  { %v1030_v63 = vpop.f32.mrb[14].mxu1 }
 0x94f   :  { %v1101_v1 = vadd.f32 %v1100_v59, %v1030_v63  ;;  %v5157_v2 = vpop.f32.mrb[15].mxu1 }
 0x951   :  { %v1104_v5 = vadd.f32 %v6360_v9, %v1101_v1 }
 0x953   :  { %5971 = vtanh.f32 %v1104_v5  ;;  %v4660_v10 = vmul.f32 -1.442695, %v1104_v5 }
 0x954   :  { %5973 = vpow2.f32 %v4657_v7 }
 0x95d   :  { %v5972_v6 = vpop.eup %5971 }
 0x95e   :  { %1114 = vrot.lane.b32.xlu1 %v5972_v6, %s6190_s25  ;;  %v5974_v8 = vpop.eup %5973 }
 0x95f   :  { %v938_v43 = vadd.f32 1.0, %v5974_v8 }
 0x961   :  { %5975 = vrcp.f32 %v938_v43 }
 0x962   :  { %5977 = vpow2.f32 %v4660_v10 }
 0x96b   :  { %v5976_v11 = vpop.eup %5975 }
 0x96c   :  { %v5978_v14 = vpop.eup %5977  ;;  %v942_v23 = vmul.f32 %v5976_v11, %v6412_v16 }
 0x96d   :  { %v1108_v17 = vadd.f32 1.0, %v5978_v14 }
 0x96f   :  { %5979 = vrcp.f32 %v1108_v17 }
 0x979   :  { %v5980_v18 = vpop.eup %5979 }
 0x97a   :  { %v1112_v27 = vmul.f32 %v5980_v18, %v6417_v21 }
 0x9b2   :  { %v945_v12 = vpop.permute.xlu0 %944 }
 0x9b3   :  { %v947_v13 = vmul.f32 %v5976_v11, %v945_v12 }
 0x9b5   :  { %949 = vrot.lane.b32.xlu0 %v947_v13, %s6190_s25 }
 0x9d0   :  { %v1115_v20 = vpop.permute.xlu1 %1114 }
 0x9d1   :  { %v1117_v22 = vmul.f32 %v5980_v18, %v1115_v20 }
 0x9d3   :  { %1119 = vrot.lane.b32.xlu1 %v1117_v22, %s6190_s25 }
 0xa27   :  { %v950_v24 = vpop.permute.xlu0 %949 }
 0xa28   :  { %v6513_v25 = vadd.f32 %v950_v24, %v942_v23 }
 0xa2a   :  { %5981 = vtanh.f32 %v6513_v25 }
 0xa34   :  { %v5982_v26 = vpop.eup %5981 }
 0xa35   :  { %955 = vrot.lane.b32.xlu0 %v5982_v26, %s6190_s25 }
 0xa45   :  { %v1120_v28 = vpop.permute.xlu1 %1119 }
 0xa46   :  { %v6518_v29 = vadd.f32 %v1120_v28, %v1112_v27 }
 0xa48   :  { %5983 = vtanh.f32 %v6518_v29 }
 0xa52   :  { %v5984_v30 = vpop.eup %5983 }
 0xa53   :  { %1125 = vrot.lane.b32.xlu1 %v5984_v30, %s6190_s25 }
 0xaa7   :  { %v956_v31 = vpop.permute.xlu0 %955 }
 0xaa8   :  { %v958_v16 = vmul.f32 %v5976_v11, %v956_v31 }
 0xaaa   :  { %1131 = vrot.lane.b32.xlu0 %v958_v16, %s6191_s26 }
 0xac5   :  { %v1126_v32 = vpop.permute.xlu1 %1125 }
 0xac6   :  { %v1128_v33 = vmul.f32 %v5980_v18, %v1126_v32 }
 0xac8   :  { %1231 = vrot.lane.b32.xlu1 %v1128_v33, %s6191_s26 }
 0xb1c   :  { %v1132_v34 = vpop.permute.xlu0 %1131 }
 0xb1d   :  { %5178 = vmatmul.mubr.msk.f32.vlgmr.msra.gmra.mrb[16].mxu1 %vm218_vm1, %v1132_v34 }
 0xb1e   :  { %5704 = vmatpush3.bf16.msra.mxu1 %v6331_v61  ;;  %5199 = vmatprep.mubr.msk.f32.mxu1 %vm6188_vm0, %v6189_v4 }
 0xb1f   :  { %5705 = vmatprep.subr.bf16.mxu1 %v6187_v3 }
 0xb22   :  { %5707 = vmatpush3.bf16.msra.mxu1 %v6342_v0 }
 0xb23   :  { %5714 = vmatprep.subr.bf16.mxu1 %v6187_v3 }
 0xb25   :  { %5200 = vmatmul.mubr.msk.f32.vlgmr.msra.gmra.mrb[18].mxu1 %vm218_vm1, %v1132_v34 }
 0xb26   :  { %5716 = vmatpush3.bf16.msra.mxu1 %v6309_v54  ;;  %5221 = vmatprep.mubr.msk.f32.mxu1 %vm6188_vm0, %v6189_v4 }
 0xb27   :  { %5717 = vmatprep.subr.bf16.mxu1 %v6187_v3 }
 0xb2a   :  { %5719 = vmatpush3.bf16.msra.mxu1 %v6319_v58 }
 0xb2b   :  { %5726 = vmatprep.subr.bf16.mxu1 %v6187_v3 }
 0xb3a   :  { %v1232_v21 = vpop.permute.xlu1 %1231 }
 0xb3b   :  { %5189 = vmatmul.mubr.msk.f32.vlgmr.msra.gmra.mrb[20].mxu0 %vm218_vm1, %v1232_v21 }
 0xb3c   :  { %5710 = vmatpush3.bf16.msra.mxu0 %v6240_v15  ;;  %5210 = vmatprep.mubr.msk.f32.mxu0 %vm6188_vm0, %v6189_v4 }
 0xb3d   :  { %5711 = vmatprep.subr.bf16.mxu0 %v6187_v3 }
 0xb40   :  { %5713 = vmatpush3.bf16.msra.mxu0 %v6252_v19 }
 0xb41   :  { %5720 = vmatprep.subr.bf16.mxu0 %v6187_v3 }
 0xbf0   :  { %v1201_v35 = vpop.f32.mrb[16].mxu1 }
 0xbf1   :  { %v1205_v36 = vadd.f32 %v1201_v35, %v6463_v41  ;;  %v5179_v37 = vpop.f32.mrb[17].mxu1 }
 0xbf3   :  { %5985 = vtanh.f32 %v1205_v36  ;;  %v4662_v62 = vmul.f32 -1.442695, %v1205_v36 }
 0xbf8   :  { %v1371_v38 = vpop.f32.mrb[18].mxu1 }
 0xbf9   :  { %v5201_v40 = vpop.f32.mrb[19].mxu1 }
 0xbfd   :  { %v5986_v53 = vpop.eup %5985 }
 0xbfe   :  { %1215 = vrot.lane.b32.xlu0 %v5986_v53, %s6190_s25 }
 0xc0e   :  { %v1301_v55 = vpop.f32.mrb[20].mxu0 }
 0xc0f   :  { %v1372_v56 = vadd.f32 %v1371_v38, %v1301_v55  ;;  %v5190_v57 = vpop.f32.mrb[21].mxu0 }
 0xc11   :  { %v1375_v59 = vadd.f32 %v6360_v9, %v1372_v56 }
 0xc13   :  { %5987 = vtanh.f32 %v1375_v59  ;;  %v4665_v5 = vmul.f32 -1.442695, %v1375_v59 }
 0xc14   :  { %5989 = vpow2.f32 %v4662_v62 }
 0xc1d   :  { %v5988_v60 = vpop.eup %5987 }
 0xc1e   :  { %1385 = vrot.lane.b32.xlu1 %v5988_v60, %s6190_s25  ;;  %v5990_v63 = vpop.eup %5989 }
 0xc1f   :  { %v1209_v41 = vadd.f32 1.0, %v5990_v63 }
 0xc21   :  { %5991 = vrcp.f32 %v1209_v41 }
 0xc22   :  { %5993 = vpow2.f32 %v4665_v5 }
 0xc2b   :  { %v5992_v1 = vpop.eup %5991 }
 0xc2c   :  { %v5994_v7 = vpop.eup %5993  ;;  %v1213_v12 = vmul.f32 %v5992_v1, %v6513_v25 }
 0xc2d   :  { %v1379_v8 = vadd.f32 1.0, %v5994_v7 }
 0xc2f   :  { %5995 = vrcp.f32 %v1379_v8 }
 0xc39   :  { %v5996_v43 = vpop.eup %5995 }
 0xc3a   :  { %v1383_v18 = vmul.f32 %v5996_v43, %v6518_v29 }
 0xc70   :  { %v1216_v2 = vpop.permute.xlu0 %1215 }
 0xc71   :  { %v1218_v6 = vmul.f32 %v5992_v1, %v1216_v2 }
 0xc73   :  { %1220 = vrot.lane.b32.xlu0 %v1218_v6, %s6190_s25 }
 0xc90   :  { %v1386_v10 = vpop.permute.xlu1 %1385 }
 0xc91   :  { %v1388_v11 = vmul.f32 %v5996_v43, %v1386_v10 }
 0xc93   :  { %1390 = vrot.lane.b32.xlu1 %v1388_v11, %s6190_s25 }
 0xce5   :  { %v1221_v13 = vpop.permute.xlu0 %1220 }
 0xce6   :  { %v6552_v14 = vadd.f32 %v1221_v13, %v1213_v12 }
 0xce8   :  { %5997 = vtanh.f32 %v6552_v14 }
 0xcf2   :  { %v5998_v17 = vpop.eup %5997 }
 0xcf3   :  { %1226 = vrot.lane.b32.xlu0 %v5998_v17, %s6190_s25 }
 0xd05   :  { %v1391_v20 = vpop.permute.xlu1 %1390 }
 0xd06   :  { %v6557_v22 = vadd.f32 %v1391_v20, %v1383_v18 }
 0xd08   :  { %5999 = vtanh.f32 %v6557_v22 }
 0xd12   :  { %v6000_v23 = vpop.eup %5999 }
 0xd13   :  { %1396 = vrot.lane.b32.xlu1 %v6000_v23, %s6190_s25 }
 0xd65   :  { %v1227_v24 = vpop.permute.xlu0 %1226 }
 0xd66   :  { %v1229_v25 = vmul.f32 %v5992_v1, %v1227_v24 }
 0xd68   :  { %1402 = vrot.lane.b32.xlu0 %v1229_v25, %s6191_s26 }
 0xd85   :  { %v1397_v26 = vpop.permute.xlu1 %1396 }
 0xd86   :  { %v1399_v27 = vmul.f32 %v5996_v43, %v1397_v26 }
 0xd88   :  { %1502 = vrot.lane.b32.xlu1 %v1399_v27, %s6191_s26 }
 0xdda   :  { %v1403_v28 = vpop.permute.xlu0 %1402 }
 0xddb   :  { %5211 = vmatmul.mubr.msk.f32.vlgmr.msra.gmra.mrb[22].mxu0 %vm218_vm1, %v1403_v28 }
 0xddc   :  { %5722 = vmatpush3.bf16.msra.mxu0 %v6331_v61  ;;  %5232 = vmatprep.mubr.msk.f32.mxu0 %vm6188_vm0, %v6189_v4 }
 0xddd   :  { %5723 = vmatprep.subr.bf16.mxu0 %v6187_v3 }
 0xde0   :  { %5725 = vmatpush3.bf16.msra.mxu0 %v6342_v0 }
 0xde1   :  { %5732 = vmatprep.subr.bf16.mxu0 %v6187_v3 }
 0xde3   :  { %5233 = vmatmul.mubr.msk.f32.vlgmr.msra.gmra.mrb[24].mxu0 %vm218_vm1, %v1403_v28 }
 0xde4   :  { %5734 = vmatpush3.bf16.msra.mxu0 %v6309_v54  ;;  %5254 = vmatprep.mubr.msk.f32.mxu0 %vm6188_vm0, %v6189_v4 }
 0xde5   :  { %5735 = vmatprep.subr.bf16.mxu0 %v6187_v3 }
 0xde8   :  { %5737 = vmatpush3.bf16.msra.mxu0 %v6319_v58 }
 0xde9   :  { %5744 = vmatprep.subr.bf16.mxu0 %v6187_v3 }
 0xdfa   :  { %v1503_v29 = vpop.permute.xlu1 %1502 }
 0xdfb   :  { %5222 = vmatmul.mubr.msk.f32.vlgmr.msra.gmra.mrb[20].mxu1 %vm218_vm1, %v1503_v29 }
 0xdfc   :  { %5728 = vmatpush3.bf16.msra.mxu1 %v6240_v15  ;;  %5243 = vmatprep.mubr.msk.f32.mxu1 %vm6188_vm0, %v6189_v4 }
 0xdfd   :  { %5729 = vmatprep.subr.bf16.mxu1 %v6187_v3 }
 0xe00   :  { %5731 = vmatpush3.bf16.msra.mxu1 %v6252_v19 }
 0xe01   :  { %5738 = vmatprep.subr.bf16.mxu1 %v6187_v3 }
 0xeae   :  { %v1472_v30 = vpop.f32.mrb[22].mxu0 }
 0xeaf   :  { %v1476_v31 = vadd.f32 %v6461_v39, %v1472_v30  ;;  %v5212_v16 = vpop.f32.mrb[23].mxu0 }
 0xeb1   :  { %6001 = vtanh.f32 %v1476_v31  ;;  %v4667_v40 = vmul.f32 -1.442695, %v1476_v31 }
 0xeb6   :  { %v1642_v32 = vpop.f32.mrb[24].mxu0 }
 0xeb7   :  { %v5234_v33 = vpop.f32.mrb[25].mxu0 }
 0xebb   :  { %v6002_v34 = vpop.eup %6001 }
 0xebc   :  { %1486 = vrot.lane.b32.xlu0 %v6002_v34, %s6190_s25 }
 0xece   :  { %v1572_v21 = vpop.f32.mrb[20].mxu1 }
 0xecf   :  { %v1643_v35 = vadd.f32 %v1642_v32, %v1572_v21  ;;  %v5223_v36 = vpop.f32.mrb[21].mxu1 }
 0xed1   :  { %v1646_v37 = vadd.f32 %v6360_v9, %v1643_v35 }
 0xed3   :  { %6003 = vtanh.f32 %v1646_v37  ;;  %v4670_v59 = vmul.f32 -1.442695, %v1646_v37 }
 0xed4   :  { %6005 = vpow2.f32 %v4667_v40 }
 0xedd   :  { %v6004_v38 = vpop.eup %6003 }
 0xede   :  { %1656 = vrot.lane.b32.xlu1 %v6004_v38, %s6190_s25  ;;  %v6006_v53 = vpop.eup %6005 }
 0xedf   :  { %v1480_v39 = vadd.f32 1.0, %v6006_v53 }
 0xee1   :  { %6007 = vrcp.f32 %v1480_v39 }
 0xee2   :  { %6009 = vpow2.f32 %v4670_v59 }
 0xeeb   :  { %v6008_v55 = vpop.eup %6007 }
 0xeec   :  { %v6010_v60 = vpop.eup %6009  ;;  %v1484_v2 = vmul.f32 %v6008_v55, %v6552_v14 }
 0xeed   :  { %v1650_v62 = vadd.f32 1.0, %v6010_v60 }
 0xeef   :  { %6011 = vrcp.f32 %v1650_v62 }
 0xef9   :  { %v6012_v63 = vpop.eup %6011 }
 0xefa   :  { %v1654_v8 = vmul.f32 %v6012_v63, %v6557_v22 }
 0xf2e   :  { %v1487_v56 = vpop.permute.xlu0 %1486 }
 0xf2f   :  { %v1489_v57 = vmul.f32 %v6008_v55, %v1487_v56 }
 0xf31   :  { %1491 = vrot.lane.b32.xlu0 %v1489_v57, %s6190_s25 }
 0xf50   :  { %v1657_v41 = vpop.permute.xlu1 %1656 }
 0xf51   :  { %v1659_v1 = vmul.f32 %v6012_v63, %v1657_v41 }
 0xf53   :  { %1661 = vrot.lane.b32.xlu1 %v1659_v1, %s6190_s25 }
 0xfa3   :  { %v1492_v5 = vpop.permute.xlu0 %1491 }
 0xfa4   :  { %v6591_v6 = vadd.f32 %v1492_v5, %v1484_v2 }
 0xfa6   :  { %6013 = vtanh.f32 %v6591_v6 }
 0xfb0   :  { %v6014_v7 = vpop.eup %6013 }
 0xfb1   :  { %1497 = vrot.lane.b32.xlu0 %v6014_v7, %s6190_s25 }
 0xfc5   :  { %v1662_v43 = vpop.permute.xlu1 %1661 }
 0xfc6   :  { %v6596_v10 = vadd.f32 %v1662_v43, %v1654_v8 }
 0xfc8   :  { %6015 = vtanh.f32 %v6596_v10 }
 0xfd2   :  { %v6016_v11 = vpop.eup %6015 }
 0xfd3   :  { %1667 = vrot.lane.b32.xlu1 %v6016_v11, %s6190_s25 }
0x1023   :  { %v1498_v12 = vpop.permute.xlu0 %1497 }
0x1024   :  { %v1500_v13 = vmul.f32 %v6008_v55, %v1498_v12 }
0x1026   :  { %1673 = vrot.lane.b32.xlu0 %v1500_v13, %s6191_s26 }
0x1045   :  { %v1668_v14 = vpop.permute.xlu1 %1667 }
0x1046   :  { %v1670_v17 = vmul.f32 %v6012_v63, %v1668_v14 }
0x1048   :  { %1773 = vrot.lane.b32.xlu1 %v1670_v17, %s6191_s26 }
0x1098   :  { %v1674_v18 = vpop.permute.xlu0 %1673 }
0x1099   :  { %5244 = vmatmul.mubr.msk.f32.vlgmr.msra.gmra.mrb[22].mxu1 %vm218_vm1, %v1674_v18 }
0x109a   :  { %5740 = vmatpush3.bf16.msra.mxu1 %v6331_v61  ;;  %5265 = vmatprep.mubr.msk.f32.mxu1 %vm6188_vm0, %v6189_v4 }
0x109b   :  { %5741 = vmatprep.subr.bf16.mxu1 %v6187_v3 }
0x109e   :  { %5743 = vmatpush3.bf16.msra.mxu1 %v6342_v0 }
0x109f   :  { %5750 = vmatprep.subr.bf16.mxu1 %v6187_v3 }
0x10a1   :  { %5266 = vmatmul.mubr.msk.f32.vlgmr.msra.gmra.mrb[24].mxu1 %vm218_vm1, %v1674_v18 }
0x10a2   :  { %5752 = vmatpush3.bf16.msra.mxu1 %v6309_v54  ;;  %5287 = vmatprep.mubr.msk.f32.mxu1 %vm6188_vm0, %v6189_v4 }
0x10a3   :  { %5753 = vmatprep.subr.bf16.mxu1 %v6187_v3 }
0x10a6   :  { %5755 = vmatpush3.bf16.msra.mxu1 %v6319_v58 }
0x10a7   :  { %5762 = vmatprep.subr.bf16.mxu1 %v6187_v3 }
0x10ba   :  { %v1774_v20 = vpop.permute.xlu1 %1773 }
0x10bb   :  { %5255 = vmatmul.mubr.msk.f32.vlgmr.msra.gmra.mrb[26].mxu0 %vm218_vm1, %v1774_v20 }
0x10bc   :  { %5746 = vmatpush3.bf16.msra.mxu0 %v6240_v15  ;;  %5276 = vmatprep.mubr.msk.f32.mxu0 %vm6188_vm0, %v6189_v4 }
0x10bd   :  { %5747 = vmatprep.subr.bf16.mxu0 %v6187_v3 }
0x10c0   :  { %5749 = vmatpush3.bf16.msra.mxu0 %v6252_v19 }
0x10c1   :  { %5756 = vmatprep.subr.bf16.mxu0 %v6187_v3 }
0x116c   :  { %v1743_v22 = vpop.f32.mrb[22].mxu1 }
0x116d   :  { %v1747_v23 = vadd.f32 %v1743_v22, %v6472_v44  ;;  %v5245_v24 = vpop.f32.mrb[23].mxu1 }
0x116f   :  { %6017 = vtanh.f32 %v1747_v23  ;;  %v4672_v32 = vmul.f32 -1.442695, %v1747_v23 }
0x1174   :  { %v1913_v25 = vpop.f32.mrb[24].mxu1 }
0x1175   :  { %v5267_v26 = vpop.f32.mrb[25].mxu1 }
0x1179   :  { %v6018_v27 = vpop.eup %6017 }
0x117a   :  { %1757 = vrot.lane.b32.xlu0 %v6018_v27, %s6190_s25 }
0x118e   :  { %v1843_v28 = vpop.f32.mrb[26].mxu0 }
0x118f   :  { %v1914_v29 = vadd.f32 %v1913_v25, %v1843_v28  ;;  %v5256_v30 = vpop.f32.mrb[27].mxu0 }
0x1191   :  { %v1917_v31 = vadd.f32 %v6360_v9, %v1914_v29 }
0x1193   :  { %6019 = vtanh.f32 %v1917_v31  ;;  %v4675_v36 = vmul.f32 -1.442695, %v1917_v31 }
0x1194   :  { %6021 = vpow2.f32 %v4672_v32 }
0x119d   :  { %v6020_v16 = vpop.eup %6019 }
0x119e   :  { %1927 = vrot.lane.b32.xlu1 %v6020_v16, %s6190_s25  ;;  %v6022_v33 = vpop.eup %6021 }
0x119f   :  { %v1751_v44 = vadd.f32 1.0, %v6022_v33 }
0x11a1   :  { %6023 = vrcp.f32 %v1751_v44 }
0x11a2   :  { %6025 = vpow2.f32 %v4675_v36 }
0x11ab   :  { %v6024_v34 = vpop.eup %6023 }
0x11ac   :  { %v6026_v37 = vpop.eup %6025  ;;  %v1755_v55 = vmul.f32 %v6024_v34, %v6591_v6 }
0x11ad   :  { %v1921_v38 = vadd.f32 1.0, %v6026_v37 }
0x11af   :  { %6027 = vrcp.f32 %v1921_v38 }
0x11b9   :  { %v6028_v40 = vpop.eup %6027 }
0x11ba   :  { %v1925_v60 = vmul.f32 %v6028_v40, %v6596_v10 }
0x11ec   :  { %v1758_v21 = vpop.permute.xlu0 %1757 }
0x11ed   :  { %v1760_v35 = vmul.f32 %v6024_v34, %v1758_v21 }
0x11ef   :  { %1762 = vrot.lane.b32.xlu0 %v1760_v35, %s6190_s25 }
0x1210   :  { %v1928_v53 = vpop.permute.xlu1 %1927 }
0x1211   :  { %v1930_v39 = vmul.f32 %v6028_v40, %v1928_v53 }
0x1213   :  { %1932 = vrot.lane.b32.xlu1 %v1930_v39, %s6190_s25 }
0x1261   :  { %v1763_v56 = vpop.permute.xlu0 %1762 }
0x1262   :  { %v6630_v57 = vadd.f32 %v1763_v56, %v1755_v55 }
0x1264   :  { %6029 = vtanh.f32 %v6630_v57 }
0x126e   :  { %v6030_v59 = vpop.eup %6029 }
0x126f   :  { %1768 = vrot.lane.b32.xlu0 %v6030_v59, %s6190_s25 }
0x1285   :  { %v1933_v62 = vpop.permute.xlu1 %1932 }
0x1286   :  { %v6635_v63 = vadd.f32 %v1933_v62, %v1925_v60 }
0x1288   :  { %6031 = vtanh.f32 %v6635_v63 }
0x1292   :  { %v6032_v41 = vpop.eup %6031 }
0x1293   :  { %1938 = vrot.lane.b32.xlu1 %v6032_v41, %s6190_s25 }
0x12e1   :  { %v1769_v1 = vpop.permute.xlu0 %1768 }
0x12e2   :  { %v1771_v2 = vmul.f32 %v6024_v34, %v1769_v1 }
0x12e4   :  { %1944 = vrot.lane.b32.xlu0 %v1771_v2, %s6191_s26 }
0x1305   :  { %v1939_v5 = vpop.permute.xlu1 %1938 }
0x1306   :  { %v1941_v6 = vmul.f32 %v6028_v40, %v1939_v5 }
0x1308   :  { %2044 = vrot.lane.b32.xlu1 %v1941_v6, %s6191_s26 }
0x1356   :  { %v1945_v7 = vpop.permute.xlu0 %1944 }
0x1357   :  { %5277 = vmatmul.mubr.msk.f32.vlgmr.msra.gmra.mrb[28].mxu0 %vm218_vm1, %v1945_v7 }
0x1358   :  { %5758 = vmatpush3.bf16.msra.mxu0 %v6331_v61  ;;  %5298 = vmatprep.mubr.msk.f32.mxu0 %vm6188_vm0, %v6189_v4 }
0x1359   :  { %5759 = vmatprep.subr.bf16.mxu0 %v6187_v3 }
0x135c   :  { %5761 = vmatpush3.bf16.msra.mxu0 %v6342_v0 }
0x135d   :  { %5768 = vmatprep.subr.bf16.mxu0 %v6187_v3 }
0x135f   :  { %5299 = vmatmul.mubr.msk.f32.vlgmr.msra.gmra.mrb[30].mxu0 %vm218_vm1, %v1945_v7  ;;  %v6706_v7 = vld [vmem:[%s7021_s1 + $0xe0] ss:$0 sm:$0xff] }
0x1360   :  { %5770 = vmatpush3.bf16.msra.mxu0 %v6309_v54  ;;  %5320 = vmatprep.mubr.msk.f32.mxu0 %vm6188_vm0, %v6189_v4 }
0x1361   :  { %5771 = vmatprep.subr.bf16.mxu0 %v6187_v3 }
0x1364   :  { %5773 = vmatpush3.bf16.msra.mxu0 %v6319_v58 }
0x1365   :  { %5780 = vmatprep.subr.bf16.mxu0 %v6187_v3 }
0x137a   :  { %v2045_v8 = vpop.permute.xlu1 %2044 }
0x137b   :  { %5288 = vmatmul.mubr.msk.f32.vlgmr.msra.gmra.mrb[26].mxu1 %vm218_vm1, %v2045_v8 }
0x137c   :  { %5764 = vmatpush3.bf16.msra.mxu1 %v6240_v15  ;;  %5309 = vmatprep.mubr.msk.f32.mxu1 %vm6188_vm0, %v6189_v4 }
0x137d   :  { %5765 = vmatprep.subr.bf16.mxu1 %v6187_v3 }
0x1380   :  { %5767 = vmatpush3.bf16.msra.mxu1 %v6252_v19 }
0x1381   :  { %5774 = vmatprep.subr.bf16.mxu1 %v6187_v3 }
0x142a   :  { %v2014_v43 = vpop.f32.mrb[28].mxu0 }
0x142b   :  { %v2018_v10 = vadd.f32 %v6470_v42, %v2014_v43  ;;  %v5278_v11 = vpop.f32.mrb[29].mxu0 }
0x142d   :  { %6033 = vtanh.f32 %v2018_v10  ;;  %v4677_v24 = vmul.f32 -1.442695, %v2018_v10 }
0x1432   :  { %v2184_v12 = vpop.f32.mrb[30].mxu0 }
0x1433   :  { %v5300_v13 = vpop.f32.mrb[31].mxu0 }
0x1437   :  { %v6034_v14 = vpop.eup %6033 }
0x1438   :  { %2028 = vrot.lane.b32.xlu0 %v6034_v14, %s6190_s25 }
0x144e   :  { %v2114_v17 = vpop.f32.mrb[26].mxu1 }
0x144f   :  { %v2185_v18 = vadd.f32 %v2184_v12, %v2114_v17  ;;  %v5289_v20 = vpop.f32.mrb[27].mxu1 }
0x1451   :  { %v2188_v22 = vadd.f32 %v6360_v9, %v2185_v18 }
0x1453   :  { %6035 = vtanh.f32 %v2188_v22  ;;  %v4680_v29 = vmul.f32 -1.442695, %v2188_v22 }
0x1454   :  { %6037 = vpow2.f32 %v4677_v24 }
0x145d   :  { %v6036_v23 = vpop.eup %6035 }
0x145e   :  { %2198 = vrot.lane.b32.xlu1 %v6036_v23, %s6190_s25  ;;  %v6038_v25 = vpop.eup %6037 }
0x145f   :  { %v2022_v42 = vadd.f32 1.0, %v6038_v25 }
0x1461   :  { %6039 = vrcp.f32 %v2022_v42 }
0x1462   :  { %6041 = vpow2.f32 %v4680_v29 }
0x146b   :  { %v6040_v26 = vpop.eup %6039 }
0x146c   :  { %v6042_v30 = vpop.eup %6041  ;;  %v2026_v33 = vmul.f32 %v6040_v26, %v6630_v57 }
0x146d   :  { %v2192_v31 = vadd.f32 1.0, %v6042_v30 }
0x146f   :  { %6043 = vrcp.f32 %v2192_v31 }
0x1479   :  { %v6044_v9 = vpop.eup %6043 }
0x147a   :  { %v2196_v35 = vmul.f32 %v6044_v9, %v6635_v63 }
0x14aa   :  { %v2029_v27 = vpop.permute.xlu0 %2028 }
0x14ab   :  { %v2031_v28 = vmul.f32 %v6040_v26, %v2029_v27 }
0x14ad   :  { %2033 = vrot.lane.b32.xlu0 %v2031_v28, %s6190_s25 }
0x14d0   :  { %v2199_v16 = vpop.permute.xlu1 %2198 }
0x14d1   :  { %v2201_v32 = vmul.f32 %v6044_v9, %v2199_v16 }
0x14d3   :  { %2203 = vrot.lane.b32.xlu1 %v2201_v32, %s6190_s25 }
0x151f   :  { %v2034_v44 = vpop.permute.xlu0 %2033 }
0x1520   :  { %v6669_v34 = vadd.f32 %v2034_v44, %v2026_v33 }
0x1522   :  { %6045 = vtanh.f32 %v6669_v34 }
0x152c   :  { %v6046_v21 = vpop.eup %6045 }
0x152d   :  { %2039 = vrot.lane.b32.xlu0 %v6046_v21, %s6190_s25 }
0x1545   :  { %v2204_v36 = vpop.permute.xlu1 %2203 }
0x1546   :  { %v6674_v37 = vadd.f32 %v2204_v36, %v2196_v35 }
0x1548   :  { %6047 = vtanh.f32 %v6674_v37 }
0x1552   :  { %v6048_v38 = vpop.eup %6047 }
0x1553   :  { %2209 = vrot.lane.b32.xlu1 %v6048_v38, %s6190_s25 }
0x159f   :  { %v2040_v40 = vpop.permute.xlu0 %2039 }
0x15a0   :  { %v2042_v53 = vmul.f32 %v6040_v26, %v2040_v40 }
0x15a2   :  { %2215 = vrot.lane.b32.xlu0 %v2042_v53, %s6191_s26 }
0x15c5   :  { %v2210_v39 = vpop.permute.xlu1 %2209 }
0x15c6   :  { %v2212_v55 = vmul.f32 %v6044_v9, %v2210_v39 }
0x15c8   :  { %2315 = vrot.lane.b32.xlu1 %v2212_v55, %s6191_s26 }
0x1614   :  { %v2216_v56 = vpop.permute.xlu0 %2215 }
0x1615   :  { %5310 = vmatmul.mubr.msk.f32.vlgmr.msra.gmra.mrb[28].mxu1 %vm218_vm1, %v2216_v56 }
0x1616   :  { %5776 = vmatpush3.bf16.msra.mxu1 %v6331_v61  ;;  %5331 = vmatprep.mubr.msk.f32.mxu1 %vm6188_vm0, %v6189_v4 }
0x1617   :  { %5777 = vmatprep.subr.bf16.mxu1 %v6187_v3 }
0x161a   :  { %5779 = vmatpush3.bf16.msra.mxu1 %v6342_v0 }
0x161b   :  { %5786 = vmatprep.subr.bf16.mxu1 %v6187_v3 }
0x161d   :  { %5332 = vmatmul.mubr.msk.f32.vlgmr.msra.gmra.mrb[30].mxu1 %vm218_vm1, %v2216_v56 }
0x161e   :  { %5788 = vmatpush3.bf16.msra.mxu1 %v6309_v54  ;;  %5353 = vmatprep.mubr.msk.f32.mxu1 %vm6188_vm0, %v6189_v4 }
0x161f   :  { %5789 = vmatprep.subr.bf16.mxu1 %v6187_v3 }
0x1622   :  { %5791 = vmatpush3.bf16.msra.mxu1 %v6319_v58 }
0x1623   :  { %5798 = vmatprep.subr.bf16.mxu1 %v6187_v3 }
0x163a   :  { %v2316_v57 = vpop.permute.xlu1 %2315 }
0x163b   :  { %5321 = vmatmul.mubr.msk.f32.vlgmr.msra.gmra.mrb[32].mxu0 %vm218_vm1, %v2316_v57 }
0x163c   :  { %5782 = vmatpush3.bf16.msra.mxu0 %v6240_v15  ;;  %5342 = vmatprep.mubr.msk.f32.mxu0 %vm6188_vm0, %v6189_v4 }
0x163d   :  { %5783 = vmatprep.subr.bf16.mxu0 %v6187_v3 }
0x1640   :  { %5785 = vmatpush3.bf16.msra.mxu0 %v6252_v19 }
0x1641   :  { %5792 = vmatprep.subr.bf16.mxu0 %v6187_v3 }
0x16e8   :  { %v2285_v59 = vpop.f32.mrb[28].mxu1 }
0x16e9   :  { %v2289_v60 = vadd.f32 %v2285_v59, %v6478_v46  ;;  %v5311_v62 = vpop.f32.mrb[29].mxu1 }
0x16eb   :  { %6049 = vtanh.f32 %v2289_v60  ;;  %v4682_v46 = vmul.f32 -1.442695, %v2289_v60 }
0x16f0   :  { %v2455_v63 = vpop.f32.mrb[30].mxu1 }
0x16f1   :  { %v5333_v41 = vpop.f32.mrb[31].mxu1 }
0x16f5   :  { %v6050_v1 = vpop.eup %6049 }
0x16f6   :  { %2299 = vrot.lane.b32.xlu0 %v6050_v1, %s6190_s25 }
0x170e   :  { %v2385_v2 = vpop.f32.mrb[32].mxu0 }
0x170f   :  { %v2456_v5 = vadd.f32 %v2455_v63, %v2385_v2  ;;  %v5322_v6 = vpop.f32.mrb[33].mxu0 }
0x1711   :  { %v2459_v8 = vadd.f32 %v6706_v7, %v2456_v5 }
0x1713   :  { %6051 = vtanh.f32 %v2459_v8  ;;  %v4685_v17 = vmul.f32 -1.442695, %v2459_v8 }
0x1714   :  { %6053 = vpow2.f32 %v4682_v46 }
0x171d   :  { %v6052_v43 = vpop.eup %6051 }
0x171e   :  { %2469 = vrot.lane.b32.xlu1 %v6052_v43, %s6190_s25  ;;  %v6054_v10 = vpop.eup %6053 }
0x171f   :  { %v2293_v11 = vadd.f32 1.0, %v6054_v10 }
0x1721   :  { %6055 = vrcp.f32 %v2293_v11 }
0x1722   :  { %6057 = vpow2.f32 %v4685_v17 }
0x172b   :  { %v6056_v12 = vpop.eup %6055 }
0x172c   :  { %v6058_v18 = vpop.eup %6057  ;;  %v2297_v25 = vmul.f32 %v6056_v12, %v6669_v34 }
0x172d   :  { %v2463_v20 = vadd.f32 1.0, %v6058_v18 }
0x172f   :  { %6059 = vrcp.f32 %v2463_v20 }
0x1739   :  { %v6060_v22 = vpop.eup %6059 }
0x173a   :  { %v2467_v28 = vmul.f32 %v6060_v22, %v6674_v37 }
0x1768   :  { %v2300_v13 = vpop.permute.xlu0 %2299 }
0x1769   :  { %v2302_v14 = vmul.f32 %v6056_v12, %v2300_v13 }
0x176b   :  { %2304 = vrot.lane.b32.xlu0 %v2302_v14, %s6190_s25 }
0x1790   :  { %v2470_v23 = vpop.permute.xlu1 %2469 }
0x1791   :  { %v2472_v24 = vmul.f32 %v6060_v22, %v2470_v23 }
0x1793   :  { %2474 = vrot.lane.b32.xlu1 %v2472_v24, %s6190_s25 }
0x17dd   :  { %v2305_v42 = vpop.permute.xlu0 %2304 }
0x17de   :  { %v6713_v26 = vadd.f32 %v2305_v42, %v2297_v25 }
0x17e0   :  { %6061 = vtanh.f32 %v6713_v26 }
0x17ea   :  { %v6062_v27 = vpop.eup %6061 }
0x17eb   :  { %2310 = vrot.lane.b32.xlu0 %v6062_v27, %s6190_s25 }
0x1805   :  { %v2475_v29 = vpop.permute.xlu1 %2474 }
0x1806   :  { %v6718_v30 = vadd.f32 %v2475_v29, %v2467_v28 }
0x1808   :  { %6063 = vtanh.f32 %v6718_v30 }
0x1812   :  { %v6064_v31 = vpop.eup %6063 }
0x1813   :  { %2480 = vrot.lane.b32.xlu1 %v6064_v31, %s6190_s25 }
0x185d   :  { %v2311_v9 = vpop.permute.xlu0 %2310 }
0x185e   :  { %v2313_v16 = vmul.f32 %v6056_v12, %v2311_v9 }
0x1860   :  { %2486 = vrot.lane.b32.xlu0 %v2313_v16, %s6191_s26 }
0x1885   :  { %v2481_v32 = vpop.permute.xlu1 %2480 }
0x1886   :  { %v2483_v33 = vmul.f32 %v6060_v22, %v2481_v32 }
0x1888   :  { %2586 = vrot.lane.b32.xlu1 %v2483_v33, %s6191_s26 }
0x18d2   :  { %v2487_v44 = vpop.permute.xlu0 %2486 }
0x18d3   :  { %5343 = vmatmul.mubr.msk.f32.vlgmr.msra.gmra.mrb[34].mxu0 %vm218_vm1, %v2487_v44 }
0x18d4   :  { %5794 = vmatpush3.bf16.msra.mxu0 %v6331_v61  ;;  %5364 = vmatprep.mubr.msk.f32.mxu0 %vm6188_vm0, %v6189_v4 }
0x18d5   :  { %5795 = vmatprep.subr.bf16.mxu0 %v6187_v3 }
0x18d8   :  { %5797 = vmatpush3.bf16.msra.mxu0 %v6342_v0 }
0x18d9   :  { %5804 = vmatprep.subr.bf16.mxu0 %v6187_v3 }
0x18db   :  { %5365 = vmatmul.mubr.msk.f32.vlgmr.msra.gmra.mrb[36].mxu0 %vm218_vm1, %v2487_v44 }
0x18dc   :  { %5806 = vmatpush3.bf16.msra.mxu0 %v6309_v54  ;;  %5386 = vmatprep.mubr.msk.f32.mxu0 %vm6188_vm0, %v6189_v4 }
0x18dd   :  { %5807 = vmatprep.subr.bf16.mxu0 %v6187_v3 }
0x18e0   :  { %5809 = vmatpush3.bf16.msra.mxu0 %v6319_v58 }
0x18e1   :  { %5816 = vmatprep.subr.bf16.mxu0 %v6187_v3 }
0x18fa   :  { %v2587_v34 = vpop.permute.xlu1 %2586 }
0x18fb   :  { %5354 = vmatmul.mubr.msk.f32.vlgmr.msra.gmra.mrb[32].mxu1 %vm218_vm1, %v2587_v34 }
0x18fc   :  { %5800 = vmatpush3.bf16.msra.mxu1 %v6240_v15  ;;  %5375 = vmatprep.mubr.msk.f32.mxu1 %vm6188_vm0, %v6189_v4 }
0x18fd   :  { %5801 = vmatprep.subr.bf16.mxu1 %v6187_v3 }
0x1900   :  { %5803 = vmatpush3.bf16.msra.mxu1 %v6252_v19 }
0x1901   :  { %5810 = vmatprep.subr.bf16.mxu1 %v6187_v3 }
0x19a6   :  { %v2556_v21 = vpop.f32.mrb[34].mxu0 }
0x19a7   :  { %v2560_v35 = vadd.f32 %v6475_v45, %v2556_v21  ;;  %v5344_v36 = vpop.f32.mrb[35].mxu0 }
0x19a9   :  { %6065 = vtanh.f32 %v2560_v35  ;;  %v4687_v59 = vmul.f32 -1.442695, %v2560_v35 }
0x19ae   :  { %v2726_v37 = vpop.f32.mrb[36].mxu0 }
0x19af   :  { %v5366_v38 = vpop.f32.mrb[37].mxu0 }
0x19b3   :  { %v6066_v40 = vpop.eup %6065 }
0x19b4   :  { %2570 = vrot.lane.b32.xlu0 %v6066_v40, %s6190_s25 }
0x19ce   :  { %v2656_v53 = vpop.f32.mrb[32].mxu1 }
0x19cf   :  { %v2727_v39 = vadd.f32 %v2726_v37, %v2656_v53  ;;  %v5355_v55 = vpop.f32.mrb[33].mxu1 }
0x19d1   :  { %v2730_v56 = vadd.f32 %v6706_v7, %v2727_v39 }
0x19d3   :  { %6067 = vtanh.f32 %v2730_v56  ;;  %v4690_v1 = vmul.f32 -1.442695, %v2730_v56 }
0x19d4   :  { %6069 = vpow2.f32 %v4687_v59 }
0x19dd   :  { %v6068_v57 = vpop.eup %6067 }
0x19de   :  { %2740 = vrot.lane.b32.xlu1 %v6068_v57, %s6190_s25  ;;  %v6070_v60 = vpop.eup %6069 }
0x19df   :  { %v2564_v45 = vadd.f32 1.0, %v6070_v60 }
0x19e1   :  { %6071 = vrcp.f32 %v2564_v45 }
0x19e2   :  { %6073 = vpow2.f32 %v4690_v1 }
0x19eb   :  { %v6072_v62 = vpop.eup %6071 }
0x19ec   :  { %v6074_v2 = vpop.eup %6073  ;;  %v2568_v46 = vmul.f32 %v6072_v62, %v6713_v26 }
0x19ed   :  { %v2734_v5 = vadd.f32 1.0, %v6074_v2 }
0x19ef   :  { %6075 = vrcp.f32 %v2734_v5 }
0x19f9   :  { %v6076_v6 = vpop.eup %6075 }
0x19fa   :  { %v2738_v13 = vmul.f32 %v6076_v6, %v6718_v30 }
0x1a26   :  { %v2571_v63 = vpop.permute.xlu0 %2570 }
0x1a27   :  { %v2573_v41 = vmul.f32 %v6072_v62, %v2571_v63 }
0x1a29   :  { %2575 = vrot.lane.b32.xlu0 %v2573_v41, %s6190_s25 }
0x1a50   :  { %v2741_v8 = vpop.permute.xlu1 %2740 }
0x1a51   :  { %v2743_v43 = vmul.f32 %v6076_v6, %v2741_v8 }
0x1a53   :  { %2745 = vrot.lane.b32.xlu1 %v2743_v43, %s6190_s25 }
0x1a9b   :  { %v2576_v10 = vpop.permute.xlu0 %2575 }
0x1a9c   :  { %v6752_v11 = vadd.f32 %v2576_v10, %v2568_v46 }
0x1a9e   :  { %6077 = vtanh.f32 %v6752_v11 }
0x1aa8   :  { %v6078_v12 = vpop.eup %6077 }
0x1aa9   :  { %2581 = vrot.lane.b32.xlu0 %v6078_v12, %s6190_s25 }
0x1ac5   :  { %v2746_v14 = vpop.permute.xlu1 %2745 }
0x1ac6   :  { %v6757_v17 = vadd.f32 %v2746_v14, %v2738_v13 }
0x1ac8   :  { %6079 = vtanh.f32 %v6757_v17 }
0x1ad2   :  { %v6080_v18 = vpop.eup %6079 }
0x1ad3   :  { %2751 = vrot.lane.b32.xlu1 %v6080_v18, %s6190_s25 }
0x1b1b   :  { %v2582_v20 = vpop.permute.xlu0 %2581 }
0x1b1c   :  { %v2584_v22 = vmul.f32 %v6072_v62, %v2582_v20 }
0x1b1e   :  { %2757 = vrot.lane.b32.xlu0 %v2584_v22, %s6191_s26 }
0x1b45   :  { %v2752_v23 = vpop.permute.xlu1 %2751 }
0x1b46   :  { %v2754_v24 = vmul.f32 %v6076_v6, %v2752_v23 }
0x1b48   :  { %2857 = vrot.lane.b32.xlu1 %v2754_v24, %s6191_s26 }
0x1b90   :  { %v2758_v25 = vpop.permute.xlu0 %2757 }
0x1b91   :  { %5376 = vmatmul.mubr.msk.f32.vlgmr.msra.gmra.mrb[34].mxu1 %vm218_vm1, %v2758_v25 }
0x1b92   :  { %5812 = vmatpush3.bf16.msra.mxu1 %v6331_v61  ;;  %5397 = vmatprep.mubr.msk.f32.mxu1 %vm6188_vm0, %v6189_v4 }
0x1b93   :  { %5813 = vmatprep.subr.bf16.mxu1 %v6187_v3 }
0x1b96   :  { %5815 = vmatpush3.bf16.msra.mxu1 %v6342_v0 }
0x1b97   :  { %5822 = vmatprep.subr.bf16.mxu1 %v6187_v3 }
0x1b99   :  { %5398 = vmatmul.mubr.msk.f32.vlgmr.msra.gmra.mrb[36].mxu1 %vm218_vm1, %v2758_v25 }
0x1b9a   :  { %5824 = vmatpush3.bf16.msra.mxu1 %v6309_v54  ;;  %5419 = vmatprep.mubr.msk.f32.mxu1 %vm6188_vm0, %v6189_v4 }
0x1b9b   :  { %5825 = vmatprep.subr.bf16.mxu1 %v6187_v3 }
0x1b9e   :  { %5827 = vmatpush3.bf16.msra.mxu1 %v6319_v58 }
0x1b9f   :  { %5834 = vmatprep.subr.bf16.mxu1 %v6187_v3 }
0x1bba   :  { %v2858_v42 = vpop.permute.xlu1 %2857 }
0x1bbb   :  { %5387 = vmatmul.mubr.msk.f32.vlgmr.msra.gmra.mrb[38].mxu0 %vm218_vm1, %v2858_v42 }
0x1bbc   :  { %5818 = vmatpush3.bf16.msra.mxu0 %v6240_v15  ;;  %5408 = vmatprep.mubr.msk.f32.mxu0 %vm6188_vm0, %v6189_v4 }
0x1bbd   :  { %5819 = vmatprep.subr.bf16.mxu0 %v6187_v3 }
0x1bc0   :  { %5821 = vmatpush3.bf16.msra.mxu0 %v6252_v19 }
0x1bc1   :  { %5828 = vmatprep.subr.bf16.mxu0 %v6187_v3 }
0x1c64   :  { %v2827_v26 = vpop.f32.mrb[34].mxu1 }
0x1c65   :  { %v2831_v27 = vadd.f32 %v2827_v26, %v6487_v48  ;;  %v5377_v28 = vpop.f32.mrb[35].mxu1 }
0x1c67   :  { %6081 = vtanh.f32 %v2831_v27  ;;  %v4692_v34 = vmul.f32 -1.442695, %v2831_v27 }
0x1c6c   :  { %v2997_v29 = vpop.f32.mrb[36].mxu1 }
0x1c6d   :  { %v5399_v30 = vpop.f32.mrb[37].mxu1 }
0x1c71   :  { %v6082_v31 = vpop.eup %6081 }
0x1c72   :  { %2841 = vrot.lane.b32.xlu0 %v6082_v31, %s6190_s25 }
0x1c8e   :  { %v2927_v9 = vpop.f32.mrb[38].mxu0 }
0x1c8f   :  { %v2998_v16 = vadd.f32 %v2997_v29, %v2927_v9  ;;  %v5388_v32 = vpop.f32.mrb[39].mxu0 }
0x1c91   :  { %v3001_v33 = vadd.f32 %v6706_v7, %v2998_v16 }
0x1c93   :  { %6083 = vtanh.f32 %v3001_v33  ;;  %v4695_v38 = vmul.f32 -1.442695, %v3001_v33 }
0x1c94   :  { %6085 = vpow2.f32 %v4692_v34 }
0x1c9d   :  { %v6084_v44 = vpop.eup %6083 }
0x1c9e   :  { %3011 = vrot.lane.b32.xlu1 %v6084_v44, %s6190_s25  ;;  %v6086_v21 = vpop.eup %6085 }
0x1c9f   :  { %v2835_v48 = vadd.f32 1.0, %v6086_v21 }
0x1ca1   :  { %6087 = vrcp.f32 %v2835_v48 }
0x1ca2   :  { %6089 = vpow2.f32 %v4695_v38 }
0x1cab   :  { %v6088_v35 = vpop.eup %6087 }
0x1cac   :  { %v6090_v40 = vpop.eup %6089  ;;  %v2839_v57 = vmul.f32 %v6088_v35, %v6752_v11 }
0x1cad   :  { %v3005_v53 = vadd.f32 1.0, %v6090_v40 }
0x1caf   :  { %6091 = vrcp.f32 %v3005_v53 }
0x1cb9   :  { %v6092_v39 = vpop.eup %6091 }
0x1cba   :  { %v3009_v62 = vmul.f32 %v6092_v39, %v6757_v17 }
0x1ce4   :  { %v2842_v36 = vpop.permute.xlu0 %2841 }
0x1ce5   :  { %v2844_v37 = vmul.f32 %v6088_v35, %v2842_v36 }
0x1ce7   :  { %2846 = vrot.lane.b32.xlu0 %v2844_v37, %s6190_s25 }
0x1d10   :  { %v3012_v55 = vpop.permute.xlu1 %3011 }
0x1d11   :  { %v3014_v56 = vmul.f32 %v6092_v39, %v3012_v55 }
0x1d13   :  { %3016 = vrot.lane.b32.xlu1 %v3014_v56, %s6190_s25 }
0x1d59   :  { %v2847_v59 = vpop.permute.xlu0 %2846 }
0x1d5a   :  { %v6791_v60 = vadd.f32 %v2847_v59, %v2839_v57 }
0x1d5c   :  { %6093 = vtanh.f32 %v6791_v60 }
0x1d66   :  { %v6094_v45 = vpop.eup %6093 }
0x1d67   :  { %2852 = vrot.lane.b32.xlu0 %v6094_v45, %s6190_s25 }
0x1d85   :  { %v3017_v63 = vpop.permute.xlu1 %3016 }
0x1d86   :  { %v6796_v41 = vadd.f32 %v3017_v63, %v3009_v62 }
0x1d88   :  { %6095 = vtanh.f32 %v6796_v41 }
0x1d92   :  { %v6096_v1 = vpop.eup %6095 }
0x1d93   :  { %3022 = vrot.lane.b32.xlu1 %v6096_v1, %s6190_s25 }
0x1dd9   :  { %v2853_v2 = vpop.permute.xlu0 %2852 }
0x1dda   :  { %v2855_v5 = vmul.f32 %v6088_v35, %v2853_v2 }
0x1ddc   :  { %3028 = vrot.lane.b32.xlu0 %v2855_v5, %s6191_s26 }
0x1e05   :  { %v3023_v6 = vpop.permute.xlu1 %3022 }
0x1e06   :  { %v3025_v8 = vmul.f32 %v6092_v39, %v3023_v6 }
0x1e08   :  { %3128 = vrot.lane.b32.xlu1 %v3025_v8, %s6191_s26 }
0x1e4e   :  { %v3029_v43 = vpop.permute.xlu0 %3028 }
0x1e4f   :  { %5409 = vmatmul.mubr.msk.f32.vlgmr.msra.gmra.mrb[40].mxu0 %vm218_vm1, %v3029_v43 }
0x1e50   :  { %5830 = vmatpush3.bf16.msra.mxu0 %v6331_v61  ;;  %5430 = vmatprep.mubr.msk.f32.mxu0 %vm6188_vm0, %v6189_v4 }
0x1e51   :  { %5831 = vmatprep.subr.bf16.mxu0 %v6187_v3 }
0x1e54   :  { %5833 = vmatpush3.bf16.msra.mxu0 %v6342_v0 }
0x1e55   :  { %5840 = vmatprep.subr.bf16.mxu0 %v6187_v3 }
0x1e57   :  { %5431 = vmatmul.mubr.msk.f32.vlgmr.msra.gmra.mrb[42].mxu0 %vm218_vm1, %v3029_v43 }
0x1e58   :  { %5842 = vmatpush3.bf16.msra.mxu0 %v6309_v54  ;;  %5452 = vmatprep.mubr.msk.f32.mxu0 %vm6188_vm0, %v6189_v4 }
0x1e59   :  { %5843 = vmatprep.subr.bf16.mxu0 %v6187_v3 }
0x1e5c   :  { %5845 = vmatpush3.bf16.msra.mxu0 %v6319_v58 }
0x1e5d   :  { %5852 = vmatprep.subr.bf16.mxu0 %v6187_v3 }
0x1e7a   :  { %v3129_v46 = vpop.permute.xlu1 %3128 }
0x1e7b   :  { %5420 = vmatmul.mubr.msk.f32.vlgmr.msra.gmra.mrb[38].mxu1 %vm218_vm1, %v3129_v46 }
0x1e7c   :  { %5836 = vmatpush3.bf16.msra.mxu1 %v6240_v15  ;;  %5441 = vmatprep.mubr.msk.f32.mxu1 %vm6188_vm0, %v6189_v4 }
0x1e7d   :  { %5837 = vmatprep.subr.bf16.mxu1 %v6187_v3 }
0x1e80   :  { %5839 = vmatpush3.bf16.msra.mxu1 %v6252_v19 }
0x1e81   :  { %5846 = vmatprep.subr.bf16.mxu1 %v6187_v3 }
0x1f22   :  { %v3098_v10 = vpop.f32.mrb[40].mxu0 }
0x1f23   :  { %v3102_v11 = vadd.f32 %v6484_v47, %v3098_v10  ;;  %v5410_v12 = vpop.f32.mrb[41].mxu0 }
0x1f25   :  { %6097 = vtanh.f32 %v3102_v11  ;;  %v4697_v25 = vmul.f32 -1.442695, %v3102_v11 }
0x1f2a   :  { %v3268_v13 = vpop.f32.mrb[42].mxu0 }
0x1f2b   :  { %v5432_v14 = vpop.f32.mrb[43].mxu0 }
0x1f2f   :  { %v6098_v17 = vpop.eup %6097 }
0x1f30   :  { %3112 = vrot.lane.b32.xlu0 %v6098_v17, %s6190_s25 }
0x1f4e   :  { %v3198_v18 = vpop.f32.mrb[38].mxu1 }
0x1f4f   :  { %v3269_v20 = vadd.f32 %v3268_v13, %v3198_v18  ;;  %v5421_v22 = vpop.f32.mrb[39].mxu1 }
0x1f51   :  { %v3272_v23 = vadd.f32 %v6706_v7, %v3269_v20 }
0x1f53   :  { %6099 = vtanh.f32 %v3272_v23  ;;  %v4700_v29 = vmul.f32 -1.442695, %v3272_v23 }
0x1f54   :  { %6101 = vpow2.f32 %v4697_v25 }
0x1f5d   :  { %v6100_v24 = vpop.eup %6099 }
0x1f5e   :  { %3282 = vrot.lane.b32.xlu1 %v6100_v24, %s6190_s25  ;;  %v6102_v42 = vpop.eup %6101 }
0x1f5f   :  { %v3106_v47 = vadd.f32 1.0, %v6102_v42 }
0x1f61   :  { %6103 = vrcp.f32 %v3106_v47 }
0x1f62   :  { %6105 = vpow2.f32 %v4700_v29 }
0x1f6b   :  { %v6104_v26 = vpop.eup %6103 }
0x1f6c   :  { %v6106_v30 = vpop.eup %6105  ;;  %v3110_v33 = vmul.f32 %v6104_v26, %v6791_v60 }
0x1f6d   :  { %v3276_v31 = vadd.f32 1.0, %v6106_v30 }
0x1f6f   :  { %6107 = vrcp.f32 %v3276_v31 }
0x1f79   :  { %v6108_v9 = vpop.eup %6107 }
0x1f7a   :  { %v3280_v48 = vmul.f32 %v6108_v9, %v6796_v41 }
0x1fa2   :  { %v3113_v27 = vpop.permute.xlu0 %3112 }
0x1fa3   :  { %v3115_v28 = vmul.f32 %v6104_v26, %v3113_v27 }
0x1fa5   :  { %3117 = vrot.lane.b32.xlu0 %v3115_v28, %s6190_s25 }
0x1fd0   :  { %v3283_v16 = vpop.permute.xlu1 %3282 }
0x1fd1   :  { %v3285_v32 = vmul.f32 %v6108_v9, %v3283_v16 }
0x1fd3   :  { %3287 = vrot.lane.b32.xlu1 %v3285_v32, %s6190_s25 }
0x2017   :  { %v3118_v44 = vpop.permute.xlu0 %3117 }
0x2018   :  { %v6830_v34 = vadd.f32 %v3118_v44, %v3110_v33 }
0x201a   :  { %6109 = vtanh.f32 %v6830_v34 }
0x2024   :  { %v6110_v21 = vpop.eup %6109 }
0x2025   :  { %3123 = vrot.lane.b32.xlu0 %v6110_v21, %s6190_s25 }
0x2045   :  { %v3288_v35 = vpop.permute.xlu1 %3287 }
0x2046   :  { %v6835_v36 = vadd.f32 %v3288_v35, %v3280_v48 }
0x2048   :  { %6111 = vtanh.f32 %v6835_v36 }
0x2052   :  { %v6112_v37 = vpop.eup %6111 }
0x2053   :  { %3293 = vrot.lane.b32.xlu1 %v6112_v37, %s6190_s25 }
0x2097   :  { %v3124_v38 = vpop.permute.xlu0 %3123 }
0x2098   :  { %v3126_v40 = vmul.f32 %v6104_v26, %v3124_v38 }
0x209a   :  { %3299 = vrot.lane.b32.xlu0 %v3126_v40, %s6191_s26 }
0x20c5   :  { %v3294_v53 = vpop.permute.xlu1 %3293 }
0x20c6   :  { %v3296_v39 = vmul.f32 %v6108_v9, %v3294_v53 }
0x20c8   :  { %3399 = vrot.lane.b32.xlu1 %v3296_v39, %s6191_s26 }
0x210c   :  { %v3300_v55 = vpop.permute.xlu0 %3299 }
0x210d   :  { %5442 = vmatmul.mubr.msk.f32.vlgmr.msra.gmra.mrb[40].mxu1 %vm218_vm1, %v3300_v55 }
0x210e   :  { %5848 = vmatpush3.bf16.msra.mxu1 %v6331_v61  ;;  %5463 = vmatprep.mubr.msk.f32.mxu1 %vm6188_vm0, %v6189_v4 }
0x210f   :  { %5849 = vmatprep.subr.bf16.mxu1 %v6187_v3 }
0x2112   :  { %5851 = vmatpush3.bf16.msra.mxu1 %v6342_v0 }
0x2113   :  { %5858 = vmatprep.subr.bf16.mxu1 %v6187_v3 }
0x2115   :  { %5464 = vmatmul.mubr.msk.f32.vlgmr.msra.gmra.mrb[42].mxu1 %vm218_vm1, %v3300_v55 }
0x2116   :  { %5860 = vmatpush3.bf16.msra.mxu1 %v6309_v54  ;;  %5485 = vmatprep.mubr.msk.f32.mxu1 %vm6188_vm0, %v6189_v4 }
0x2117   :  { %5861 = vmatprep.subr.bf16.mxu1 %v6187_v3 }
0x211a   :  { %5863 = vmatpush3.bf16.msra.mxu1 %v6319_v58 }
0x211b   :  { %5870 = vmatprep.subr.bf16.mxu1 %v6187_v3 }
0x213a   :  { %v3400_v56 = vpop.permute.xlu1 %3399 }
0x213b   :  { %5453 = vmatmul.mubr.msk.f32.vlgmr.msra.gmra.mrb[44].mxu0 %vm218_vm1, %v3400_v56 }
0x213c   :  { %5854 = vmatpush3.bf16.msra.mxu0 %v6240_v15  ;;  %5474 = vmatprep.mubr.msk.f32.mxu0 %vm6188_vm0, %v6189_v4 }
0x213d   :  { %5855 = vmatprep.subr.bf16.mxu0 %v6187_v3 }
0x2140   :  { %5857 = vmatpush3.bf16.msra.mxu0 %v6252_v19 }
0x2141   :  { %5864 = vmatprep.subr.bf16.mxu0 %v6187_v3 }
0x21e0   :  { %v3369_v57 = vpop.f32.mrb[40].mxu1 }
0x21e1   :  { %v3373_v59 = vadd.f32 %v3369_v57, %v6493_v50  ;;  %v5443_v60 = vpop.f32.mrb[41].mxu1 }
0x21e3   :  { %6113 = vtanh.f32 %v3373_v59  ;;  %v4702_v8 = vmul.f32 -1.442695, %v3373_v59 }
0x21e8   :  { %v3539_v45 = vpop.f32.mrb[42].mxu1 }
0x21e9   :  { %v5465_v62 = vpop.f32.mrb[43].mxu1 }
0x21ed   :  { %v6114_v63 = vpop.eup %6113 }
0x21ee   :  { %3383 = vrot.lane.b32.xlu0 %v6114_v63, %s6190_s25 }
0x220e   :  { %v3469_v41 = vpop.f32.mrb[44].mxu0 }
0x220f   :  { %v3540_v1 = vadd.f32 %v3539_v45, %v3469_v41  ;;  %v5454_v2 = vpop.f32.mrb[45].mxu0 }
0x2211   :  { %v3543_v5 = vadd.f32 %v6706_v7, %v3540_v1 }
0x2213   :  { %6115 = vtanh.f32 %v3543_v5  ;;  %v4705_v12 = vmul.f32 -1.442695, %v3543_v5 }
0x2214   :  { %6117 = vpow2.f32 %v4702_v8 }
0x221d   :  { %v6116_v6 = vpop.eup %6115 }
0x221e   :  { %3553 = vrot.lane.b32.xlu1 %v6116_v6, %s6190_s25  ;;  %v6118_v43 = vpop.eup %6117 }
0x221f   :  { %v3377_v50 = vadd.f32 1.0, %v6118_v43 }
0x2221   :  { %6119 = vrcp.f32 %v3377_v50 }
0x2222   :  { %6121 = vpow2.f32 %v4705_v12 }
0x222b   :  { %v6120_v46 = vpop.eup %6119 }
0x222c   :  { %v6122_v13 = vpop.eup %6121  ;;  %v3381_v22 = vmul.f32 %v6120_v46, %v6830_v34 }
0x222d   :  { %v3547_v14 = vadd.f32 1.0, %v6122_v13 }
0x222f   :  { %6123 = vrcp.f32 %v3547_v14 }
0x2239   :  { %v6124_v17 = vpop.eup %6123 }
0x223a   :  { %v3551_v42 = vmul.f32 %v6124_v17, %v6835_v36 }
0x2260   :  { %v3384_v10 = vpop.permute.xlu0 %3383 }
0x2261   :  { %v3386_v11 = vmul.f32 %v6120_v46, %v3384_v10 }
0x2263   :  { %3388 = vrot.lane.b32.xlu0 %v3386_v11, %s6190_s25 }
0x2290   :  { %v3554_v18 = vpop.permute.xlu1 %3553 }
0x2291   :  { %v3556_v20 = vmul.f32 %v6124_v17, %v3554_v18 }
0x2293   :  { %3558 = vrot.lane.b32.xlu1 %v3556_v20, %s6190_s25 }
0x22d5   :  { %v3389_v23 = vpop.permute.xlu0 %3388 }
0x22d6   :  { %v6869_v24 = vadd.f32 %v3389_v23, %v3381_v22 }
0x22d8   :  { %6125 = vtanh.f32 %v6869_v24 }
0x22e2   :  { %v6126_v25 = vpop.eup %6125 }
0x22e3   :  { %3394 = vrot.lane.b32.xlu0 %v6126_v25, %s6190_s25 }
0x2305   :  { %v3559_v47 = vpop.permute.xlu1 %3558 }
0x2306   :  { %v6874_v26 = vadd.f32 %v3559_v47, %v3551_v42 }
0x2308   :  { %6127 = vtanh.f32 %v6874_v26 }
0x2312   :  { %v6128_v27 = vpop.eup %6127 }
0x2313   :  { %3564 = vrot.lane.b32.xlu1 %v6128_v27, %s6190_s25 }
0x2355   :  { %v3395_v28 = vpop.permute.xlu0 %3394 }
0x2356   :  { %v3397_v29 = vmul.f32 %v6120_v46, %v3395_v28 }
0x2358   :  { %3570 = vrot.lane.b32.xlu0 %v3397_v29, %s6191_s26 }
0x2385   :  { %v3565_v30 = vpop.permute.xlu1 %3564 }
0x2386   :  { %v3567_v31 = vmul.f32 %v6124_v17, %v3565_v30 }
0x2388   :  { %3670 = vrot.lane.b32.xlu1 %v3567_v31, %s6191_s26 }
0x23ca   :  { %v3571_v9 = vpop.permute.xlu0 %3570 }
0x23cb   :  { %5475 = vmatmul.mubr.msk.f32.vlgmr.msra.gmra.mrb[46].mxu0 %vm218_vm1, %v3571_v9 }
0x23cc   :  { %5866 = vmatpush3.bf16.msra.mxu0 %v6331_v61  ;;  %5496 = vmatprep.mubr.msk.f32.mxu0 %vm6188_vm0, %v6189_v4 }
0x23cd   :  { %5867 = vmatprep.subr.bf16.mxu0 %v6187_v3 }
0x23d0   :  { %5869 = vmatpush3.bf16.msra.mxu0 %v6342_v0 }
0x23d1   :  { %5876 = vmatprep.subr.bf16.mxu0 %v6187_v3 }
0x23d3   :  { %5497 = vmatmul.mubr.msk.f32.vlgmr.msra.gmra.mrb[48].mxu0 %vm218_vm1, %v3571_v9 }
0x23d4   :  { %5878 = vmatpush3.bf16.msra.mxu0 %v6309_v54  ;;  %5518 = vmatprep.mubr.msk.f32.mxu0 %vm6188_vm0, %v6189_v4 }
0x23d5   :  { %5879 = vmatprep.subr.bf16.mxu0 %v6187_v3 }
0x23d8   :  { %5881 = vmatpush3.bf16.msra.mxu0 %v6319_v58 }
0x23d9   :  { %5888 = vmatprep.subr.bf16.mxu0 %v6187_v3 }
0x23fa   :  { %v3671_v16 = vpop.permute.xlu1 %3670 }
0x23fb   :  { %5486 = vmatmul.mubr.msk.f32.vlgmr.msra.gmra.mrb[44].mxu1 %vm218_vm1, %v3671_v16 }
0x23fc   :  { %5872 = vmatpush3.bf16.msra.mxu1 %v6240_v15  ;;  %5507 = vmatprep.mubr.msk.f32.mxu1 %vm6188_vm0, %v6189_v4 }
0x23fd   :  { %5873 = vmatprep.subr.bf16.mxu1 %v6187_v3 }
0x2400   :  { %5875 = vmatpush3.bf16.msra.mxu1 %v6252_v19 }
0x2401   :  { %5882 = vmatprep.subr.bf16.mxu1 %v6187_v3 }
0x249e   :  { %v3640_v32 = vpop.f32.mrb[46].mxu0 }
0x249f   :  { %v3644_v33 = vadd.f32 %v6490_v49, %v3640_v32  ;;  %v5476_v44 = vpop.f32.mrb[47].mxu0 }
0x24a1   :  { %6129 = vtanh.f32 %v3644_v33  ;;  %v4707_v53 = vmul.f32 -1.442695, %v3644_v33 }
0x24a6   :  { %v3810_v34 = vpop.f32.mrb[48].mxu0 }
0x24a7   :  { %v5498_v21 = vpop.f32.mrb[49].mxu0 }
0x24ab   :  { %v6130_v48 = vpop.eup %6129 }
0x24ac   :  { %3654 = vrot.lane.b32.xlu0 %v6130_v48, %s6190_s25 }
0x24ce   :  { %v3740_v35 = vpop.f32.mrb[44].mxu1 }
0x24cf   :  { %v3811_v36 = vadd.f32 %v3810_v34, %v3740_v35  ;;  %v5487_v37 = vpop.f32.mrb[45].mxu1 }
0x24d1   :  { %v3814_v38 = vadd.f32 %v6706_v7, %v3811_v36 }
0x24d3   :  { %6131 = vtanh.f32 %v3814_v38  ;;  %v4710_v59 = vmul.f32 -1.442695, %v3814_v38 }
0x24d4   :  { %6133 = vpow2.f32 %v4707_v53 }
0x24dd   :  { %v6132_v40 = vpop.eup %6131 }
0x24de   :  { %3824 = vrot.lane.b32.xlu1 %v6132_v40, %s6190_s25  ;;  %v6134_v39 = vpop.eup %6133 }
0x24df   :  { %v3648_v49 = vadd.f32 1.0, %v6134_v39 }
0x24e1   :  { %6135 = vrcp.f32 %v3648_v49 }
0x24e2   :  { %6137 = vpow2.f32 %v4710_v59 }
0x24eb   :  { %v6136_v55 = vpop.eup %6135 }
0x24ec   :  { %v6138_v60 = vpop.eup %6137  ;;  %v3652_v1 = vmul.f32 %v6136_v55, %v6869_v24 }
0x24ed   :  { %v3818_v45 = vadd.f32 1.0, %v6138_v60 }
0x24ef   :  { %6139 = vrcp.f32 %v3818_v45 }
0x24f9   :  { %v6140_v62 = vpop.eup %6139 }
0x24fa   :  { %v3822_v8 = vmul.f32 %v6140_v62, %v6874_v26 }
0x251e   :  { %v3655_v56 = vpop.permute.xlu0 %3654 }
0x251f   :  { %v3657_v57 = vmul.f32 %v6136_v55, %v3655_v56 }
0x2521   :  { %3659 = vrot.lane.b32.xlu0 %v3657_v57, %s6190_s25 }
0x2550   :  { %v3825_v63 = vpop.permute.xlu1 %3824 }
0x2551   :  { %v3827_v41 = vmul.f32 %v6140_v62, %v3825_v63 }
0x2553   :  { %3829 = vrot.lane.b32.xlu1 %v3827_v41, %s6190_s25 }
0x2593   :  { %v3660_v2 = vpop.permute.xlu0 %3659 }
0x2594   :  { %v6908_v5 = vadd.f32 %v3660_v2, %v3652_v1 }
0x2596   :  { %6141 = vtanh.f32 %v6908_v5 }
0x25a0   :  { %v6142_v6 = vpop.eup %6141 }
0x25a1   :  { %3665 = vrot.lane.b32.xlu0 %v6142_v6, %s6190_s25 }
0x25c5   :  { %v3830_v43 = vpop.permute.xlu1 %3829 }
0x25c6   :  { %v6913_v50 = vadd.f32 %v3830_v43, %v3822_v8 }
0x25c8   :  { %6143 = vtanh.f32 %v6913_v50 }
0x25d2   :  { %v6144_v46 = vpop.eup %6143 }
0x25d3   :  { %3835 = vrot.lane.b32.xlu1 %v6144_v46, %s6190_s25 }
0x2613   :  { %v3666_v10 = vpop.permute.xlu0 %3665 }
0x2614   :  { %v3668_v11 = vmul.f32 %v6136_v55, %v3666_v10 }
0x2616   :  { %3841 = vrot.lane.b32.xlu0 %v3668_v11, %s6191_s26 }
0x2645   :  { %v3836_v12 = vpop.permute.xlu1 %3835 }
0x2646   :  { %v3838_v13 = vmul.f32 %v6140_v62, %v3836_v12 }
0x2648   :  { %3941 = vrot.lane.b32.xlu1 %v3838_v13, %s6191_s26 }
0x2688   :  { %v3842_v14 = vpop.permute.xlu0 %3841 }
0x2689   :  { %5508 = vmatmul.mubr.msk.f32.vlgmr.msra.gmra.mrb[46].mxu1 %vm218_vm1, %v3842_v14 }
0x268a   :  { %5884 = vmatpush3.bf16.msra.mxu1 %v6331_v61  ;;  %5529 = vmatprep.mubr.msk.f32.mxu1 %vm6188_vm0, %v6189_v4 }
0x268b   :  { %5885 = vmatprep.subr.bf16.mxu1 %v6187_v3 }
0x268e   :  { %5887 = vmatpush3.bf16.msra.mxu1 %v6342_v0 }
0x268f   :  { %5894 = vmatprep.subr.bf16.mxu1 %v6187_v3 }
0x2691   :  { %5530 = vmatmul.mubr.msk.f32.vlgmr.msra.gmra.mrb[48].mxu1 %vm218_vm1, %v3842_v14 }
0x2692   :  { %5896 = vmatpush3.bf16.msra.mxu1 %v6309_v54  ;;  %5551 = vmatprep.mubr.msk.f32.mxu1 %vm6188_vm0, %v6189_v4 }
0x2693   :  { %5897 = vmatprep.subr.bf16.mxu1 %v6187_v3 }
0x2696   :  { %5899 = vmatpush3.bf16.msra.mxu1 %v6319_v58 }
0x2697   :  { %5906 = vmatprep.subr.bf16.mxu1 %v6187_v3 }
0x26ba   :  { %v3942_v17 = vpop.permute.xlu1 %3941 }
0x26bb   :  { %5519 = vmatmul.mubr.msk.f32.vlgmr.msra.gmra.mrb[50].mxu0 %vm218_vm1, %v3942_v17 }
0x26bc   :  { %5890 = vmatpush3.bf16.msra.mxu0 %v6240_v15  ;;  %5540 = vmatprep.mubr.msk.f32.mxu0 %vm6188_vm0, %v6189_v4 }
0x26bd   :  { %5891 = vmatprep.subr.bf16.mxu0 %v6187_v3 }
0x26c0   :  { %5893 = vmatpush3.bf16.msra.mxu0 %v6252_v19 }
0x26c1   :  { %5900 = vmatprep.subr.bf16.mxu0 %v6187_v3 }
0x275c   :  { %v3911_v18 = vpop.f32.mrb[46].mxu1 }
0x275d   :  { %v3915_v20 = vadd.f32 %v3911_v18, %v6497_v52  ;;  %v5509_v22 = vpop.f32.mrb[47].mxu1 }
0x275f   :  { %6145 = vtanh.f32 %v3915_v20  ;;  %v4712_v19 = vmul.f32 -1.442695, %v3915_v20 }
0x2764   :  { %v4081_v23 = vpop.f32.mrb[48].mxu1 }
0x2765   :  { %v5531_v24 = vpop.f32.mrb[49].mxu1 }
0x2769   :  { %v6146_v25 = vpop.eup %6145 }
0x276a   :  { %3925 = vrot.lane.b32.xlu0 %v6146_v25, %s6190_s25 }
0x278e   :  { %v4011_v15 = vpop.f32.mrb[50].mxu0 }
0x278f   :  { %v4082_v42 = vadd.f32 %v4081_v23, %v4011_v15  ;;  %v5520_v47 = vpop.f32.mrb[51].mxu0 }
0x2791   :  { %v4085_v26 = vadd.f32 %v6706_v7, %v4082_v42 }
0x2793   :  { %6147 = vtanh.f32 %v4085_v26  ;;  %v4715_v9 = vmul.f32 -1.442695, %v4085_v26 }
0x2794   :  { %6149 = vpow2.f32 %v4712_v19 }
0x279d   :  { %v6148_v27 = vpop.eup %6147 }
0x279e   :  { %4095 = vrot.lane.b32.xlu1 %v6148_v27, %s6190_s25  ;;  %v6150_v28 = vpop.eup %6149 }
0x279f   :  { %v3919_v52 = vadd.f32 1.0, %v6150_v28 }
0x27a1   :  { %6151 = vrcp.f32 %v3919_v52 }
0x27a2   :  { %6153 = vpow2.f32 %v4715_v9  ;;  %v6186_v9 = vld [vmem:[%s7021_s1 + $0xe0] ss:$0 sm:$0xff] }
0x27ab   :  { %v6152_v29 = vpop.eup %6151 }
0x27ac   :  { %v6154_v16 = vpop.eup %6153  ;;  %v3923_v21 = vmul.f32 %v6152_v29, %v6908_v5 }
0x27ad   :  { %v4089_v32 = vadd.f32 1.0, %v6154_v16 }
0x27af   :  { %6155 = vrcp.f32 %v4089_v32 }
0x27b9   :  { %v6156_v33 = vpop.eup %6155 }
0x27ba   :  { %v4093_v37 = vmul.f32 %v6156_v33, %v6913_v50 }
0x27dc   :  { %v3926_v30 = vpop.permute.xlu0 %3925 }
0x27dd   :  { %v3928_v31 = vmul.f32 %v6152_v29, %v3926_v30 }
0x27df   :  { %3930 = vrot.lane.b32.xlu0 %v3928_v31, %s6190_s25 }
0x2810   :  { %v4096_v44 = vpop.permute.xlu1 %4095 }
0x2811   :  { %v4098_v34 = vmul.f32 %v6156_v33, %v4096_v44 }
0x2813   :  { %4100 = vrot.lane.b32.xlu1 %v4098_v34, %s6190_s25 }
0x2851   :  { %v3931_v48 = vpop.permute.xlu0 %3930 }
0x2852   :  { %v6947_v35 = vadd.f32 %v3931_v48, %v3923_v21 }
0x2854   :  { %6157 = vtanh.f32 %v6947_v35 }
0x285e   :  { %v6158_v36 = vpop.eup %6157 }
0x285f   :  { %3936 = vrot.lane.b32.xlu0 %v6158_v36, %s6190_s25 }
0x2885   :  { %v4101_v38 = vpop.permute.xlu1 %4100 }
0x2886   :  { %v6952_v40 = vadd.f32 %v4101_v38, %v4093_v37  ;;  %v4556_v38 = vld [vmem:[%s7021_s1 + $0xe8] sm:$0xff] }
0x2888   :  { %6159 = vtanh.f32 %v6952_v40 }
0x2892   :  { %v6160_v53 = vpop.eup %6159 }
0x2893   :  { %4106 = vrot.lane.b32.xlu1 %v6160_v53, %s6190_s25  ;;  %v4558_v53 = vld [vmem:[%s7021_s1 + $0xf8] sm:$0xff] }
0x28d1   :  { %v3937_v39 = vpop.permute.xlu0 %3936 }
0x28d2   :  { %v3939_v49 = vmul.f32 %v6152_v29, %v3937_v39 }
0x28d4   :  { %4112 = vrot.lane.b32.xlu0 %v3939_v49, %s6191_s26  ;;  %v4559_v49 = vld [vmem:[%s7021_s1 + $0x100] sm:$0xff] }
0x2905   :  { %v4107_v55 = vpop.permute.xlu1 %4106 }
0x2906   :  { %v4109_v56 = vmul.f32 %v6156_v33, %v4107_v55  ;;  %v5922_v55 = vpack.c.bf16 %v4559_v49, %v4558_v53 }
0x2908   :  { %4212 = vrot.lane.b32.xlu1 %v4109_v56, %s6191_s26 }
0x2946   :  { %v4113_v57 = vpop.permute.xlu0 %4112 }
0x2947   :  { %5541 = vmatmul.mubr.msk.f32.vlgmr.msra.gmra.mrb[52].mxu0 %vm218_vm1, %v4113_v57 }
0x2948   :  { %5902 = vmatpush3.bf16.msra.mxu0 %v6331_v61  ;;  %5562 = vmatprep.mubr.msk.f32.mxu0 %vm6188_vm0, %v6189_v4 }
0x2949   :  { %5903 = vmatprep.subr.bf16.mxu0 %v6187_v3 }
0x294c   :  { %5905 = vmatpush3.bf16.msra.mxu0 %v6342_v0 }
0x294d   :  { %5912 = vmatprep.subr.bf16.mxu0 %v6187_v3 }
0x294f   :  { %5563 = vmatmul.mubr.msk.f32.vlgmr.msra.gmra.mrb[54].mxu0 %vm218_vm1, %v4113_v57 }
0x2950   :  { %5914 = vmatpush3.bf16.msra.mxu0 %v6331_v61  ;;  %5584 = vmatprep.mubr.msk.f32.mxu0 %vm6188_vm0, %v6189_v4 }
0x2951   :  { %5915 = vmatprep.subr.bf16.mxu0 %v6187_v3 }
0x2954   :  { %5917 = vmatpush3.bf16.msra.mxu0 %v6342_v0 }
0x297a   :  { %v4213_v59 = vpop.permute.xlu1 %4212 }
0x297b   :  { %5552 = vmatmul.mubr.msk.f32.vlgmr.msra.gmra.mrb[50].mxu1 %vm218_vm1, %v4213_v59 }
0x297c   :  { %5908 = vmatpush3.bf16.msra.mxu1 %v6309_v54  ;;  %5573 = vmatprep.mubr.msk.f32.mxu1 %vm6188_vm0, %v6189_v4 }
0x297d   :  { %5909 = vmatprep.subr.bf16.mxu1 %v6187_v3 }
0x2980   :  { %5911 = vmatpush3.bf16.msra.mxu1 %v6319_v58 }
0x2981   :  { %5918 = vmatprep.subr.bf16.mxu1 %v6187_v3 }
0x2a1a   :  { %v4182_v61 = vpop.f32.mrb[52].mxu0 }
0x2a1b   :  { %v4186_v60 = vadd.f32 %v6495_v51, %v4182_v61  ;;  %v5542_v45 = vpop.f32.mrb[53].mxu0 }
0x2a1d   :  { %6161 = vtanh.f32 %v4186_v60  ;;  %v4717_v58 = vmul.f32 -1.442695, %v4186_v60  ;;  %v4724_v60 = vld [vmem:[%s7021_s1 + $0x108] ss:$0 sm:$0xff] }
0x2a22   :  { %v4352_v0 = vpop.f32.mrb[54].mxu0 }
0x2a23   :  { %v5564_v62 = vpop.f32.mrb[55].mxu0 }
0x2a27   :  { %v6162_v63 = vpop.eup %6161 }
0x2a28   :  { %4196 = vrot.lane.b32.xlu0 %v6162_v63, %s6190_s25 }
0x2a4e   :  { %v4282_v54 = vpop.f32.mrb[50].mxu1 }
0x2a4f   :  { %v4353_v41 = vadd.f32 %v4352_v0, %v4282_v54  ;;  %v5553_v1 = vpop.f32.mrb[51].mxu1 }
0x2a51   :  { %v4356_v2 = vadd.f32 %v6706_v7, %v4353_v41 }
0x2a53   :  { %6163 = vtanh.f32 %v4356_v2  ;;  %v4720_v46 = vmul.f32 -1.442695, %v4356_v2 }
0x2a54   :  { %6165 = vpow2.f32 %v4717_v58 }
0x2a5d   :  { %v6164_v5 = vpop.eup %6163 }
0x2a5e   :  { %4366 = vrot.lane.b32.xlu1 %v6164_v5, %s6190_s25  ;;  %v6166_v6 = vpop.eup %6165 }
0x2a5f   :  { %v4190_v51 = vadd.f32 1.0, %v6166_v6 }
0x2a61   :  { %6167 = vrcp.f32 %v4190_v51 }
0x2a62   :  { %6169 = vpow2.f32 %v4720_v46 }
0x2a6b   :  { %v6168_v8 = vpop.eup %6167 }
0x2a6c   :  { %v6170_v10 = vpop.eup %6169  ;;  %v4194_v14 = vmul.f32 %v6168_v8, %v6947_v35 }
0x2a6d   :  { %v4360_v11 = vadd.f32 1.0, %v6170_v10 }
0x2a6f   :  { %6171 = vrcp.f32 %v4360_v11 }
0x2a79   :  { %v6172_v7 = vpop.eup %6171 }
0x2a7a   :  { %v4364_v22 = vmul.f32 %v6172_v7, %v6952_v40  ;;  %v4557_v40 = vld [vmem:[%s7021_s1 + $0xf0] sm:$0xff] }
0x2a7b   :  { %v5919_v39 = vpack.c.bf16 %v4557_v40, %v4556_v38 }
0x2a9a   :  { %v4197_v43 = vpop.permute.xlu0 %4196 }
0x2a9b   :  { %v4199_v50 = vmul.f32 %v6168_v8, %v4197_v43 }
0x2a9d   :  { %4201 = vrot.lane.b32.xlu0 %v4199_v50, %s6190_s25 }
0x2ad0   :  { %v4367_v12 = vpop.permute.xlu1 %4366 }
0x2ad1   :  { %v4369_v13 = vmul.f32 %v6172_v7, %v4367_v12 }
0x2ad3   :  { %4371 = vrot.lane.b32.xlu1 %v4369_v13, %s6190_s25 }
0x2b0f   :  { %v4202_v17 = vpop.permute.xlu0 %4201 }
0x2b10   :  { %v4204_v18 = vadd.f32 %v4202_v17, %v4194_v14 }
0x2b12   :  { %6173 = vtanh.f32 %v4204_v18 }
0x2b1c   :  { %v6174_v20 = vpop.eup %6173 }
0x2b1d   :  { %4207 = vrot.lane.b32.xlu0 %v6174_v20, %s6190_s25 }
0x2b45   :  { %v4372_v23 = vpop.permute.xlu1 %4371 }
0x2b46   :  { %v4374_v24 = vadd.f32 %v4372_v23, %v4364_v22 }
0x2b48   :  { %6175 = vtanh.f32 %v4374_v24 }
0x2b52   :  { %v6176_v25 = vpop.eup %6175 }
0x2b53   :  { %4377 = vrot.lane.b32.xlu1 %v6176_v25, %s6190_s25 }
0x2b8f   :  { %v4208_v15 = vpop.permute.xlu0 %4207 }
0x2b90   :  { %v4210_v42 = vmul.f32 %v6168_v8, %v4208_v15 }
0x2b92   :  { %4457 = vrot.lane.b32.xlu1 %v4210_v42, %s6191_s26 }
0x2bc5   :  { %v4378_v47 = vpop.permute.xlu1 %4377 }
0x2bc6   :  { %v4380_v26 = vmul.f32 %v6172_v7, %v4378_v47 }
0x2bc8   :  { %4382 = vrot.lane.b32.xlu0 %v4380_v26, %s6191_s26 }
0x2c04   :  { %v4458_v27 = vpop.permute.xlu1 %4457 }
0x2c05   :  { %5585 = vmatmul.mubr.msk.f32.vlgmr.msra.gmra.mrb[56].mxu0 %vm218_vm1, %v4458_v27 }
0x2c3a   :  { %v4383_v19 = vpop.permute.xlu0 %4382 }
0x2c3b   :  { %5574 = vmatmul.mubr.msk.f32.vlgmr.msra.gmra.mrb[52].mxu1 %vm218_vm1, %v4383_v19 }
0x2c3c   :  { %5595 = vmatprep.mubr.msk.f32.mxu1 %vm6188_vm0, %v6189_v4  ;;  %5920 = vmatpush3.bf16.msra.mxu1 %v5919_v39 }
0x2c3d   :  { %5921 = vmatprep.subr.bf16.mxu1 %v6187_v3 }
0x2c40   :  { %5923 = vmatpush3.bf16.msra.mxu1 %v5922_v55 }
0x2cd8   :  { %v4527_v28 = vpop.f32.mrb[56].mxu0 }
0x2cd9   :  { %v5586_v52 = vpop.f32.mrb[57].mxu0 }
0x2d0e   :  { %v4452_v29 = vpop.f32.mrb[52].mxu1 }
0x2d0f   :  { %v4528_v30 = vadd.f32 %v4527_v28, %v4452_v29  ;;  %v5575_v31 = vpop.f32.mrb[53].mxu1 }
0x2d11   :  { %v4531_v16 = vadd.f32 %v6186_v9, %v4528_v30 }
0x2d13   :  { %6177 = vtanh.f32 %v4531_v16  ;;  %v4723_v33 = vmul.f32 -1.442695, %v4531_v16 }
0x2d15   :  { %6179 = vpow2.f32 %v4723_v33 }
0x2d1d   :  { %v6178_v32 = vpop.eup %6177 }
0x2d1e   :  { %4541 = vrot.lane.b32.xlu0 %v6178_v32, %s6190_s25 }
0x2d1f   :  { %v6180_v44 = vpop.eup %6179 }
0x2d20   :  { %v4535_v34 = vadd.f32 1.0, %v6180_v44 }
0x2d22   :  { %6181 = vrcp.f32 %v4535_v34 }
0x2d2c   :  { %v6182_v4 = vpop.eup %6181 }
0x2d2d   :  { %v4539_v35 = vmul.f32 %v6182_v4, %v4374_v24 }
0x2d90   :  { %v4542_v21 = vpop.permute.xlu0 %4541 }
0x2d91   :  { %v4544_v48 = vmul.f32 %v6182_v4, %v4542_v21 }
0x2d93   :  { %4546 = vrot.lane.b32.xlu1 %v4544_v48, %s6190_s25 }
0x2e05   :  { %v4547_v36 = vpop.permute.xlu1 %4546 }
0x2e06   :  { %v4549_v37 = vadd.f32 %v4547_v36, %v4539_v35 }
0x2e08   :  { %6183 = vtanh.f32 %v4549_v37 }
0x2e12   :  { %v6184_v56 = vpop.eup %6183 }
0x2e13   :  { %4552 = vrot.lane.b32.xlu0 %v6184_v56, %s6190_s25 }
0x2e85   :  { %v4553_v57 = vpop.permute.xlu0 %4552 }
0x2e86   :  { %v4555_v59 = vmul.f32 %v6182_v4, %v4553_v57 }
0x2e88   :  { %4566 = vrot.lane.b32.xlu1 %v4555_v59, %s6191_s26 }
0x2efa   :  { %v4567_v61 = vpop.permute.xlu1 %4566 }
0x2efb   :  { %5596 = vmatmul.mubr.msk.f32.vlgmr.msra.gmra.mrb[54].mxu1 %vm218_vm1, %v4567_v61 }
0x2fce   :  { %v4636_v45 = vpop.f32.mrb[54].mxu1 }
0x2fcf   :  { %v4637_v0 = vadd.f32 %v4724_v60, %v4636_v45  ;;  %v5597_v62 = vpop.f32.mrb[55].mxu1 }
0x2fd1   :  { %4640 = vst [vmem:[%s7023_s2] sm:$0xff] %v4637_v0 }

</bundles_post_ra>
